<compile_context>
chip_gen: v7x
topology: tpu7x:2x2x1
jax: 0.10.0
libtpu: 0.0.40
codegen_flags: <defaults>
</compile_context>

<pallas_src>
import functools
import math

import jax
import jax.numpy as jnp
from jax.experimental import pallas as pl
from jax.experimental.pallas import tpu as pltpu

# ------------------------- model config -------------------------
IMG = 16           # img_size
PATCH = 4          # patch_size
CIN = 4            # in_channels
NUM_CLASSES = 10
EMBED = 32         # embed_dim
HEADS = 4          # num_heads
LAYERS = 2         # num_layers
HIDDEN = 64        # mlp hidden dim
EPS = 1e-5         # LayerNorm eps (PyTorch default)

NPATCH = (IMG // PATCH) ** 2         # 16 patches
SEQ = NPATCH + 1                     # 17 tokens (CLS + patches)
PATCH_DIM = CIN * PATCH * PATCH      # 64 flattened patch features
HD = EMBED // HEADS                  # 8 head dim
NC_PAD = 128                         # lane-dense padded class dim


def _round_up(n, m):
    return ((n + m - 1) // m) * m


# ------------------------- packed-parameter slab layouts -------------------------
# bf16 weight slab, 128 lanes wide.  All row offsets are multiples of 16
# (the bf16 sublane tile), so every in-kernel slice is tile-aligned.
W_PATCH = 0                                   # (PATCH_DIM, EMBED)
W_FC = W_PATCH + PATCH_DIM                    # (EMBED, NC_PAD)
W_LAYER0 = W_FC + EMBED                       # first per-layer block
W_QKV, W_WO, W_W1, W_W2 = 0, EMBED, 2 * EMBED, 3 * EMBED   # offsets inside a layer block
W_LSTRIDE = 3 * EMBED + HIDDEN                # 160 rows per layer
W_ROWS = W_LAYER0 + LAYERS * W_LSTRIDE        # 416 rows total

B_LSTRIDE = 8                                 # rows per layer in the f32 bias slab


def _b_layout(bs):
    """Row layout of the f32 bias slab for `bs` samples per grid step."""
    tokens = bs * SEQ
    tok = 0                                   # (tokens, EMBED) fused cls/pos/conv-bias
    layer = _round_up(tokens, 8)              # 8 rows per layer (LN g/b, bqkv, bo, LN g/b, b1, b2)
    fc = layer + LAYERS * B_LSTRIDE           # 1 row: classifier bias
    rows = _round_up(fc + 1, 8)
    return {"tok": tok, "layer": layer, "fc": fc, "rows": rows}


# ------------------------- in-kernel helpers -------------------------
def _gelu_erf(x):
    """GELU with an erf polynomial (Abramowitz & Stegun 7.1.26, |err|~1.5e-7).

    Matches PyTorch's exact-erf nn.GELU far more closely than the tanh
    approximation while using only exp / mul / add / div (all Mosaic-safe).
    """
    a1, a2, a3, a4, a5 = 0.254829592, -0.284496736, 1.421413741, -1.453152027, 1.061405429
    pp = 0.3275911
    z = x * 0.7071067811865476
    sgn = jnp.where(z >= 0.0, 1.0, -1.0)
    az = jnp.abs(z)
    t = 1.0 / (1.0 + pp * az)
    poly = ((((a5 * t + a4) * t + a3) * t + a2) * t + a1) * t
    erf = sgn * (1.0 - poly * jnp.exp(-az * az))
    return 0.5 * x * (1.0 + erf)


# ------------------------- fused Pallas kernel -------------------------
def _vit_kernel(patches_ref, wslab_ref, bslab_ref, out_ref, *, bs):
    bf16 = jnp.bfloat16
    tokens = bs * SEQ
    lay = _b_layout(bs)
    scale = 1.0 / math.sqrt(HD)

    def dot_nn(a16, b16):                     # (m,k)@(k,n); bf16 MXU in, f32 acc
        return jax.lax.dot_general(a16, b16, (((1,), (0,)), ((), ())),
                                   preferred_element_type=jnp.float32)

    def dot_nt(a16, b16):                     # (m,k)@(n,k)^T without a transpose op
        return jax.lax.dot_general(a16, b16, (((1,), (1,)), ((), ())),
                                   preferred_element_type=jnp.float32)

    def layernorm(v, g, b):
        mu = jnp.mean(v, axis=-1, keepdims=True)
        var = jnp.mean(jnp.square(v - mu), axis=-1, keepdims=True)
        return (v - mu) * jax.lax.rsqrt(var + EPS) * g + b

    def wrows(r0, nrows, ncols):              # bf16 weight-slab slice (static offsets)
        return wslab_ref[r0:r0 + nrows, 0:ncols]

    def brows(r0, nrows, ncols):              # f32 bias-slab slice (static offsets)
        return bslab_ref[r0:r0 + nrows, 0:ncols]

    # ---- patch embedding + fused cls/pos/conv-bias token bias -------------
    # Patch rows contain a zero "CLS slot" row per sample, so the matmul emits
    # zeros there and the precomputed bias supplies cls+pos -> no concat.
    x = dot_nn(patches_ref[...], wrows(W_PATCH, PATCH_DIM, EMBED)) \
        + brows(lay["tok"], tokens, EMBED)                       # (T, D) f32

    # ---- per-head 0/1 lane masks (hoisted; replace width-8 lane slices) ----
    lane = jax.lax.broadcasted_iota(jnp.int32, (1, EMBED), 1)
    head_masks = [jnp.where((lane >= h * HD) & (lane < (h + 1) * HD), 1.0, 0.0).astype(bf16)
                  for h in range(HEADS)]

    # ---- block-diagonal softmax bias: tokens only attend within their sample ----
    if bs > 1:
        r = jax.lax.broadcasted_iota(jnp.int32, (tokens, tokens), 0)
        c = jax.lax.broadcasted_iota(jnp.int32, (tokens, tokens), 1)
        same = None
        for b in range(bs):
            lo, hi = b * SEQ, (b + 1) * SEQ
            blk = (r >= lo) & (r < hi) & (c >= lo) & (c < hi)
            same = blk if same is None else (same | blk)
        attn_bias = jnp.where(same, 0.0, -1e30)
    else:
        attn_bias = None

    # ---- transformer encoder layers (weights resident, batch as one slab) ----
    for l in range(LAYERS):
        wr = W_LAYER0 + l * W_LSTRIDE
        br = lay["layer"] + l * B_LSTRIDE

        # -- MHSA (pre-LN) --
        h = layernorm(x, brows(br + 0, 1, EMBED), brows(br + 1, 1, EMBED))
        qkv = dot_nn(h.astype(bf16), wrows(wr + W_QKV, EMBED, 3 * EMBED)) \
            + brows(br + 2, 1, 3 * EMBED)                        # (T, 3D) f32
        q16 = qkv[:, 0:EMBED].astype(bf16)                       # cast once, reused per head
        k16 = qkv[:, EMBED:2 * EMBED].astype(bf16)
        v16 = qkv[:, 2 * EMBED:3 * EMBED].astype(bf16)

        o = jnp.zeros((tokens, EMBED), jnp.float32)
        for hh in range(HEADS):
            m = head_masks[hh]
            # (q*mask_h)@k^T == q_h@k_h^T : full-width matmul, no lane slicing
            s = dot_nt(q16 * m, k16) * scale
            if attn_bias is not None:
                s = s + attn_bias
            p = jax.nn.softmax(s, axis=-1)                       # f32
            # p_h@(v*mask_h) lands head h's output in its own lanes; sum == concat
            o = o + dot_nn(p.astype(bf16), v16 * m)              # (T, D) f32
        x = x + dot_nn(o.astype(bf16), wrows(wr + W_WO, EMBED, EMBED)) \
              + brows(br + 3, 1, EMBED)                          # residual

        # -- MLP (pre-LN) --
        h = layernorm(x, brows(br + 4, 1, EMBED), brows(br + 5, 1, EMBED))
        h = dot_nn(h.astype(bf16), wrows(wr + W_W1, EMBED, HIDDEN)) + brows(br + 6, 1, HIDDEN)
        h = _gelu_erf(h)
        h = dot_nn(h.astype(bf16), wrows(wr + W_W2, HIDDEN, EMBED)) + brows(br + 7, 1, EMBED)
        x = x + h                                                # residual

    # ---- classification head on the CLS rows (lane-dense 128-wide output) ----
    cls_x = jnp.concatenate([x[b * SEQ:b * SEQ + 1, :] for b in range(bs)], axis=0)
    out_ref[...] = dot_nn(cls_x.astype(bf16), wrows(W_FC, EMBED, NC_PAD)) \
                   + brows(lay["fc"], 1, NC_PAD)


# ------------------------- parameter init (logical, f32) -------------------------
def init_params(key):
    ks = iter(jax.random.split(key, 4 + 4 * LAYERS))
    nrm = lambda shape, s=0.02: s * jax.random.normal(next(ks), shape, jnp.float32)

    fc_w = jnp.zeros((EMBED, NC_PAD), jnp.float32)
    fc_w = fc_w.at[:, :NUM_CLASSES].set(nrm((EMBED, NUM_CLASSES)))

    return {
        # conv weight already transposed/flattened: (C*P*P, D)
        "patch_w": nrm((PATCH_DIM, EMBED)),
        "patch_b": jnp.zeros((EMBED,), jnp.float32),
        "cls": nrm((1, EMBED)),
        "pos": nrm((SEQ, EMBED)),
        "fc_w": fc_w,
        "fc_b": jnp.zeros((NC_PAD,), jnp.float32),
        "ln1_g": jnp.ones((LAYERS, EMBED), jnp.float32),
        "ln1_b": jnp.zeros((LAYERS, EMBED), jnp.float32),
        "wqkv": jnp.stack([nrm((EMBED, 3 * EMBED)) for _ in range(LAYERS)]),
        "bqkv": jnp.zeros((LAYERS, 3 * EMBED), jnp.float32),
        "wo": jnp.stack([nrm((EMBED, EMBED)) for _ in range(LAYERS)]),
        "bo": jnp.zeros((LAYERS, EMBED), jnp.float32),
        "ln2_g": jnp.ones((LAYERS, EMBED), jnp.float32),
        "ln2_b": jnp.zeros((LAYERS, EMBED), jnp.float32),
        "w1": jnp.stack([nrm((EMBED, HIDDEN)) for _ in range(LAYERS)]),
        "b1": jnp.zeros((LAYERS, HIDDEN), jnp.float32),
        "w2": jnp.stack([nrm((HIDDEN, EMBED)) for _ in range(LAYERS)]),
        "b2": jnp.zeros((LAYERS, EMBED), jnp.float32),
    }


# ------------------------- parameter packing (wrapper-side XLA glue) -------------------------
def _pack_wslab(p):
    """All matmul weights in one bf16 (W_ROWS, 128) slab."""
    w = jnp.zeros((W_ROWS, NC_PAD), jnp.float32)
    w = w.at[W_PATCH:W_PATCH + PATCH_DIM, :EMBED].set(p["patch_w"])
    w = w.at[W_FC:W_FC + EMBED, :].set(p["fc_w"])
    for l in range(LAYERS):
        r = W_LAYER0 + l * W_LSTRIDE
        w = w.at[r + W_QKV:r + W_QKV + EMBED, :3 * EMBED].set(p["wqkv"][l])
        w = w.at[r + W_WO:r + W_WO + EMBED, :EMBED].set(p["wo"][l])
        w = w.at[r + W_W1:r + W_W1 + EMBED, :HIDDEN].set(p["w1"][l])
        w = w.at[r + W_W2:r + W_W2 + HIDDEN, :EMBED].set(p["w2"][l])
    return w.astype(jnp.bfloat16)


def _pack_bslab(p, bs):
    """Fused token bias + all LN params / biases in one f32 (rows, 128) slab."""
    lay = _b_layout(bs)
    tokens = bs * SEQ
    b = jnp.zeros((lay["rows"], NC_PAD), jnp.float32)
    # token bias: row 0 = cls + pos[0] (CLS slot, no conv bias),
    #             rows 1.. = pos[1:] + patch_b (conv bias folded here)
    tok = jnp.concatenate([p["cls"] + p["pos"][0:1],
                           p["pos"][1:] + p["patch_b"][None, :]], axis=0)
    b = b.at[lay["tok"]:lay["tok"] + tokens, :EMBED].set(jnp.tile(tok, (bs, 1)))
    for l in range(LAYERS):
        r = lay["layer"] + l * B_LSTRIDE
        b = b.at[r + 0, :EMBED].set(p["ln1_g"][l])
        b = b.at[r + 1, :EMBED].set(p["ln1_b"][l])
        b = b.at[r + 2, :3 * EMBED].set(p["bqkv"][l])
        b = b.at[r + 3, :EMBED].set(p["bo"][l])
        b = b.at[r + 4, :EMBED].set(p["ln2_g"][l])
        b = b.at[r + 5, :EMBED].set(p["ln2_b"][l])
        b = b.at[r + 6, :HIDDEN].set(p["b1"][l])
        b = b.at[r + 7, :EMBED].set(p["b2"][l])
    b = b.at[lay["fc"], :].set(p["fc_b"])
    return b


# ------------------------- forward pass -------------------------
def vit_forward(params, x, samples_per_step=None):
    """x: (B, C, H, W) NCHW float32 -> logits (B, NUM_CLASSES).

    samples_per_step: images per grid step (must divide B).  Default = whole
    batch in a single step (best on 1-TensorCore v5e/v6e).  On v7x pass
    samples_per_step=B//2 so the "parallel" batch-chunk axis is sharded across
    both TensorCores.
    """
    B, C, H, W = x.shape
    assert (C, H, W) == (CIN, IMG, IMG)
    bs = B if samples_per_step is None else samples_per_step
    assert B % bs == 0
    grid_n = B // bs
    tokens = bs * SEQ

    # XLA glue: unfold patches, insert a zero CLS-slot row per sample, and
    # pre-cast to bf16 (halves the only non-trivial input DMA).
    gh, gw = H // PATCH, W // PATCH
    p = x.reshape(B, C, gh, PATCH, gw, PATCH).transpose(0, 2, 4, 1, 3, 5)
    p = p.reshape(B, NPATCH, PATCH_DIM)
    p = jnp.concatenate([jnp.zeros((B, 1, PATCH_DIM), p.dtype), p], axis=1)
    patches = p.astype(jnp.bfloat16).reshape(grid_n, tokens, PATCH_DIM)

    # Pack the 19 logical parameters into 2 slabs -> 3 input DMAs total.
    wslab = _pack_wslab(params)          # (416, 128) bf16
    bslab = _pack_bslab(params, bs)      # (rows, 128) f32

    out = pl.pallas_call(
        functools.partial(_vit_kernel, bs=bs),
        out_shape=jax.ShapeDtypeStruct((grid_n, bs, NC_PAD), jnp.float32),
        grid=(grid_n,),
        in_specs=[
            pl.BlockSpec((None, tokens, PATCH_DIM), lambda g: (g, 0, 0)),
            pl.BlockSpec((W_ROWS, NC_PAD), lambda g: (0, 0)),
            pl.BlockSpec((bslab.shape[0], NC_PAD), lambda g: (0, 0)),
        ],
        out_specs=pl.BlockSpec((None, bs, NC_PAD), lambda g: (g, 0, 0)),
        compiler_params=pltpu.CompilerParams(
            dimension_semantics=("parallel",)),
    )(patches, wslab, bslab)

    return out.reshape(B, NC_PAD)[:, :NUM_CLASSES]


# ------------------------- main -------------------------
if __name__ == "__main__":
    key = jax.random.PRNGKey(0)
    pkey, xkey = jax.random.split(key)
    params = init_params(pkey)
    x = jax.random.normal(xkey, (2, CIN, IMG, IMG), jnp.float32)   # NCHW

    logits = jax.jit(vit_forward)(params, x)
    jax.block_until_ready(logits)
    assert logits.shape == (2, NUM_CLASSES)
    assert bool(jnp.all(jnp.isfinite(logits)))
    print("KERNEL_OK")
</pallas_src>

<mosaic_0001>
module attributes {stable_mosaic.version = 11 : i64} {
  func.func @_vit_kernel(%arg0: i32, %arg1: memref<1x34x64xbf16, #tpu.memory_space<vmem>>, %arg2: memref<416x128xbf16, #tpu.memory_space<vmem>>, %arg3: memref<64x128xf32, #tpu.memory_space<vmem>>, %arg4: memref<1x2x128xf32, #tpu.memory_space<vmem>>) attributes {dimension_semantics = [#tpu.dimension_semantics<parallel>], iteration_bounds = array<i64: 1>, scalar_prefetch = 0 : i64, scratch_operands = 0 : i64, tpu.core_type = #tpu.core_type<tc>, window_params = [{transform_indices = @transform_0, window_bounds = array<i64: 1, 34, 64>}, {pipeline_mode = #tpu.pipeline_mode<synchronous>, transform_indices = @transform_1, window_bounds = array<i64: 416, 128>}, {pipeline_mode = #tpu.pipeline_mode<synchronous>, transform_indices = @transform_2, window_bounds = array<i64: 64, 128>}, {transform_indices = @transform_3, window_bounds = array<i64: 1, 2, 128>}]} {
    %c0 = arith.constant 0 : index
    %c0_0 = arith.constant 0 : index
    %c0_1 = arith.constant 0 : index
    %0 = vector.load %arg1[%c0, %c0_0, %c0_1] : memref<1x34x64xbf16, #tpu.memory_space<vmem>>, vector<1x34x64xbf16>
    %1 = vector.shape_cast %0 : vector<1x34x64xbf16> to vector<34x64xbf16>
    %c0_2 = arith.constant 0 : index
    %c0_3 = arith.constant 0 : index
    %2 = vector.load %arg2[%c0_2, %c0_3] : memref<416x128xbf16, #tpu.memory_space<vmem>>, vector<64x32xbf16>
    %cst = arith.constant dense<0.000000e+00> : vector<34x32xf32>
    %3 = tpu.matmul %1, %2, %cst {dimension_numbers = #tpu.dot_dimension_numbers<[1], [0], [0], [1], [0, 0, 1, 1], [], []>} : vector<34x64xbf16>, vector<64x32xbf16>, vector<34x32xf32> -> vector<34x32xf32>
    %c0_4 = arith.constant 0 : index
    %c0_5 = arith.constant 0 : index
    %4 = vector.load %arg3[%c0_4, %c0_5] : memref<64x128xf32, #tpu.memory_space<vmem>>, vector<34x32xf32>
    %5 = arith.addf %3, %4 : vector<34x32xf32>
    %6 = tpu.iota {dimensions = array<i32: 1>} : vector<1x32xi32>
    %c0_i32 = arith.constant 0 : i32
    %7 = vector.broadcast %c0_i32 : i32 to vector<1x32xi32>
    %8 = arith.cmpi sge, %6, %7 : vector<1x32xi32>
    %c8_i32 = arith.constant 8 : i32
    %9 = vector.broadcast %c8_i32 : i32 to vector<1x32xi32>
    %10 = arith.cmpi slt, %6, %9 : vector<1x32xi32>
    %11 = arith.andi %8, %10 : vector<1x32xi1>
    %cst_6 = arith.constant 1.000000e+00 : f32
    %cst_7 = arith.constant 0.000000e+00 : f32
    %12 = vector.broadcast %cst_6 : f32 to vector<1x32xf32>
    %13 = vector.broadcast %cst_7 : f32 to vector<1x32xf32>
    %14 = arith.select %11, %12, %13 : vector<1x32xi1>, vector<1x32xf32>
    %15 = arith.truncf %14 : vector<1x32xf32> to vector<1x32xbf16>
    %c8_i32_8 = arith.constant 8 : i32
    %16 = vector.broadcast %c8_i32_8 : i32 to vector<1x32xi32>
    %17 = arith.cmpi sge, %6, %16 : vector<1x32xi32>
    %c16_i32 = arith.constant 16 : i32
    %18 = vector.broadcast %c16_i32 : i32 to vector<1x32xi32>
    %19 = arith.cmpi slt, %6, %18 : vector<1x32xi32>
    %20 = arith.andi %17, %19 : vector<1x32xi1>
    %cst_9 = arith.constant 1.000000e+00 : f32
    %cst_10 = arith.constant 0.000000e+00 : f32
    %21 = vector.broadcast %cst_9 : f32 to vector<1x32xf32>
    %22 = vector.broadcast %cst_10 : f32 to vector<1x32xf32>
    %23 = arith.select %20, %21, %22 : vector<1x32xi1>, vector<1x32xf32>
    %24 = arith.truncf %23 : vector<1x32xf32> to vector<1x32xbf16>
    %c16_i32_11 = arith.constant 16 : i32
    %25 = vector.broadcast %c16_i32_11 : i32 to vector<1x32xi32>
    %26 = arith.cmpi sge, %6, %25 : vector<1x32xi32>
    %c24_i32 = arith.constant 24 : i32
    %27 = vector.broadcast %c24_i32 : i32 to vector<1x32xi32>
    %28 = arith.cmpi slt, %6, %27 : vector<1x32xi32>
    %29 = arith.andi %26, %28 : vector<1x32xi1>
    %cst_12 = arith.constant 1.000000e+00 : f32
    %cst_13 = arith.constant 0.000000e+00 : f32
    %30 = vector.broadcast %cst_12 : f32 to vector<1x32xf32>
    %31 = vector.broadcast %cst_13 : f32 to vector<1x32xf32>
    %32 = arith.select %29, %30, %31 : vector<1x32xi1>, vector<1x32xf32>
    %33 = arith.truncf %32 : vector<1x32xf32> to vector<1x32xbf16>
    %c24_i32_14 = arith.constant 24 : i32
    %34 = vector.broadcast %c24_i32_14 : i32 to vector<1x32xi32>
    %35 = arith.cmpi sge, %6, %34 : vector<1x32xi32>
    %c32_i32 = arith.constant 32 : i32
    %36 = vector.broadcast %c32_i32 : i32 to vector<1x32xi32>
    %37 = arith.cmpi slt, %6, %36 : vector<1x32xi32>
    %38 = arith.andi %35, %37 : vector<1x32xi1>
    %cst_15 = arith.constant 1.000000e+00 : f32
    %cst_16 = arith.constant 0.000000e+00 : f32
    %39 = vector.broadcast %cst_15 : f32 to vector<1x32xf32>
    %40 = vector.broadcast %cst_16 : f32 to vector<1x32xf32>
    %41 = arith.select %38, %39, %40 : vector<1x32xi1>, vector<1x32xf32>
    %42 = arith.truncf %41 : vector<1x32xf32> to vector<1x32xbf16>
    %43 = tpu.iota {dimensions = array<i32: 0>} : vector<34x34xi32>
    %44 = tpu.iota {dimensions = array<i32: 1>} : vector<34x34xi32>
    %c0_i32_17 = arith.constant 0 : i32
    %45 = vector.broadcast %c0_i32_17 : i32 to vector<34x34xi32>
    %46 = arith.cmpi sge, %43, %45 : vector<34x34xi32>
    %c17_i32 = arith.constant 17 : i32
    %47 = vector.broadcast %c17_i32 : i32 to vector<34x34xi32>
    %48 = arith.cmpi slt, %43, %47 : vector<34x34xi32>
    %49 = arith.andi %46, %48 : vector<34x34xi1>
    %c0_i32_18 = arith.constant 0 : i32
    %50 = vector.broadcast %c0_i32_18 : i32 to vector<34x34xi32>
    %51 = arith.cmpi sge, %44, %50 : vector<34x34xi32>
    %52 = arith.andi %49, %51 : vector<34x34xi1>
    %c17_i32_19 = arith.constant 17 : i32
    %53 = vector.broadcast %c17_i32_19 : i32 to vector<34x34xi32>
    %54 = arith.cmpi slt, %44, %53 : vector<34x34xi32>
    %55 = arith.andi %52, %54 : vector<34x34xi1>
    %c17_i32_20 = arith.constant 17 : i32
    %56 = vector.broadcast %c17_i32_20 : i32 to vector<34x34xi32>
    %57 = arith.cmpi sge, %43, %56 : vector<34x34xi32>
    %c34_i32 = arith.constant 34 : i32
    %58 = vector.broadcast %c34_i32 : i32 to vector<34x34xi32>
    %59 = arith.cmpi slt, %43, %58 : vector<34x34xi32>
    %60 = arith.andi %57, %59 : vector<34x34xi1>
    %c17_i32_21 = arith.constant 17 : i32
    %61 = vector.broadcast %c17_i32_21 : i32 to vector<34x34xi32>
    %62 = arith.cmpi sge, %44, %61 : vector<34x34xi32>
    %63 = arith.andi %60, %62 : vector<34x34xi1>
    %c34_i32_22 = arith.constant 34 : i32
    %64 = vector.broadcast %c34_i32_22 : i32 to vector<34x34xi32>
    %65 = arith.cmpi slt, %44, %64 : vector<34x34xi32>
    %66 = arith.andi %63, %65 : vector<34x34xi1>
    %67 = arith.ori %55, %66 : vector<34x34xi1>
    %cst_23 = arith.constant 0.000000e+00 : f32
    %cst_24 = arith.constant -1.000000e+30 : f32
    %68 = vector.broadcast %cst_23 : f32 to vector<34x34xf32>
    %69 = vector.broadcast %cst_24 : f32 to vector<34x34xf32>
    %70 = arith.select %67, %68, %69 : vector<34x34xi1>, vector<34x34xf32>
    %c40 = arith.constant 40 : index
    %c0_25 = arith.constant 0 : index
    %71 = vector.load %arg3[%c40, %c0_25] : memref<64x128xf32, #tpu.memory_space<vmem>>, vector<1x32xf32>
    %c41 = arith.constant 41 : index
    %c0_26 = arith.constant 0 : index
    %72 = vector.load %arg3[%c41, %c0_26] : memref<64x128xf32, #tpu.memory_space<vmem>>, vector<1x32xf32>
    %cst_27 = arith.constant dense<0.000000e+00> : vector<34xf32>
    %73 = vector.multi_reduction <add>, %5, %cst_27 [1] : vector<34x32xf32> to vector<34xf32>
    %74 = vector.shape_cast %73 : vector<34xf32> to vector<34x1xf32>
    %cst_28 = arith.constant 3.200000e+01 : f32
    %75 = vector.broadcast %cst_28 : f32 to vector<34x1xf32>
    %76 = arith.divf %74, %75 : vector<34x1xf32>
    %77 = vector.broadcast %76 : vector<34x1xf32> to vector<34x32xf32>
    %78 = arith.subf %5, %77 : vector<34x32xf32>
    %79 = arith.mulf %78, %78 : vector<34x32xf32>
    %cst_29 = arith.constant dense<0.000000e+00> : vector<34xf32>
    %80 = vector.multi_reduction <add>, %79, %cst_29 [1] : vector<34x32xf32> to vector<34xf32>
    %81 = vector.shape_cast %80 : vector<34xf32> to vector<34x1xf32>
    %cst_30 = arith.constant 3.200000e+01 : f32
    %82 = vector.broadcast %cst_30 : f32 to vector<34x1xf32>
    %83 = arith.divf %81, %82 : vector<34x1xf32>
    %84 = vector.broadcast %76 : vector<34x1xf32> to vector<34x32xf32>
    %85 = arith.subf %5, %84 : vector<34x32xf32>
    %cst_31 = arith.constant 9.99999974E-6 : f32
    %86 = vector.broadcast %cst_31 : f32 to vector<34x1xf32>
    %87 = arith.addf %83, %86 : vector<34x1xf32>
    %88 = math.rsqrt %87 : vector<34x1xf32>
    %89 = vector.broadcast %88 : vector<34x1xf32> to vector<34x32xf32>
    %90 = arith.mulf %85, %89 : vector<34x32xf32>
    %91 = vector.broadcast %71 : vector<1x32xf32> to vector<34x32xf32>
    %92 = arith.mulf %90, %91 : vector<34x32xf32>
    %93 = vector.broadcast %72 : vector<1x32xf32> to vector<34x32xf32>
    %94 = arith.addf %92, %93 : vector<34x32xf32>
    %95 = arith.truncf %94 : vector<34x32xf32> to vector<34x32xbf16>
    %c96 = arith.constant 96 : index
    %c0_32 = arith.constant 0 : index
    %96 = vector.load %arg2[%c96, %c0_32] : memref<416x128xbf16, #tpu.memory_space<vmem>>, vector<32x96xbf16>
    %cst_33 = arith.constant dense<0.000000e+00> : vector<34x96xf32>
    %97 = tpu.matmul %95, %96, %cst_33 {dimension_numbers = #tpu.dot_dimension_numbers<[1], [0], [0], [1], [0, 0, 1, 1], [], []>} : vector<34x32xbf16>, vector<32x96xbf16>, vector<34x96xf32> -> vector<34x96xf32>
    %c42 = arith.constant 42 : index
    %c0_34 = arith.constant 0 : index
    %98 = vector.load %arg3[%c42, %c0_34] : memref<64x128xf32, #tpu.memory_space<vmem>>, vector<1x96xf32>
    %99 = vector.broadcast %98 : vector<1x96xf32> to vector<34x96xf32>
    %100 = arith.addf %97, %99 : vector<34x96xf32>
    %101 = vector.extract_strided_slice %100 {offsets = [0, 0], sizes = [34, 32], strides = [1, 1]} : vector<34x96xf32> to vector<34x32xf32>
    %102 = arith.truncf %101 : vector<34x32xf32> to vector<34x32xbf16>
    %103 = vector.extract_strided_slice %100 {offsets = [0, 32], sizes = [34, 32], strides = [1, 1]} : vector<34x96xf32> to vector<34x32xf32>
    %104 = arith.truncf %103 : vector<34x32xf32> to vector<34x32xbf16>
    %105 = vector.extract_strided_slice %100 {offsets = [0, 64], sizes = [34, 32], strides = [1, 1]} : vector<34x96xf32> to vector<34x32xf32>
    %106 = arith.truncf %105 : vector<34x32xf32> to vector<34x32xbf16>
    %cst_35 = arith.constant 0.000000e+00 : f32
    %107 = vector.broadcast %cst_35 : f32 to vector<34x32xf32>
    %108 = vector.broadcast %15 : vector<1x32xbf16> to vector<34x32xbf16>
    %109 = arith.mulf %102, %108 : vector<34x32xbf16>
    %cst_36 = arith.constant dense<0.000000e+00> : vector<34x34xf32>
    %110 = tpu.matmul %109, %104, %cst_36 {dimension_numbers = #tpu.dot_dimension_numbers<[1], [1], [0], [0], [0, 0, 1, 0], [], []>} : vector<34x32xbf16>, vector<34x32xbf16>, vector<34x34xf32> -> vector<34x34xf32>
    %cst_37 = arith.constant 0.353553385 : f32
    %111 = vector.broadcast %cst_37 : f32 to vector<34x34xf32>
    %112 = arith.mulf %110, %111 : vector<34x34xf32>
    %113 = arith.addf %112, %70 : vector<34x34xf32>
    %cst_38 = arith.constant dense<0xFF800000> : vector<34xf32>
    %114 = vector.multi_reduction <maximumf>, %113, %cst_38 [1] : vector<34x34xf32> to vector<34xf32>
    %cst_39 = arith.constant 0xFF800000 : f32
    %115 = vector.broadcast %cst_39 : f32 to vector<34xf32>
    %116 = arith.maximumf %115, %114 : vector<34xf32>
    %117 = vector.shape_cast %116 : vector<34xf32> to vector<34x1xf32>
    %118 = vector.broadcast %117 : vector<34x1xf32> to vector<34x34xf32>
    %119 = arith.subf %113, %118 : vector<34x34xf32>
    %120 = math.exp %119 : vector<34x34xf32>
    %cst_40 = arith.constant dense<0.000000e+00> : vector<34xf32>
    %121 = vector.multi_reduction <add>, %120, %cst_40 [1] : vector<34x34xf32> to vector<34xf32>
    %122 = vector.shape_cast %121 : vector<34xf32> to vector<34x1xf32>
    %123 = vector.broadcast %122 : vector<34x1xf32> to vector<34x34xf32>
    %124 = arith.divf %120, %123 : vector<34x34xf32>
    %125 = arith.truncf %124 : vector<34x34xf32> to vector<34x34xbf16>
    %126 = vector.broadcast %15 : vector<1x32xbf16> to vector<34x32xbf16>
    %127 = arith.mulf %106, %126 : vector<34x32xbf16>
    %cst_41 = arith.constant dense<0.000000e+00> : vector<34x32xf32>
    %128 = tpu.matmul %125, %127, %cst_41 {dimension_numbers = #tpu.dot_dimension_numbers<[1], [0], [0], [1], [0, 0, 1, 1], [], []>} : vector<34x34xbf16>, vector<34x32xbf16>, vector<34x32xf32> -> vector<34x32xf32>
    %129 = arith.addf %107, %128 : vector<34x32xf32>
    %130 = vector.broadcast %24 : vector<1x32xbf16> to vector<34x32xbf16>
    %131 = arith.mulf %102, %130 : vector<34x32xbf16>
    %cst_42 = arith.constant dense<0.000000e+00> : vector<34x34xf32>
    %132 = tpu.matmul %131, %104, %cst_42 {dimension_numbers = #tpu.dot_dimension_numbers<[1], [1], [0], [0], [0, 0, 1, 0], [], []>} : vector<34x32xbf16>, vector<34x32xbf16>, vector<34x34xf32> -> vector<34x34xf32>
    %cst_43 = arith.constant 0.353553385 : f32
    %133 = vector.broadcast %cst_43 : f32 to vector<34x34xf32>
    %134 = arith.mulf %132, %133 : vector<34x34xf32>
    %135 = arith.addf %134, %70 : vector<34x34xf32>
    %cst_44 = arith.constant dense<0xFF800000> : vector<34xf32>
    %136 = vector.multi_reduction <maximumf>, %135, %cst_44 [1] : vector<34x34xf32> to vector<34xf32>
    %cst_45 = arith.constant 0xFF800000 : f32
    %137 = vector.broadcast %cst_45 : f32 to vector<34xf32>
    %138 = arith.maximumf %137, %136 : vector<34xf32>
    %139 = vector.shape_cast %138 : vector<34xf32> to vector<34x1xf32>
    %140 = vector.broadcast %139 : vector<34x1xf32> to vector<34x34xf32>
    %141 = arith.subf %135, %140 : vector<34x34xf32>
    %142 = math.exp %141 : vector<34x34xf32>
    %cst_46 = arith.constant dense<0.000000e+00> : vector<34xf32>
    %143 = vector.multi_reduction <add>, %142, %cst_46 [1] : vector<34x34xf32> to vector<34xf32>
    %144 = vector.shape_cast %143 : vector<34xf32> to vector<34x1xf32>
    %145 = vector.broadcast %144 : vector<34x1xf32> to vector<34x34xf32>
    %146 = arith.divf %142, %145 : vector<34x34xf32>
    %147 = arith.truncf %146 : vector<34x34xf32> to vector<34x34xbf16>
    %148 = vector.broadcast %24 : vector<1x32xbf16> to vector<34x32xbf16>
    %149 = arith.mulf %106, %148 : vector<34x32xbf16>
    %cst_47 = arith.constant dense<0.000000e+00> : vector<34x32xf32>
    %150 = tpu.matmul %147, %149, %cst_47 {dimension_numbers = #tpu.dot_dimension_numbers<[1], [0], [0], [1], [0, 0, 1, 1], [], []>} : vector<34x34xbf16>, vector<34x32xbf16>, vector<34x32xf32> -> vector<34x32xf32>
    %151 = arith.addf %129, %150 : vector<34x32xf32>
    %152 = vector.broadcast %33 : vector<1x32xbf16> to vector<34x32xbf16>
    %153 = arith.mulf %102, %152 : vector<34x32xbf16>
    %cst_48 = arith.constant dense<0.000000e+00> : vector<34x34xf32>
    %154 = tpu.matmul %153, %104, %cst_48 {dimension_numbers = #tpu.dot_dimension_numbers<[1], [1], [0], [0], [0, 0, 1, 0], [], []>} : vector<34x32xbf16>, vector<34x32xbf16>, vector<34x34xf32> -> vector<34x34xf32>
    %cst_49 = arith.constant 0.353553385 : f32
    %155 = vector.broadcast %cst_49 : f32 to vector<34x34xf32>
    %156 = arith.mulf %154, %155 : vector<34x34xf32>
    %157 = arith.addf %156, %70 : vector<34x34xf32>
    %cst_50 = arith.constant dense<0xFF800000> : vector<34xf32>
    %158 = vector.multi_reduction <maximumf>, %157, %cst_50 [1] : vector<34x34xf32> to vector<34xf32>
    %cst_51 = arith.constant 0xFF800000 : f32
    %159 = vector.broadcast %cst_51 : f32 to vector<34xf32>
    %160 = arith.maximumf %159, %158 : vector<34xf32>
    %161 = vector.shape_cast %160 : vector<34xf32> to vector<34x1xf32>
    %162 = vector.broadcast %161 : vector<34x1xf32> to vector<34x34xf32>
    %163 = arith.subf %157, %162 : vector<34x34xf32>
    %164 = math.exp %163 : vector<34x34xf32>
    %cst_52 = arith.constant dense<0.000000e+00> : vector<34xf32>
    %165 = vector.multi_reduction <add>, %164, %cst_52 [1] : vector<34x34xf32> to vector<34xf32>
    %166 = vector.shape_cast %165 : vector<34xf32> to vector<34x1xf32>
    %167 = vector.broadcast %166 : vector<34x1xf32> to vector<34x34xf32>
    %168 = arith.divf %164, %167 : vector<34x34xf32>
    %169 = arith.truncf %168 : vector<34x34xf32> to vector<34x34xbf16>
    %170 = vector.broadcast %33 : vector<1x32xbf16> to vector<34x32xbf16>
    %171 = arith.mulf %106, %170 : vector<34x32xbf16>
    %cst_53 = arith.constant dense<0.000000e+00> : vector<34x32xf32>
    %172 = tpu.matmul %169, %171, %cst_53 {dimension_numbers = #tpu.dot_dimension_numbers<[1], [0], [0], [1], [0, 0, 1, 1], [], []>} : vector<34x34xbf16>, vector<34x32xbf16>, vector<34x32xf32> -> vector<34x32xf32>
    %173 = arith.addf %151, %172 : vector<34x32xf32>
    %174 = vector.broadcast %42 : vector<1x32xbf16> to vector<34x32xbf16>
    %175 = arith.mulf %102, %174 : vector<34x32xbf16>
    %cst_54 = arith.constant dense<0.000000e+00> : vector<34x34xf32>
    %176 = tpu.matmul %175, %104, %cst_54 {dimension_numbers = #tpu.dot_dimension_numbers<[1], [1], [0], [0], [0, 0, 1, 0], [], []>} : vector<34x32xbf16>, vector<34x32xbf16>, vector<34x34xf32> -> vector<34x34xf32>
    %cst_55 = arith.constant 0.353553385 : f32
    %177 = vector.broadcast %cst_55 : f32 to vector<34x34xf32>
    %178 = arith.mulf %176, %177 : vector<34x34xf32>
    %179 = arith.addf %178, %70 : vector<34x34xf32>
    %cst_56 = arith.constant dense<0xFF800000> : vector<34xf32>
    %180 = vector.multi_reduction <maximumf>, %179, %cst_56 [1] : vector<34x34xf32> to vector<34xf32>
    %cst_57 = arith.constant 0xFF800000 : f32
    %181 = vector.broadcast %cst_57 : f32 to vector<34xf32>
    %182 = arith.maximumf %181, %180 : vector<34xf32>
    %183 = vector.shape_cast %182 : vector<34xf32> to vector<34x1xf32>
    %184 = vector.broadcast %183 : vector<34x1xf32> to vector<34x34xf32>
    %185 = arith.subf %179, %184 : vector<34x34xf32>
    %186 = math.exp %185 : vector<34x34xf32>
    %cst_58 = arith.constant dense<0.000000e+00> : vector<34xf32>
    %187 = vector.multi_reduction <add>, %186, %cst_58 [1] : vector<34x34xf32> to vector<34xf32>
    %188 = vector.shape_cast %187 : vector<34xf32> to vector<34x1xf32>
    %189 = vector.broadcast %188 : vector<34x1xf32> to vector<34x34xf32>
    %190 = arith.divf %186, %189 : vector<34x34xf32>
    %191 = arith.truncf %190 : vector<34x34xf32> to vector<34x34xbf16>
    %192 = vector.broadcast %42 : vector<1x32xbf16> to vector<34x32xbf16>
    %193 = arith.mulf %106, %192 : vector<34x32xbf16>
    %cst_59 = arith.constant dense<0.000000e+00> : vector<34x32xf32>
    %194 = tpu.matmul %191, %193, %cst_59 {dimension_numbers = #tpu.dot_dimension_numbers<[1], [0], [0], [1], [0, 0, 1, 1], [], []>} : vector<34x34xbf16>, vector<34x32xbf16>, vector<34x32xf32> -> vector<34x32xf32>
    %195 = arith.addf %173, %194 : vector<34x32xf32>
    %196 = arith.truncf %195 : vector<34x32xf32> to vector<34x32xbf16>
    %c128 = arith.constant 128 : index
    %c0_60 = arith.constant 0 : index
    %197 = vector.load %arg2[%c128, %c0_60] : memref<416x128xbf16, #tpu.memory_space<vmem>>, vector<32x32xbf16>
    %cst_61 = arith.constant dense<0.000000e+00> : vector<34x32xf32>
    %198 = tpu.matmul %196, %197, %cst_61 {dimension_numbers = #tpu.dot_dimension_numbers<[1], [0], [0], [1], [0, 0, 1, 1], [], []>} : vector<34x32xbf16>, vector<32x32xbf16>, vector<34x32xf32> -> vector<34x32xf32>
    %199 = arith.addf %5, %198 : vector<34x32xf32>
    %c43 = arith.constant 43 : index
    %c0_62 = arith.constant 0 : index
    %200 = vector.load %arg3[%c43, %c0_62] : memref<64x128xf32, #tpu.memory_space<vmem>>, vector<1x32xf32>
    %201 = vector.broadcast %200 : vector<1x32xf32> to vector<34x32xf32>
    %202 = arith.addf %199, %201 : vector<34x32xf32>
    %c44 = arith.constant 44 : index
    %c0_63 = arith.constant 0 : index
    %203 = vector.load %arg3[%c44, %c0_63] : memref<64x128xf32, #tpu.memory_space<vmem>>, vector<1x32xf32>
    %c45 = arith.constant 45 : index
    %c0_64 = arith.constant 0 : index
    %204 = vector.load %arg3[%c45, %c0_64] : memref<64x128xf32, #tpu.memory_space<vmem>>, vector<1x32xf32>
    %cst_65 = arith.constant dense<0.000000e+00> : vector<34xf32>
    %205 = vector.multi_reduction <add>, %202, %cst_65 [1] : vector<34x32xf32> to vector<34xf32>
    %206 = vector.shape_cast %205 : vector<34xf32> to vector<34x1xf32>
    %cst_66 = arith.constant 3.200000e+01 : f32
    %207 = vector.broadcast %cst_66 : f32 to vector<34x1xf32>
    %208 = arith.divf %206, %207 : vector<34x1xf32>
    %209 = vector.broadcast %208 : vector<34x1xf32> to vector<34x32xf32>
    %210 = arith.subf %202, %209 : vector<34x32xf32>
    %211 = arith.mulf %210, %210 : vector<34x32xf32>
    %cst_67 = arith.constant dense<0.000000e+00> : vector<34xf32>
    %212 = vector.multi_reduction <add>, %211, %cst_67 [1] : vector<34x32xf32> to vector<34xf32>
    %213 = vector.shape_cast %212 : vector<34xf32> to vector<34x1xf32>
    %cst_68 = arith.constant 3.200000e+01 : f32
    %214 = vector.broadcast %cst_68 : f32 to vector<34x1xf32>
    %215 = arith.divf %213, %214 : vector<34x1xf32>
    %216 = vector.broadcast %208 : vector<34x1xf32> to vector<34x32xf32>
    %217 = arith.subf %202, %216 : vector<34x32xf32>
    %cst_69 = arith.constant 9.99999974E-6 : f32
    %218 = vector.broadcast %cst_69 : f32 to vector<34x1xf32>
    %219 = arith.addf %215, %218 : vector<34x1xf32>
    %220 = math.rsqrt %219 : vector<34x1xf32>
    %221 = vector.broadcast %220 : vector<34x1xf32> to vector<34x32xf32>
    %222 = arith.mulf %217, %221 : vector<34x32xf32>
    %223 = vector.broadcast %203 : vector<1x32xf32> to vector<34x32xf32>
    %224 = arith.mulf %222, %223 : vector<34x32xf32>
    %225 = vector.broadcast %204 : vector<1x32xf32> to vector<34x32xf32>
    %226 = arith.addf %224, %225 : vector<34x32xf32>
    %227 = arith.truncf %226 : vector<34x32xf32> to vector<34x32xbf16>
    %c160 = arith.constant 160 : index
    %c0_70 = arith.constant 0 : index
    %228 = vector.load %arg2[%c160, %c0_70] : memref<416x128xbf16, #tpu.memory_space<vmem>>, vector<32x64xbf16>
    %cst_71 = arith.constant dense<0.000000e+00> : vector<34x64xf32>
    %229 = tpu.matmul %227, %228, %cst_71 {dimension_numbers = #tpu.dot_dimension_numbers<[1], [0], [0], [1], [0, 0, 1, 1], [], []>} : vector<34x32xbf16>, vector<32x64xbf16>, vector<34x64xf32> -> vector<34x64xf32>
    %c46 = arith.constant 46 : index
    %c0_72 = arith.constant 0 : index
    %230 = vector.load %arg3[%c46, %c0_72] : memref<64x128xf32, #tpu.memory_space<vmem>>, vector<1x64xf32>
    %231 = vector.broadcast %230 : vector<1x64xf32> to vector<34x64xf32>
    %232 = arith.addf %229, %231 : vector<34x64xf32>
    %cst_73 = arith.constant 0.707106769 : f32
    %233 = vector.broadcast %cst_73 : f32 to vector<34x64xf32>
    %234 = arith.mulf %232, %233 : vector<34x64xf32>
    %cst_74 = arith.constant 0.000000e+00 : f32
    %235 = vector.broadcast %cst_74 : f32 to vector<34x64xf32>
    %236 = arith.cmpf oge, %234, %235 : vector<34x64xf32>
    %cst_75 = arith.constant 1.000000e+00 : f32
    %cst_76 = arith.constant -1.000000e+00 : f32
    %237 = vector.broadcast %cst_75 : f32 to vector<34x64xf32>
    %238 = vector.broadcast %cst_76 : f32 to vector<34x64xf32>
    %239 = arith.select %236, %237, %238 : vector<34x64xi1>, vector<34x64xf32>
    %240 = math.absf %234 : vector<34x64xf32>
    %cst_77 = arith.constant 0.327591091 : f32
    %241 = vector.broadcast %cst_77 : f32 to vector<34x64xf32>
    %242 = arith.mulf %241, %240 : vector<34x64xf32>
    %cst_78 = arith.constant 1.000000e+00 : f32
    %243 = vector.broadcast %cst_78 : f32 to vector<34x64xf32>
    %244 = arith.addf %243, %242 : vector<34x64xf32>
    %cst_79 = arith.constant 1.000000e+00 : f32
    %245 = vector.broadcast %cst_79 : f32 to vector<34x64xf32>
    %246 = arith.divf %245, %244 : vector<34x64xf32>
    %cst_80 = arith.constant 1.06140542 : f32
    %247 = vector.broadcast %cst_80 : f32 to vector<34x64xf32>
    %248 = arith.mulf %247, %246 : vector<34x64xf32>
    %cst_81 = arith.constant -1.45315206 : f32
    %249 = vector.broadcast %cst_81 : f32 to vector<34x64xf32>
    %250 = arith.addf %248, %249 : vector<34x64xf32>
    %251 = arith.mulf %250, %246 : vector<34x64xf32>
    %cst_82 = arith.constant 1.42141378 : f32
    %252 = vector.broadcast %cst_82 : f32 to vector<34x64xf32>
    %253 = arith.addf %251, %252 : vector<34x64xf32>
    %254 = arith.mulf %253, %246 : vector<34x64xf32>
    %cst_83 = arith.constant -0.284496725 : f32
    %255 = vector.broadcast %cst_83 : f32 to vector<34x64xf32>
    %256 = arith.addf %254, %255 : vector<34x64xf32>
    %257 = arith.mulf %256, %246 : vector<34x64xf32>
    %cst_84 = arith.constant 0.254829586 : f32
    %258 = vector.broadcast %cst_84 : f32 to vector<34x64xf32>
    %259 = arith.addf %257, %258 : vector<34x64xf32>
    %260 = arith.mulf %259, %246 : vector<34x64xf32>
    %cst_85 = arith.constant 0.000000e+00 : f32
    %261 = vector.broadcast %cst_85 : f32 to vector<34x64xf32>
    %262 = arith.subf %261, %240 : vector<34x64xf32>
    %263 = arith.mulf %262, %240 : vector<34x64xf32>
    %264 = math.exp %263 : vector<34x64xf32>
    %265 = arith.mulf %260, %264 : vector<34x64xf32>
    %cst_86 = arith.constant 1.000000e+00 : f32
    %266 = vector.broadcast %cst_86 : f32 to vector<34x64xf32>
    %267 = arith.subf %266, %265 : vector<34x64xf32>
    %268 = arith.mulf %239, %267 : vector<34x64xf32>
    %cst_87 = arith.constant 5.000000e-01 : f32
    %269 = vector.broadcast %cst_87 : f32 to vector<34x64xf32>
    %270 = arith.mulf %269, %232 : vector<34x64xf32>
    %cst_88 = arith.constant 1.000000e+00 : f32
    %271 = vector.broadcast %cst_88 : f32 to vector<34x64xf32>
    %272 = arith.addf %271, %268 : vector<34x64xf32>
    %273 = arith.mulf %270, %272 : vector<34x64xf32>
    %274 = arith.truncf %273 : vector<34x64xf32> to vector<34x64xbf16>
    %c192 = arith.constant 192 : index
    %c0_89 = arith.constant 0 : index
    %275 = vector.load %arg2[%c192, %c0_89] : memref<416x128xbf16, #tpu.memory_space<vmem>>, vector<64x32xbf16>
    %cst_90 = arith.constant dense<0.000000e+00> : vector<34x32xf32>
    %276 = tpu.matmul %274, %275, %cst_90 {dimension_numbers = #tpu.dot_dimension_numbers<[1], [0], [0], [1], [0, 0, 1, 1], [], []>} : vector<34x64xbf16>, vector<64x32xbf16>, vector<34x32xf32> -> vector<34x32xf32>
    %c47 = arith.constant 47 : index
    %c0_91 = arith.constant 0 : index
    %277 = vector.load %arg3[%c47, %c0_91] : memref<64x128xf32, #tpu.memory_space<vmem>>, vector<1x32xf32>
    %278 = vector.broadcast %277 : vector<1x32xf32> to vector<34x32xf32>
    %279 = arith.addf %276, %278 : vector<34x32xf32>
    %280 = arith.addf %202, %279 : vector<34x32xf32>
    %c48 = arith.constant 48 : index
    %c0_92 = arith.constant 0 : index
    %281 = vector.load %arg3[%c48, %c0_92] : memref<64x128xf32, #tpu.memory_space<vmem>>, vector<1x32xf32>
    %c49 = arith.constant 49 : index
    %c0_93 = arith.constant 0 : index
    %282 = vector.load %arg3[%c49, %c0_93] : memref<64x128xf32, #tpu.memory_space<vmem>>, vector<1x32xf32>
    %cst_94 = arith.constant dense<0.000000e+00> : vector<34xf32>
    %283 = vector.multi_reduction <add>, %280, %cst_94 [1] : vector<34x32xf32> to vector<34xf32>
    %284 = vector.shape_cast %283 : vector<34xf32> to vector<34x1xf32>
    %cst_95 = arith.constant 3.200000e+01 : f32
    %285 = vector.broadcast %cst_95 : f32 to vector<34x1xf32>
    %286 = arith.divf %284, %285 : vector<34x1xf32>
    %287 = vector.broadcast %286 : vector<34x1xf32> to vector<34x32xf32>
    %288 = arith.subf %280, %287 : vector<34x32xf32>
    %289 = arith.mulf %288, %288 : vector<34x32xf32>
    %cst_96 = arith.constant dense<0.000000e+00> : vector<34xf32>
    %290 = vector.multi_reduction <add>, %289, %cst_96 [1] : vector<34x32xf32> to vector<34xf32>
    %291 = vector.shape_cast %290 : vector<34xf32> to vector<34x1xf32>
    %cst_97 = arith.constant 3.200000e+01 : f32
    %292 = vector.broadcast %cst_97 : f32 to vector<34x1xf32>
    %293 = arith.divf %291, %292 : vector<34x1xf32>
    %294 = vector.broadcast %286 : vector<34x1xf32> to vector<34x32xf32>
    %295 = arith.subf %280, %294 : vector<34x32xf32>
    %cst_98 = arith.constant 9.99999974E-6 : f32
    %296 = vector.broadcast %cst_98 : f32 to vector<34x1xf32>
    %297 = arith.addf %293, %296 : vector<34x1xf32>
    %298 = math.rsqrt %297 : vector<34x1xf32>
    %299 = vector.broadcast %298 : vector<34x1xf32> to vector<34x32xf32>
    %300 = arith.mulf %295, %299 : vector<34x32xf32>
    %301 = vector.broadcast %281 : vector<1x32xf32> to vector<34x32xf32>
    %302 = arith.mulf %300, %301 : vector<34x32xf32>
    %303 = vector.broadcast %282 : vector<1x32xf32> to vector<34x32xf32>
    %304 = arith.addf %302, %303 : vector<34x32xf32>
    %305 = arith.truncf %304 : vector<34x32xf32> to vector<34x32xbf16>
    %c256 = arith.constant 256 : index
    %c0_99 = arith.constant 0 : index
    %306 = vector.load %arg2[%c256, %c0_99] : memref<416x128xbf16, #tpu.memory_space<vmem>>, vector<32x96xbf16>
    %cst_100 = arith.constant dense<0.000000e+00> : vector<34x96xf32>
    %307 = tpu.matmul %305, %306, %cst_100 {dimension_numbers = #tpu.dot_dimension_numbers<[1], [0], [0], [1], [0, 0, 1, 1], [], []>} : vector<34x32xbf16>, vector<32x96xbf16>, vector<34x96xf32> -> vector<34x96xf32>
    %c50 = arith.constant 50 : index
    %c0_101 = arith.constant 0 : index
    %308 = vector.load %arg3[%c50, %c0_101] : memref<64x128xf32, #tpu.memory_space<vmem>>, vector<1x96xf32>
    %309 = vector.broadcast %308 : vector<1x96xf32> to vector<34x96xf32>
    %310 = arith.addf %307, %309 : vector<34x96xf32>
    %311 = vector.extract_strided_slice %310 {offsets = [0, 0], sizes = [34, 32], strides = [1, 1]} : vector<34x96xf32> to vector<34x32xf32>
    %312 = arith.truncf %311 : vector<34x32xf32> to vector<34x32xbf16>
    %313 = vector.extract_strided_slice %310 {offsets = [0, 32], sizes = [34, 32], strides = [1, 1]} : vector<34x96xf32> to vector<34x32xf32>
    %314 = arith.truncf %313 : vector<34x32xf32> to vector<34x32xbf16>
    %315 = vector.extract_strided_slice %310 {offsets = [0, 64], sizes = [34, 32], strides = [1, 1]} : vector<34x96xf32> to vector<34x32xf32>
    %316 = arith.truncf %315 : vector<34x32xf32> to vector<34x32xbf16>
    %cst_102 = arith.constant 0.000000e+00 : f32
    %317 = vector.broadcast %cst_102 : f32 to vector<34x32xf32>
    %318 = vector.broadcast %15 : vector<1x32xbf16> to vector<34x32xbf16>
    %319 = arith.mulf %312, %318 : vector<34x32xbf16>
    %cst_103 = arith.constant dense<0.000000e+00> : vector<34x34xf32>
    %320 = tpu.matmul %319, %314, %cst_103 {dimension_numbers = #tpu.dot_dimension_numbers<[1], [1], [0], [0], [0, 0, 1, 0], [], []>} : vector<34x32xbf16>, vector<34x32xbf16>, vector<34x34xf32> -> vector<34x34xf32>
    %cst_104 = arith.constant 0.353553385 : f32
    %321 = vector.broadcast %cst_104 : f32 to vector<34x34xf32>
    %322 = arith.mulf %320, %321 : vector<34x34xf32>
    %323 = arith.addf %322, %70 : vector<34x34xf32>
    %cst_105 = arith.constant dense<0xFF800000> : vector<34xf32>
    %324 = vector.multi_reduction <maximumf>, %323, %cst_105 [1] : vector<34x34xf32> to vector<34xf32>
    %cst_106 = arith.constant 0xFF800000 : f32
    %325 = vector.broadcast %cst_106 : f32 to vector<34xf32>
    %326 = arith.maximumf %325, %324 : vector<34xf32>
    %327 = vector.shape_cast %326 : vector<34xf32> to vector<34x1xf32>
    %328 = vector.broadcast %327 : vector<34x1xf32> to vector<34x34xf32>
    %329 = arith.subf %323, %328 : vector<34x34xf32>
    %330 = math.exp %329 : vector<34x34xf32>
    %cst_107 = arith.constant dense<0.000000e+00> : vector<34xf32>
    %331 = vector.multi_reduction <add>, %330, %cst_107 [1] : vector<34x34xf32> to vector<34xf32>
    %332 = vector.shape_cast %331 : vector<34xf32> to vector<34x1xf32>
    %333 = vector.broadcast %332 : vector<34x1xf32> to vector<34x34xf32>
    %334 = arith.divf %330, %333 : vector<34x34xf32>
    %335 = arith.truncf %334 : vector<34x34xf32> to vector<34x34xbf16>
    %336 = vector.broadcast %15 : vector<1x32xbf16> to vector<34x32xbf16>
    %337 = arith.mulf %316, %336 : vector<34x32xbf16>
    %cst_108 = arith.constant dense<0.000000e+00> : vector<34x32xf32>
    %338 = tpu.matmul %335, %337, %cst_108 {dimension_numbers = #tpu.dot_dimension_numbers<[1], [0], [0], [1], [0, 0, 1, 1], [], []>} : vector<34x34xbf16>, vector<34x32xbf16>, vector<34x32xf32> -> vector<34x32xf32>
    %339 = arith.addf %317, %338 : vector<34x32xf32>
    %340 = vector.broadcast %24 : vector<1x32xbf16> to vector<34x32xbf16>
    %341 = arith.mulf %312, %340 : vector<34x32xbf16>
    %cst_109 = arith.constant dense<0.000000e+00> : vector<34x34xf32>
    %342 = tpu.matmul %341, %314, %cst_109 {dimension_numbers = #tpu.dot_dimension_numbers<[1], [1], [0], [0], [0, 0, 1, 0], [], []>} : vector<34x32xbf16>, vector<34x32xbf16>, vector<34x34xf32> -> vector<34x34xf32>
    %cst_110 = arith.constant 0.353553385 : f32
    %343 = vector.broadcast %cst_110 : f32 to vector<34x34xf32>
    %344 = arith.mulf %342, %343 : vector<34x34xf32>
    %345 = arith.addf %344, %70 : vector<34x34xf32>
    %cst_111 = arith.constant dense<0xFF800000> : vector<34xf32>
    %346 = vector.multi_reduction <maximumf>, %345, %cst_111 [1] : vector<34x34xf32> to vector<34xf32>
    %cst_112 = arith.constant 0xFF800000 : f32
    %347 = vector.broadcast %cst_112 : f32 to vector<34xf32>
    %348 = arith.maximumf %347, %346 : vector<34xf32>
    %349 = vector.shape_cast %348 : vector<34xf32> to vector<34x1xf32>
    %350 = vector.broadcast %349 : vector<34x1xf32> to vector<34x34xf32>
    %351 = arith.subf %345, %350 : vector<34x34xf32>
    %352 = math.exp %351 : vector<34x34xf32>
    %cst_113 = arith.constant dense<0.000000e+00> : vector<34xf32>
    %353 = vector.multi_reduction <add>, %352, %cst_113 [1] : vector<34x34xf32> to vector<34xf32>
    %354 = vector.shape_cast %353 : vector<34xf32> to vector<34x1xf32>
    %355 = vector.broadcast %354 : vector<34x1xf32> to vector<34x34xf32>
    %356 = arith.divf %352, %355 : vector<34x34xf32>
    %357 = arith.truncf %356 : vector<34x34xf32> to vector<34x34xbf16>
    %358 = vector.broadcast %24 : vector<1x32xbf16> to vector<34x32xbf16>
    %359 = arith.mulf %316, %358 : vector<34x32xbf16>
    %cst_114 = arith.constant dense<0.000000e+00> : vector<34x32xf32>
    %360 = tpu.matmul %357, %359, %cst_114 {dimension_numbers = #tpu.dot_dimension_numbers<[1], [0], [0], [1], [0, 0, 1, 1], [], []>} : vector<34x34xbf16>, vector<34x32xbf16>, vector<34x32xf32> -> vector<34x32xf32>
    %361 = arith.addf %339, %360 : vector<34x32xf32>
    %362 = vector.broadcast %33 : vector<1x32xbf16> to vector<34x32xbf16>
    %363 = arith.mulf %312, %362 : vector<34x32xbf16>
    %cst_115 = arith.constant dense<0.000000e+00> : vector<34x34xf32>
    %364 = tpu.matmul %363, %314, %cst_115 {dimension_numbers = #tpu.dot_dimension_numbers<[1], [1], [0], [0], [0, 0, 1, 0], [], []>} : vector<34x32xbf16>, vector<34x32xbf16>, vector<34x34xf32> -> vector<34x34xf32>
    %cst_116 = arith.constant 0.353553385 : f32
    %365 = vector.broadcast %cst_116 : f32 to vector<34x34xf32>
    %366 = arith.mulf %364, %365 : vector<34x34xf32>
    %367 = arith.addf %366, %70 : vector<34x34xf32>
    %cst_117 = arith.constant dense<0xFF800000> : vector<34xf32>
    %368 = vector.multi_reduction <maximumf>, %367, %cst_117 [1] : vector<34x34xf32> to vector<34xf32>
    %cst_118 = arith.constant 0xFF800000 : f32
    %369 = vector.broadcast %cst_118 : f32 to vector<34xf32>
    %370 = arith.maximumf %369, %368 : vector<34xf32>
    %371 = vector.shape_cast %370 : vector<34xf32> to vector<34x1xf32>
    %372 = vector.broadcast %371 : vector<34x1xf32> to vector<34x34xf32>
    %373 = arith.subf %367, %372 : vector<34x34xf32>
    %374 = math.exp %373 : vector<34x34xf32>
    %cst_119 = arith.constant dense<0.000000e+00> : vector<34xf32>
    %375 = vector.multi_reduction <add>, %374, %cst_119 [1] : vector<34x34xf32> to vector<34xf32>
    %376 = vector.shape_cast %375 : vector<34xf32> to vector<34x1xf32>
    %377 = vector.broadcast %376 : vector<34x1xf32> to vector<34x34xf32>
    %378 = arith.divf %374, %377 : vector<34x34xf32>
    %379 = arith.truncf %378 : vector<34x34xf32> to vector<34x34xbf16>
    %380 = vector.broadcast %33 : vector<1x32xbf16> to vector<34x32xbf16>
    %381 = arith.mulf %316, %380 : vector<34x32xbf16>
    %cst_120 = arith.constant dense<0.000000e+00> : vector<34x32xf32>
    %382 = tpu.matmul %379, %381, %cst_120 {dimension_numbers = #tpu.dot_dimension_numbers<[1], [0], [0], [1], [0, 0, 1, 1], [], []>} : vector<34x34xbf16>, vector<34x32xbf16>, vector<34x32xf32> -> vector<34x32xf32>
    %383 = arith.addf %361, %382 : vector<34x32xf32>
    %384 = vector.broadcast %42 : vector<1x32xbf16> to vector<34x32xbf16>
    %385 = arith.mulf %312, %384 : vector<34x32xbf16>
    %cst_121 = arith.constant dense<0.000000e+00> : vector<34x34xf32>
    %386 = tpu.matmul %385, %314, %cst_121 {dimension_numbers = #tpu.dot_dimension_numbers<[1], [1], [0], [0], [0, 0, 1, 0], [], []>} : vector<34x32xbf16>, vector<34x32xbf16>, vector<34x34xf32> -> vector<34x34xf32>
    %cst_122 = arith.constant 0.353553385 : f32
    %387 = vector.broadcast %cst_122 : f32 to vector<34x34xf32>
    %388 = arith.mulf %386, %387 : vector<34x34xf32>
    %389 = arith.addf %388, %70 : vector<34x34xf32>
    %cst_123 = arith.constant dense<0xFF800000> : vector<34xf32>
    %390 = vector.multi_reduction <maximumf>, %389, %cst_123 [1] : vector<34x34xf32> to vector<34xf32>
    %cst_124 = arith.constant 0xFF800000 : f32
    %391 = vector.broadcast %cst_124 : f32 to vector<34xf32>
    %392 = arith.maximumf %391, %390 : vector<34xf32>
    %393 = vector.shape_cast %392 : vector<34xf32> to vector<34x1xf32>
    %394 = vector.broadcast %393 : vector<34x1xf32> to vector<34x34xf32>
    %395 = arith.subf %389, %394 : vector<34x34xf32>
    %396 = math.exp %395 : vector<34x34xf32>
    %cst_125 = arith.constant dense<0.000000e+00> : vector<34xf32>
    %397 = vector.multi_reduction <add>, %396, %cst_125 [1] : vector<34x34xf32> to vector<34xf32>
    %398 = vector.shape_cast %397 : vector<34xf32> to vector<34x1xf32>
    %399 = vector.broadcast %398 : vector<34x1xf32> to vector<34x34xf32>
    %400 = arith.divf %396, %399 : vector<34x34xf32>
    %401 = arith.truncf %400 : vector<34x34xf32> to vector<34x34xbf16>
    %402 = vector.broadcast %42 : vector<1x32xbf16> to vector<34x32xbf16>
    %403 = arith.mulf %316, %402 : vector<34x32xbf16>
    %cst_126 = arith.constant dense<0.000000e+00> : vector<34x32xf32>
    %404 = tpu.matmul %401, %403, %cst_126 {dimension_numbers = #tpu.dot_dimension_numbers<[1], [0], [0], [1], [0, 0, 1, 1], [], []>} : vector<34x34xbf16>, vector<34x32xbf16>, vector<34x32xf32> -> vector<34x32xf32>
    %405 = arith.addf %383, %404 : vector<34x32xf32>
    %406 = arith.truncf %405 : vector<34x32xf32> to vector<34x32xbf16>
    %c288 = arith.constant 288 : index
    %c0_127 = arith.constant 0 : index
    %407 = vector.load %arg2[%c288, %c0_127] : memref<416x128xbf16, #tpu.memory_space<vmem>>, vector<32x32xbf16>
    %cst_128 = arith.constant dense<0.000000e+00> : vector<34x32xf32>
    %408 = tpu.matmul %406, %407, %cst_128 {dimension_numbers = #tpu.dot_dimension_numbers<[1], [0], [0], [1], [0, 0, 1, 1], [], []>} : vector<34x32xbf16>, vector<32x32xbf16>, vector<34x32xf32> -> vector<34x32xf32>
    %409 = arith.addf %280, %408 : vector<34x32xf32>
    %c51 = arith.constant 51 : index
    %c0_129 = arith.constant 0 : index
    %410 = vector.load %arg3[%c51, %c0_129] : memref<64x128xf32, #tpu.memory_space<vmem>>, vector<1x32xf32>
    %411 = vector.broadcast %410 : vector<1x32xf32> to vector<34x32xf32>
    %412 = arith.addf %409, %411 : vector<34x32xf32>
    %c52 = arith.constant 52 : index
    %c0_130 = arith.constant 0 : index
    %413 = vector.load %arg3[%c52, %c0_130] : memref<64x128xf32, #tpu.memory_space<vmem>>, vector<1x32xf32>
    %c53 = arith.constant 53 : index
    %c0_131 = arith.constant 0 : index
    %414 = vector.load %arg3[%c53, %c0_131] : memref<64x128xf32, #tpu.memory_space<vmem>>, vector<1x32xf32>
    %cst_132 = arith.constant dense<0.000000e+00> : vector<34xf32>
    %415 = vector.multi_reduction <add>, %412, %cst_132 [1] : vector<34x32xf32> to vector<34xf32>
    %416 = vector.shape_cast %415 : vector<34xf32> to vector<34x1xf32>
    %cst_133 = arith.constant 3.200000e+01 : f32
    %417 = vector.broadcast %cst_133 : f32 to vector<34x1xf32>
    %418 = arith.divf %416, %417 : vector<34x1xf32>
    %419 = vector.broadcast %418 : vector<34x1xf32> to vector<34x32xf32>
    %420 = arith.subf %412, %419 : vector<34x32xf32>
    %421 = arith.mulf %420, %420 : vector<34x32xf32>
    %cst_134 = arith.constant dense<0.000000e+00> : vector<34xf32>
    %422 = vector.multi_reduction <add>, %421, %cst_134 [1] : vector<34x32xf32> to vector<34xf32>
    %423 = vector.shape_cast %422 : vector<34xf32> to vector<34x1xf32>
    %cst_135 = arith.constant 3.200000e+01 : f32
    %424 = vector.broadcast %cst_135 : f32 to vector<34x1xf32>
    %425 = arith.divf %423, %424 : vector<34x1xf32>
    %426 = vector.broadcast %418 : vector<34x1xf32> to vector<34x32xf32>
    %427 = arith.subf %412, %426 : vector<34x32xf32>
    %cst_136 = arith.constant 9.99999974E-6 : f32
    %428 = vector.broadcast %cst_136 : f32 to vector<34x1xf32>
    %429 = arith.addf %425, %428 : vector<34x1xf32>
    %430 = math.rsqrt %429 : vector<34x1xf32>
    %431 = vector.broadcast %430 : vector<34x1xf32> to vector<34x32xf32>
    %432 = arith.mulf %427, %431 : vector<34x32xf32>
    %433 = vector.broadcast %413 : vector<1x32xf32> to vector<34x32xf32>
    %434 = arith.mulf %432, %433 : vector<34x32xf32>
    %435 = vector.broadcast %414 : vector<1x32xf32> to vector<34x32xf32>
    %436 = arith.addf %434, %435 : vector<34x32xf32>
    %437 = arith.truncf %436 : vector<34x32xf32> to vector<34x32xbf16>
    %c320 = arith.constant 320 : index
    %c0_137 = arith.constant 0 : index
    %438 = vector.load %arg2[%c320, %c0_137] : memref<416x128xbf16, #tpu.memory_space<vmem>>, vector<32x64xbf16>
    %cst_138 = arith.constant dense<0.000000e+00> : vector<34x64xf32>
    %439 = tpu.matmul %437, %438, %cst_138 {dimension_numbers = #tpu.dot_dimension_numbers<[1], [0], [0], [1], [0, 0, 1, 1], [], []>} : vector<34x32xbf16>, vector<32x64xbf16>, vector<34x64xf32> -> vector<34x64xf32>
    %c54 = arith.constant 54 : index
    %c0_139 = arith.constant 0 : index
    %440 = vector.load %arg3[%c54, %c0_139] : memref<64x128xf32, #tpu.memory_space<vmem>>, vector<1x64xf32>
    %441 = vector.broadcast %440 : vector<1x64xf32> to vector<34x64xf32>
    %442 = arith.addf %439, %441 : vector<34x64xf32>
    %cst_140 = arith.constant 0.707106769 : f32
    %443 = vector.broadcast %cst_140 : f32 to vector<34x64xf32>
    %444 = arith.mulf %442, %443 : vector<34x64xf32>
    %cst_141 = arith.constant 0.000000e+00 : f32
    %445 = vector.broadcast %cst_141 : f32 to vector<34x64xf32>
    %446 = arith.cmpf oge, %444, %445 : vector<34x64xf32>
    %cst_142 = arith.constant 1.000000e+00 : f32
    %cst_143 = arith.constant -1.000000e+00 : f32
    %447 = vector.broadcast %cst_142 : f32 to vector<34x64xf32>
    %448 = vector.broadcast %cst_143 : f32 to vector<34x64xf32>
    %449 = arith.select %446, %447, %448 : vector<34x64xi1>, vector<34x64xf32>
    %450 = math.absf %444 : vector<34x64xf32>
    %cst_144 = arith.constant 0.327591091 : f32
    %451 = vector.broadcast %cst_144 : f32 to vector<34x64xf32>
    %452 = arith.mulf %451, %450 : vector<34x64xf32>
    %cst_145 = arith.constant 1.000000e+00 : f32
    %453 = vector.broadcast %cst_145 : f32 to vector<34x64xf32>
    %454 = arith.addf %453, %452 : vector<34x64xf32>
    %cst_146 = arith.constant 1.000000e+00 : f32
    %455 = vector.broadcast %cst_146 : f32 to vector<34x64xf32>
    %456 = arith.divf %455, %454 : vector<34x64xf32>
    %cst_147 = arith.constant 1.06140542 : f32
    %457 = vector.broadcast %cst_147 : f32 to vector<34x64xf32>
    %458 = arith.mulf %457, %456 : vector<34x64xf32>
    %cst_148 = arith.constant -1.45315206 : f32
    %459 = vector.broadcast %cst_148 : f32 to vector<34x64xf32>
    %460 = arith.addf %458, %459 : vector<34x64xf32>
    %461 = arith.mulf %460, %456 : vector<34x64xf32>
    %cst_149 = arith.constant 1.42141378 : f32
    %462 = vector.broadcast %cst_149 : f32 to vector<34x64xf32>
    %463 = arith.addf %461, %462 : vector<34x64xf32>
    %464 = arith.mulf %463, %456 : vector<34x64xf32>
    %cst_150 = arith.constant -0.284496725 : f32
    %465 = vector.broadcast %cst_150 : f32 to vector<34x64xf32>
    %466 = arith.addf %464, %465 : vector<34x64xf32>
    %467 = arith.mulf %466, %456 : vector<34x64xf32>
    %cst_151 = arith.constant 0.254829586 : f32
    %468 = vector.broadcast %cst_151 : f32 to vector<34x64xf32>
    %469 = arith.addf %467, %468 : vector<34x64xf32>
    %470 = arith.mulf %469, %456 : vector<34x64xf32>
    %cst_152 = arith.constant 0.000000e+00 : f32
    %471 = vector.broadcast %cst_152 : f32 to vector<34x64xf32>
    %472 = arith.subf %471, %450 : vector<34x64xf32>
    %473 = arith.mulf %472, %450 : vector<34x64xf32>
    %474 = math.exp %473 : vector<34x64xf32>
    %475 = arith.mulf %470, %474 : vector<34x64xf32>
    %cst_153 = arith.constant 1.000000e+00 : f32
    %476 = vector.broadcast %cst_153 : f32 to vector<34x64xf32>
    %477 = arith.subf %476, %475 : vector<34x64xf32>
    %478 = arith.mulf %449, %477 : vector<34x64xf32>
    %cst_154 = arith.constant 5.000000e-01 : f32
    %479 = vector.broadcast %cst_154 : f32 to vector<34x64xf32>
    %480 = arith.mulf %479, %442 : vector<34x64xf32>
    %cst_155 = arith.constant 1.000000e+00 : f32
    %481 = vector.broadcast %cst_155 : f32 to vector<34x64xf32>
    %482 = arith.addf %481, %478 : vector<34x64xf32>
    %483 = arith.mulf %480, %482 : vector<34x64xf32>
    %484 = arith.truncf %483 : vector<34x64xf32> to vector<34x64xbf16>
    %c352 = arith.constant 352 : index
    %c0_156 = arith.constant 0 : index
    %485 = vector.load %arg2[%c352, %c0_156] : memref<416x128xbf16, #tpu.memory_space<vmem>>, vector<64x32xbf16>
    %cst_157 = arith.constant dense<0.000000e+00> : vector<34x32xf32>
    %486 = tpu.matmul %484, %485, %cst_157 {dimension_numbers = #tpu.dot_dimension_numbers<[1], [0], [0], [1], [0, 0, 1, 1], [], []>} : vector<34x64xbf16>, vector<64x32xbf16>, vector<34x32xf32> -> vector<34x32xf32>
    %c55 = arith.constant 55 : index
    %c0_158 = arith.constant 0 : index
    %487 = vector.load %arg3[%c55, %c0_158] : memref<64x128xf32, #tpu.memory_space<vmem>>, vector<1x32xf32>
    %488 = vector.broadcast %487 : vector<1x32xf32> to vector<34x32xf32>
    %489 = arith.addf %486, %488 : vector<34x32xf32>
    %490 = arith.addf %412, %489 : vector<34x32xf32>
    %491 = vector.extract_strided_slice %490 {offsets = [0, 0], sizes = [1, 32], strides = [1, 1]} : vector<34x32xf32> to vector<1x32xf32>
    %492 = vector.extract_strided_slice %490 {offsets = [17, 0], sizes = [1, 32], strides = [1, 1]} : vector<34x32xf32> to vector<1x32xf32>
    %493 = tpu.concatenate %491, %492 in 0 : vector<1x32xf32>, vector<1x32xf32> -> vector<2x32xf32>
    %494 = arith.truncf %493 : vector<2x32xf32> to vector<2x32xbf16>
    %c64 = arith.constant 64 : index
    %c0_159 = arith.constant 0 : index
    %495 = vector.load %arg2[%c64, %c0_159] : memref<416x128xbf16, #tpu.memory_space<vmem>>, vector<32x128xbf16>
    %cst_160 = arith.constant dense<0.000000e+00> : vector<2x128xf32>
    %496 = tpu.matmul %494, %495, %cst_160 {dimension_numbers = #tpu.dot_dimension_numbers<[1], [0], [0], [1], [0, 0, 1, 1], [], []>} : vector<2x32xbf16>, vector<32x128xbf16>, vector<2x128xf32> -> vector<2x128xf32>
    %c56 = arith.constant 56 : index
    %c0_161 = arith.constant 0 : index
    %497 = vector.load %arg3[%c56, %c0_161] : memref<64x128xf32, #tpu.memory_space<vmem>>, vector<1x128xf32>
    %498 = vector.broadcast %497 : vector<1x128xf32> to vector<2x128xf32>
    %499 = arith.addf %496, %498 : vector<2x128xf32>
    %c0_162 = arith.constant 0 : index
    %c0_163 = arith.constant 0 : index
    %c0_164 = arith.constant 0 : index
    %500 = vector.load %arg4[%c0_162, %c0_163, %c0_164] : memref<1x2x128xf32, #tpu.memory_space<vmem>>, vector<1x2x128xf32>
    %501 = vector.shape_cast %500 : vector<1x2x128xf32> to vector<2x128xf32>
    %502 = vector.shape_cast %499 : vector<2x128xf32> to vector<1x2x128xf32>
    tpu.vector_store %arg4[%c0_162, %c0_163, %c0_164], %502 {strides = array<i32>} : memref<1x2x128xf32, #tpu.memory_space<vmem>>, vector<1x2x128xf32>,
    return
  }
  func.func @transform_0(%arg0: i32) -> (i32, i32, i32) {
    %c0_i32 = arith.constant 0 : i32
    %c0_i32_0 = arith.constant 0 : i32
    %c0_i32_1 = arith.constant 0 : i32
    return %arg0, %c0_i32, %c0_i32_0 : i32, i32, i32
  }
  func.func @transform_1(%arg0: i32) -> (i32, i32) {
    %c0_i32 = arith.constant 0 : i32
    %c0_i32_0 = arith.constant 0 : i32
    %c0_i32_1 = arith.constant 0 : i32
    return %c0_i32, %c0_i32_0 : i32, i32
  }
  func.func @transform_2(%arg0: i32) -> (i32, i32) {
    %c0_i32 = arith.constant 0 : i32
    %c0_i32_0 = arith.constant 0 : i32
    %c0_i32_1 = arith.constant 0 : i32
    return %c0_i32, %c0_i32_0 : i32, i32
  }
  func.func @transform_3(%arg0: i32) -> (i32, i32, i32) {
    %c0_i32 = arith.constant 0 : i32
    %c0_i32_0 = arith.constant 0 : i32
    %c0_i32_1 = arith.constant 0 : i32
    return %arg0, %c0_i32, %c0_i32_0 : i32, i32, i32
  }
}

</mosaic_0001>

<bundles_post_ra>
// kernel: vit_forward.1
= control target key start
LH: loop header
LB: loop body
LE: loop exit
PB: predicated region body
PF: predicated region fallthrough
CT: control target
= control target key end

     0   :  { %v4611_v1 = vmov 0.0   ;;  %vm4612_vm0 = vmmov 0   ;;  %vm71_vm1 = vcmask 523264   ;;  %s6017_s0 = inlined_call_operand.vmem [shape: bf16[1,34,64], index: 0, kind: input, shape index: {}]   ;;  %s6018_s1 = inlined_call_operand.vmem [shape: bf16[416,128], index: 1, kind: input, shape index: {}]   ;;  %s6019_s2 = inlined_call_operand.vmem [shape: f32[64,128], index: 2, kind: input, shape index: {}]   ;;  %s6020_s3 = inlined_call_operand.hbm [shape: f32[1,2,128], index: 3, kind: output, shape index: {}]  }
   0x1   :  { %v4318_v0 = vld [vmem:[%s6018_s1] sm:$0xff]   ;;  %3787 = vmatprep.subr.bf16.mxu0 %v4611_v1  ;;  %3807 = vmatprep.subr.bf16.mxu1 %v4611_v1  ;;  %v4319_v2 = vld [vmem:[%s6018_s1 + $0x8] sm:$0xff]   ;;  %v4320_v3 = vld [vmem:[%s6018_s1 + $0x10] sm:$0xff]  }
   0x2   :  { %3788 = vmatpush3.bf16.msra.mxu0 %v4318_v0  ;;  %3795 = vmatprep.mubr.msk.bf16.mxu0 %vm4612_vm0, %v4611_v1  ;;  %v4321_v4 = vld [vmem:[%s6018_s1 + $0x18] sm:$0xff]   ;;  %v4322_v5 = vld [vmem:[%s6017_s0] sm:$0xff]   ;;  %v4323_v6 = vld [vmem:[%s6017_s0 + $0x8] sm:$0xff]  }
   0x3   :  { %3789 = vmatprep.subr.bf16.mxu0 %v4611_v1  ;;  %3811 = vmatprep.mubr.msk.bf16.mxu1 %vm4612_vm0, %v4611_v1 }
   0x6   :  { %3790 = vmatpush3.bf16.msra.mxu0 %v4319_v2 }
   0x7   :  { %3791 = vmatprep.subr.bf16.mxu0 %v4611_v1 }
   0xa   :  { %3792 = vmatpush3.bf16.msra.mxu0 %v4320_v3 }
   0xb   :  { %3793 = vmatprep.subr.bf16.mxu0 %v4611_v1 }
   0xe   :  { %3794 = vmatpush3.bf16.msra.mxu0 %v4321_v4 }
   0xf   :  { %3841 = vmatprep.subr.bf16.mxu0 %v4611_v1 }
  0x11   :  { %3796 = vmatmul.mubr.msk.bf16.vlgmr.msra.gmra.mrb[0].mxu0 %vm71_vm1, %v4322_v5 }
  0x12   :  { %3799 = vmatprep.mubr.msk.bf16.mxu0 %vm4612_vm0, %v4611_v1 }
  0x13   :  { %8 = vsyncpa [#allocation3], 0  ;;  %v4324_v7 = vld [vmem:[%s6017_s0 + $0x10] ss:$0 sps:$4 sm:$0x11]   ;;  %v29_v8 = vld [vmem:[%s6019_s2] sm:$0xff] }
  0x14   :  { %v30_v10 = vld [vmem:[%s6019_s2 + $0x8] sm:$0xff]  ;;  %vm230_vm2 = vcmask 261120   ;;  %v31_v17 = vld [vmem:[%s6019_s2 + $0x10] sm:$0xff]  ;;  %v32_v20 = vld [vmem:[%s6019_s2 + $0x18] sm:$0xff]  ;;  %vm243_vm3 = vcmask 254976   ;;  %s4613_s18 = smov 96  }
  0x15   :  { %v33_v27 = vld [vmem:[%s6019_s2 + $0x20] sm:$0x3]  ;;  %v4325_v60 = vld [vmem:[%s6018_s1 + $0x30] sm:$0xff]   ;;  %v4326_v61 = vld [vmem:[%s6018_s1 + $0x38] sm:$0xff]   ;;  %s4614_s19 = smov 64   ;;  %vm734_vm14 = vcmask 1040384  }
  0x16   :  { %3808 = vmatpush3.bf16.msra.mxu1 %v4325_v60  ;;  %s4617_s30 = smov [#allocation2]  }
  0x17   :  { %3809 = vmatprep.subr.bf16.mxu1 %v4611_v1  ;;  %s3507_s4 = sshll.u32 %s4617_s30, 4  ;;  %s3508_s4 = int_to_ptr.vmem [resolvable:$true] %s3507_s4 }
  0x18   :  { %s4587_s5 = scalar_lea.vmem %s3508_s4, 32  ;;  %p4592_p1 = scmp.lt.s32.totalorder %s3508_s4, %s3508_s4 }
  0x19   :  { %3800 = vmatmul.mubr.msk.bf16.gmra.mrb[4].mxu0 %vm71_vm1, %v4323_v6  ;;  %p4588_p0 = scmp.ne.s32.totalorder %s3508_s4, %s4587_s5  ;;  %p4593_p2 = scmp.lt.s32.totalorder %s4587_s5, %s4587_s5 }
  0x1a   :  { %3803 = vmatprep.mubr.msk.bf16.mxu0 %vm4612_vm0, %v4611_v1  ;;  %3810 = vmatpush3.bf16.msra.mxu1 %v4326_v61 }
  0x1b   :  { %3823 = vmatprep.subr.bf16.mxu1 %v4611_v1  ;;  %p4594_p3 = por %p4593_p2, %p4592_p1 }
  0x1d   :  { %p4595_p4 = pnand %p4594_p3, %p4588_p0 }
  0x21   :  { %3804 = vmatmul.mubr.msk.bf16.gmra.mrb[8].mxu0 %vm71_vm1, %v4324_v7 }
  0x22   :  { %3847 = vmatprep.mubr.msk.bf16.mxu0 %vm4612_vm0, %v4611_v1 }
  0xe4   :  { %v115_v9 = vpop.f32.mrb[0].mxu0 }
  0xe5   :  { %v4684_v11 = vadd.f32 %v115_v9, %v29_v8  ;;  %v3797_v12 = vpop.f32.mrb[1].mxu0 }
  0xe6   :  { %v118_v13 = vpop.f32.mrb[2].mxu0 }
  0xe7   :  { %v4686_v14 = vadd.f32 %v118_v13, %v30_v10  ;;  %v3798_v15 = vpop.f32.mrb[3].mxu0  ;;  %v231_v16 = vsel %vm230_vm2, %v4684_v11, 0.0 }
  0xe8   :  { %232 = vadd.xlane.f32.xlu0 %v231_v16 }
  0xe9   :  { %v234_v18 = vsel %vm230_vm2, %v4686_v14, 0.0 }
  0xec   :  { %235 = vadd.xlane.f32.xlu0 %v234_v18  ;;  %v123_v19 = vpop.f32.mrb[4].mxu0 }
  0xed   :  { %v4698_v21 = vadd.f32 %v123_v19, %v31_v17  ;;  %v3801_v22 = vpop.f32.mrb[5].mxu0  ;;  %v3525_v17 = vld [vmem:[%s6019_s2 + $0x28] ss:$0 sm:$0xff] }
  0xee   :  { %v126_v23 = vpop.f32.mrb[6].mxu0 }
  0xef   :  { %v4700_v24 = vadd.f32 %v126_v23, %v32_v20  ;;  %v3802_v25 = vpop.f32.mrb[7].mxu0  ;;  %v237_v26 = vsel %vm230_vm2, %v4698_v21, 0.0  ;;  %v3526_v23 = vld [vmem:[%s6019_s2 + $0x29] ss:$0 sm:$0xff] }
  0xf0   :  { %238 = vadd.xlane.f32.xlu1 %v237_v26 }
  0xf1   :  { %v240_v28 = vsel %vm230_vm2, %v4700_v24, 0.0 }
  0xf4   :  { %241 = vadd.xlane.f32.xlu1 %v240_v28  ;;  %v131_v29 = vpop.f32.mrb[8].mxu0 }
  0xf5   :  { %v4709_v30 = vadd.f32 %v131_v29, %v33_v27  ;;  %v3805_v31 = vpop.f32.mrb[9].mxu0 }
  0xf6   :  { %v134_v32 = vpop.f32.mrb[10].mxu0 }
  0xf7   :  { %v244_v33 = vsel %vm243_vm3, %v4709_v30, 0.0  ;;  %v3806_v34 = vpop.f32.mrb[11].mxu0 }
  0xf8   :  { %245 = vadd.xlane.f32.xlu0 %v244_v33 }
 0x175   :  { %v233_v35 = vpop.xlane.xlu0 %232 }
 0x176   :  { %v248_v36 = vmul.f32 0.03125, %v233_v35 }
 0x178   :  { %v253_v37 = vsub.f32 %v4684_v11, %v248_v36 }
 0x179   :  { %v236_v38 = vpop.xlane.xlu0 %235 }
 0x17a   :  { %v249_v39 = vmul.f32 0.03125, %v236_v38  ;;  %v258_v40 = vmul.f32 %v253_v37, %v253_v37 }
 0x17c   :  { %v254_v41 = vsub.f32 %v4686_v14, %v249_v39  ;;  %v263_v42 = vsel %vm230_vm2, %v258_v40, 0.0 }
 0x17d   :  { %v239_v43 = vpop.xlane.xlu1 %238  ;;  %264 = vadd.xlane.f32.xlu1 %v263_v42 }
 0x17e   :  { %v250_v44 = vmul.f32 0.03125, %v239_v43  ;;  %v259_v45 = vmul.f32 %v254_v41, %v254_v41 }
 0x180   :  { %v255_v46 = vsub.f32 %v4698_v21, %v250_v44  ;;  %v266_v47 = vsel %vm230_vm2, %v259_v45, 0.0  ;;  %v137_v44 = vlaneseq }
 0x181   :  { %v242_v48 = vpop.xlane.xlu1 %241  ;;  %267 = vadd.xlane.f32.xlu0 %v266_v47 }
 0x182   :  { %v251_v49 = vmul.f32 0.03125, %v242_v48  ;;  %v260_v50 = vmul.f32 %v255_v46, %v255_v46  ;;  %v4747_v45 = vand.u32 127, %v137_v44 }
 0x184   :  { %v256_v51 = vsub.f32 %v4700_v24, %v251_v49  ;;  %v269_v52 = vsel %vm230_vm2, %v260_v50, 0.0  ;;  %vm140_vm4 = vcmp.lt.s32.totalorder %v4747_v45, 8  ;;  %vm149_vm5 = vcmp.ge.s32.totalorder %v4747_v45, 16 }
 0x185   :  { %270 = vadd.xlane.f32.xlu1 %v269_v52  ;;  %v246_v53 = vpop.xlane.xlu0 %245  ;;  %vm150_vm6 = vcmp.lt.s32.totalorder %v4747_v45, 24  ;;  %vm144_vm8 = vcmp.ge.s32.totalorder %v4747_v45, 8  ;;  %vm145_vm9 = vcmp.lt.s32.totalorder %v4747_v45, 16  ;;  %vm154_vm11 = vcmp.ge.s32.totalorder %v4747_v45, 24 }
 0x186   :  { %v252_v54 = vmul.f32 0.03125, %v246_v53  ;;  %v261_v55 = vmul.f32 %v256_v51, %v256_v51  ;;  %vm151_vm7 = vmand %vm149_vm5, %vm150_vm6  ;;  %vm155_vm12 = vcmp.lt.s32.totalorder %v4747_v45, 32  ;;  %vm185_vm5 = vcmp.lt.s32.totalorder %v4747_v45, 17 }
 0x187   :  { %vm146_vm10 = vmand %vm144_vm8, %vm145_vm9  ;;  %vm212_vm8 = vcmp.lt.s32.totalorder %v4747_v45, 34 }
 0x188   :  { %v257_v56 = vsub.f32 %v4709_v30, %v252_v54  ;;  %v272_v57 = vsel %vm230_vm2, %v261_v55, 0.0  ;;  %v142_v54 = vsel %vm140_vm4, 1.0, %v4611_v1  ;;  %vm156_vm13 = vmand %vm154_vm11, %vm155_vm12  ;;  %vm206_vm4 = vcmp.ge.s32.totalorder %v4747_v45, 17 }
 0x189   :  { %273 = vadd.xlane.f32.xlu0 %v272_v57  ;;  %v4760_v57 = vpack.c.bf16 %v142_v54, %v142_v54 }
 0x18a   :  { %v262_v58 = vmul.f32 %v257_v56, %v257_v56 }
 0x18c   :  { %v275_v59 = vsel %vm243_vm3, %v262_v58, 0.0 }
 0x18d   :  { %276 = vadd.xlane.f32.xlu1 %v275_v59  ;;  %v152_v59 = vsel %vm151_vm7, 1.0, %v4611_v1 }
 0x20a   :  { %v265_v62 = vpop.xlane.xlu1 %264 }
 0x20b   :  { %v278_v63 = vmul.f32 0.03125, %v265_v62 }
 0x20d   :  { %v283_v0 = vadd.f32 1e-05, %v278_v63 }
 0x20e   :  { %v268_v2 = vpop.xlane.xlu0 %267 }
 0x20f   :  { %4347 = vrsqrt.f32 %v283_v0  ;;  %v279_v3 = vmul.f32 0.03125, %v268_v2  ;;  %v4767_v0 = vpack.c.bf16 %v152_v59, %v152_v59 }
 0x211   :  { %v284_v4 = vadd.f32 1e-05, %v279_v3 }
 0x212   :  { %v271_v5 = vpop.xlane.xlu1 %270 }
 0x213   :  { %4349 = vrsqrt.f32 %v284_v4  ;;  %v280_v6 = vmul.f32 0.03125, %v271_v5 }
 0x215   :  { %v285_v7 = vadd.f32 1e-05, %v280_v6 }
 0x216   :  { %v274_v8 = vpop.xlane.xlu0 %273 }
 0x217   :  { %4351 = vrsqrt.f32 %v285_v7  ;;  %v281_v9 = vmul.f32 0.03125, %v274_v8  ;;  %v147_v8 = vsel %vm146_vm10, 1.0, %v4611_v1  ;;  %vm504_vm10 = vcmask 277504  }
 0x219   :  { %v4348_v10 = vpop.eup %4347  ;;  %v286_v12 = vadd.f32 1e-05, %v281_v9  ;;  %v4780_v9 = vpack.c.bf16 %v147_v8, %v147_v8 }
 0x21a   :  { %v277_v13 = vpop.xlane.xlu1 %276  ;;  %v293_v15 = vmul.f32 %v4348_v10, %v253_v37 }
 0x21b   :  { %4353 = vrsqrt.f32 %v286_v12  ;;  %v282_v16 = vmul.f32 0.03125, %v277_v13 }
 0x21c   :  { %v302_v22 = vmul.f32 %v3525_v17, %v293_v15 }
 0x21d   :  { %v4350_v18 = vpop.eup %4349  ;;  %v287_v19 = vadd.f32 1e-05, %v282_v16 }
 0x21e   :  { %v294_v20 = vmul.f32 %v4350_v18, %v254_v41  ;;  %v311_v27 = vadd.f32 %v3526_v23, %v302_v22  ;;  %v157_v22 = vsel %vm156_vm13, 1.0, %v4611_v1  ;;  %vm216_vm13 = vmand %vm206_vm4, %vm212_vm8 }
 0x21f   :  { %4355 = vrsqrt.f32 %v287_v19 }
 0x220   :  { %v303_v25 = vmul.f32 %v3525_v17, %v294_v20 }
 0x221   :  { %v4352_v26 = vpop.eup %4351 }
 0x222   :  { %v312_v28 = vadd.f32 %v3526_v23, %v303_v25  ;;  %v295_v29 = vmul.f32 %v4352_v26, %v255_v46  ;;  %v3527_v46 = vld [vmem:[%s6019_s2 + $0x2a] ss:$0 sm:$0xff]  ;;  %v4806_v25 = vpack.c.bf16 %v157_v22, %v157_v22 }
 0x224   :  { %v316_v31 = vpack.c.bf16 %v312_v28, %v311_v27  ;;  %v304_v34 = vmul.f32 %v3525_v17, %v295_v29 }
 0x225   :  { %v4354_v32 = vpop.eup %4353 }
 0x226   :  { %3812 = vmatmul.mubr.msk.bf16.vlgmr.msra.gmra.mrb[0].mxu1 %vm230_vm2, %v316_v31  ;;  %v296_v33 = vmul.f32 %v4354_v32, %v256_v51  ;;  %v313_v37 = vadd.f32 %v3526_v23, %v304_v34 }
 0x227   :  { %3815 = vmatprep.mubr.msk.bf16.mxu1 %vm4612_vm0, %v4611_v1 }
 0x228   :  { %v305_v35 = vmul.f32 %v3525_v17, %v296_v33 }
 0x229   :  { %v4356_v36 = vpop.eup %4355 }
 0x22a   :  { %v314_v38 = vadd.f32 %v3526_v23, %v305_v35  ;;  %v297_v39 = vmul.f32 %v4356_v36, %v257_v56 }
 0x22c   :  { %v317_v40 = vpack.c.bf16 %v314_v38, %v313_v37  ;;  %v306_v41 = vmul.f32 %v3525_v17, %v297_v39 }
 0x22e   :  { %3816 = vmatmul.mubr.msk.bf16.gmra.mrb[4].mxu1 %vm230_vm2, %v317_v40  ;;  %v315_v42 = vadd.f32 %v3526_v23, %v306_v41 }
 0x22f   :  { %3819 = vmatprep.mubr.msk.bf16.mxu1 %vm4612_vm0, %v4611_v1 }
 0x230   :  { %v318_v43 = vpack.c.bf16 %v315_v42, %v315_v42 }
 0x236   :  { %3820 = vmatmul.mubr.msk.bf16.gmra.mrb[8].mxu1 %vm230_vm2, %v318_v43 }
 0x237   :  { %3829 = vmatprep.mubr.msk.bf16.mxu1 %vm4612_vm0, %v4611_v1 }
 0x2f9   :  { %v383_v47 = vpop.f32.mrb[0].mxu1 }
 0x2fa   :  { %v3813_v48 = vpop.f32.mrb[1].mxu1  ;;  %v384_v50 = vadd.f32 %v3527_v46, %v383_v47 }
 0x2fb   :  { %v386_v49 = vpop.f32.mrb[2].mxu1 }
 0x2fc   :  { %v387_v51 = vadd.f32 %v3527_v46, %v386_v49  ;;  %v3814_v52 = vpop.f32.mrb[3].mxu1  ;;  %v160_v49 = vshrl.u32 %v137_v44, 7 }
 0x2fd   :  { %v4615_v52 = vmov -1e+30  }
 0x2fe   :  { %v4755_v53 = vpack.c.bf16 %v387_v51, %v384_v50  ;;  %v162_v50 = vadd.s32 16, %v160_v49  ;;  %v4896_v54 = vsel %vm185_vm5, 0.0, %v4615_v52 }
 0x300   :  { %414 = vrot.lane.b32.xlu0 %v4755_v53, %s4613_s18  ;;  %v408_v26 = vmul.bf16 %v4755_v53, %v4760_v57  ;;  %v571_v27 = vmul.bf16 %v4755_v53, %v4780_v9  ;;  %v873_v35 = vmul.bf16 %v4755_v53, %v4767_v0  ;;  %v1100_v38 = vmul.bf16 %v4755_v53, %v4806_v25 }
 0x301   :  { %v391_v55 = vpop.f32.mrb[4].mxu1  ;;  %vm193_vm15 = vcmp.ge.s32.totalorder %v162_v50, 17  ;;  %vm172_vm6 = vcmp.lt.s32.totalorder %v162_v50, 17 }
 0x302   :  { %v3817_v56 = vpop.f32.mrb[5].mxu1  ;;  %v392_v60 = vadd.f32 %v3527_v46, %v391_v55  ;;  %vm209_vm7 = vmand %vm193_vm15, %vm206_vm4 }
 0x303   :  { %v394_v58 = vpop.f32.mrb[6].mxu1  ;;  %vm4898_vm9 = vmand %vm172_vm6, %vm185_vm5 }
 0x304   :  { %v395_v61 = vadd.f32 %v3527_v46, %v394_v58  ;;  %565 = vrot.lane.b32.xlu0 %v4760_v57, %s4614_s19  ;;  %v3818_v62 = vpop.f32.mrb[7].mxu1  ;;  %vm4904_vm11 = vmand %vm209_vm7, %vm212_vm8 }
 0x305   :  { %vm220_vm12 = vmor %vm4898_vm9, %vm4904_vm11 }
 0x306   :  { %v4765_v63 = vpack.c.bf16 %v395_v61, %v392_v60 }
 0x308   :  { %1010 = vrot.lane.b32.xlu0 %v4767_v0, %s4614_s19  ;;  %416 = vrot.lane.b32.xlu1 %v4765_v63, %s4613_s18  ;;  %v409_v31 = vmul.bf16 %v4765_v63, %v4760_v57  ;;  %v572_v32 = vmul.bf16 %v4765_v63, %v4780_v9  ;;  %v874_v36 = vmul.bf16 %v4765_v63, %v4767_v0 }
 0x309   :  { %v399_v2 = vpop.f32.mrb[8].mxu1  ;;  %v1101_v39 = vmul.bf16 %v4765_v63, %v4806_v25 }
 0x30a   :  { %v400_v3 = vadd.f32 %v3527_v46, %v399_v2  ;;  %v3821_v4 = vpop.f32.mrb[9].mxu1 }
 0x30b   :  { %v402_v5 = vpop.f32.mrb[10].mxu1 }
 0x30c   :  { %v4775_v6 = vpack.c.bf16 %v400_v3, %v400_v3  ;;  %v3822_v7 = vpop.f32.mrb[11].mxu1 }
 0x30e   :  { %418 = vrot.lane.b32.xlu1 %v4775_v6, %s4613_s18  ;;  %v410_v33 = vmul.bf16 %v4775_v6, %v4760_v57  ;;  %v573_v34 = vmul.bf16 %v4775_v6, %v4780_v9  ;;  %v875_v37 = vmul.bf16 %v4775_v6, %v4767_v0  ;;  %v1102_v40 = vmul.bf16 %v4775_v6, %v4806_v25 }
 0x312   :  { %708 = vrot.lane.b32.xlu1 %v4780_v9, %s4614_s19 }
 0x372   :  { %v415_v10 = vpop.permute.xlu0 %414 }
 0x373   :  { %v430_v12 = vsel %vm230_vm2, %v415_v10, 0 }
 0x374   :  { %3824 = vmatpush3.bf16.xpose.msra.mxu1 %v430_v12  ;;  %3842 = vmatpush3.bf16.xpose.msra.mxu0 %v430_v12 }
 0x375   :  { %3825 = vmatprep.subr.bf16.mxu1 %v4611_v1  ;;  %3843 = vmatprep.subr.bf16.mxu0 %v4611_v1 }
 0x376   :  { %v4802_v23 = vpop.permute.xlu0 %565 }
 0x377   :  { %v568_v28 = vmul.bf16 %v4802_v23, %v4755_v53 }
 0x37a   :  { %v417_v13 = vpop.permute.xlu1 %416  ;;  %v4882_v41 = vpop.permute.xlu0 %1010 }
 0x37b   :  { %v433_v15 = vsel %vm230_vm2, %v417_v13, 0 }
 0x37c   :  { %3826 = vmatpush3.bf16.xpose.msra.mxu1 %v433_v15  ;;  %3844 = vmatpush3.bf16.xpose.msra.mxu0 %v433_v15 }
 0x37d   :  { %3827 = vmatprep.subr.bf16.mxu1 %v4611_v1  ;;  %3845 = vmatprep.subr.bf16.mxu0 %v4611_v1 }
 0x380   :  { %v419_v16 = vpop.permute.xlu1 %418 }
 0x381   :  { %v436_v17 = vsel %vm230_vm2, %v419_v16, 0 }
 0x384   :  { %v4793_v18 = vpop.permute.xlu1 %708  ;;  %3828 = vmatpush3.bf16.xpose.msra.mxu1 %v436_v17  ;;  %3846 = vmatpush3.bf16.xpose.msra.mxu0 %v436_v17 }
 0x385   :  { %v712_v19 = vmul.bf16 %v4793_v18, %v4765_v63  ;;  %v711_v20 = vmul.bf16 %v4793_v18, %v4755_v53  ;;  %3895 = vmatprep.subr.bf16.mxu0 %v4611_v1  ;;  %3859 = vmatprep.subr.bf16.mxu1 %v4611_v1  ;;  %v713_v29 = vmul.bf16 %v4793_v18, %v4775_v6 }
 0x387   :  { %719 = vrot.lane.b32.xlu0 %v712_v19, %s4614_s19  ;;  %717 = vrot.lane.b32.xlu1 %v711_v20, %s4614_s19 }
 0x38b   :  { %1237 = vrot.lane.b32.xlu1 %v4806_v25, %s4614_s19  ;;  %3830 = vmatmul.mubr.msk.bf16.vlgmr.msra.gmra.mrb[12].mxu1 %vm230_vm2, %v408_v26 }
 0x38c   :  { %3848 = vmatmul.mubr.msk.bf16.vlgmr.msra.gmra.mrb[12].mxu0 %vm230_vm2, %v571_v27  ;;  %797 = vrot.lane.b32.xlu0 %v568_v28, %s4614_s19  ;;  %v4936_v28 = vsel %vm220_vm12, 0.0, %v4615_v52 }
 0x38d   :  { %3896 = vmatpush3.bf16.xpose.msra.mxu0 %v430_v12  ;;  %3833 = vmatprep.mubr.msk.bf16.mxu1 %vm4612_vm0, %v4611_v1 }
 0x38e   :  { %3851 = vmatprep.mubr.msk.bf16.mxu0 %vm4612_vm0, %v4611_v1  ;;  %3897 = vmatprep.subr.bf16.mxu0 %v4611_v1 }
 0x390   :  { %721 = vrot.lane.b32.xlu0 %v713_v29, %s4614_s19  ;;  %v4938_v29 = vsel %vm216_vm13, 0.0, %v4615_v52 }
 0x393   :  { %3834 = vmatmul.mubr.msk.bf16.gmra.mrb[16].mxu1 %vm230_vm2, %v409_v31 }
 0x394   :  { %3852 = vmatmul.mubr.msk.bf16.gmra.mrb[16].mxu0 %vm230_vm2, %v572_v32  ;;  %3837 = vmatprep.mubr.msk.bf16.mxu1 %vm4612_vm0, %v4611_v1 }
 0x395   :  { %3898 = vmatpush3.bf16.xpose.msra.mxu0 %v433_v15  ;;  %3855 = vmatprep.mubr.msk.bf16.mxu0 %vm4612_vm0, %v4611_v1 }
 0x396   :  { %3899 = vmatprep.subr.bf16.mxu0 %v4611_v1 }
 0x39b   :  { %3838 = vmatmul.mubr.msk.bf16.gmra.mrb[20].mxu1 %vm230_vm2, %v410_v33 }
 0x39c   :  { %3856 = vmatmul.mubr.msk.bf16.gmra.mrb[20].mxu0 %vm230_vm2, %v573_v34  ;;  %3865 = vmatprep.mubr.msk.bf16.mxu1 %vm4612_vm0, %v4611_v1 }
 0x39d   :  { %3900 = vmatpush3.bf16.xpose.msra.mxu0 %v436_v17  ;;  %3901 = vmatprep.mubr.msk.bf16.mxu0 %vm4612_vm0, %v4611_v1 }
 0x39e   :  { %3931 = vmatprep.subr.bf16.mxu0 %v4611_v1 }
 0x3a4   :  { %3902 = vmatmul.mubr.msk.bf16.vlgmr.msra.gmra.mrb[24].mxu0 %vm230_vm2, %v873_v35 }
 0x3a5   :  { %3932 = vmatpush3.bf16.xpose.msra.mxu0 %v430_v12  ;;  %3905 = vmatprep.mubr.msk.bf16.mxu0 %vm4612_vm0, %v4611_v1  ;;  %v164_v12 = vadd.s32 32, %v160_v49 }
 0x3a6   :  { %3933 = vmatprep.subr.bf16.mxu0 %v4611_v1 }
 0x3a7   :  { %vm200_vm15 = vcmp.lt.s32.totalorder %v164_v12, 34 }
 0x3a8   :  { %vm211_vm5 = vmand %vm200_vm15, %vm206_vm4  ;;  %vm517_vm4 = vcmask 271360  }
 0x3a9   :  { %vm217_vm6 = vmand %vm211_vm5, %vm212_vm8 }
 0x3ac   :  { %3906 = vmatmul.mubr.msk.bf16.gmra.mrb[28].mxu0 %vm230_vm2, %v874_v36 }
 0x3ad   :  { %3934 = vmatpush3.bf16.xpose.msra.mxu0 %v433_v15  ;;  %3909 = vmatprep.mubr.msk.bf16.mxu0 %vm4612_vm0, %v4611_v1 }
 0x3ae   :  { %3935 = vmatprep.subr.bf16.mxu0 %v4611_v1 }
 0x3b4   :  { %3910 = vmatmul.mubr.msk.bf16.gmra.mrb[32].mxu0 %vm230_vm2, %v875_v37 }
 0x3b5   :  { %3936 = vmatpush3.bf16.xpose.msra.mxu0 %v436_v17  ;;  %3937 = vmatprep.mubr.msk.bf16.mxu0 %vm4612_vm0, %v4611_v1 }
 0x3b6   :  { %3967 = vmatprep.subr.bf16.mxu0 %v4611_v1 }
 0x3bc   :  { %3938 = vmatmul.mubr.msk.bf16.vlgmr.msra.gmra.mrb[36].mxu0 %vm230_vm2, %v1100_v38 }
 0x3bd   :  { %3941 = vmatprep.mubr.msk.bf16.mxu0 %vm4612_vm0, %v4611_v1 }
 0x3c4   :  { %3942 = vmatmul.mubr.msk.bf16.gmra.mrb[40].mxu0 %vm230_vm2, %v1101_v39 }
 0x3c5   :  { %3945 = vmatprep.mubr.msk.bf16.mxu0 %vm4612_vm0, %v4611_v1 }
 0x3cc   :  { %3946 = vmatmul.mubr.msk.bf16.gmra.mrb[44].mxu0 %vm230_vm2, %v1102_v40 }
 0x3cd   :  { %3971 = vmatprep.mubr.msk.bf16.mxu0 %vm4612_vm0, %v4611_v1 }
 0x3f9   :  { %v718_v42 = vpop.permute.xlu1 %717  ;;  %v720_v43 = vpop.permute.xlu0 %719 }
 0x3fa   :  { %3860 = vmatpush3.bf16.msra.mxu1 %v718_v42 }
 0x3fb   :  { %3861 = vmatprep.subr.bf16.mxu1 %v4611_v1 }
 0x3fe   :  { %v4885_v46 = vpop.permute.xlu0 %797  ;;  %3862 = vmatpush3.bf16.msra.mxu1 %v720_v43 }
 0x3ff   :  { %3863 = vmatprep.subr.bf16.mxu1 %v4611_v1 }
 0x402   :  { %v722_v47 = vpop.permute.xlu0 %721 }
 0x403   :  { %v736_v48 = vsel %vm734_vm14, %v722_v47, 0 }
 0x404   :  { %3864 = vmatpush3.bf16.msra.mxu1 %v736_v48 }
 0x405   :  { %3877 = vmatprep.subr.bf16.mxu1 %v4611_v1 }
 0x45e   :  { %v472_v51 = vpop.f32.mrb[12].mxu1 }
 0x45f   :  { %v494_v55 = vmul.f32 0.35355338, %v472_v51  ;;  %v617_v56 = vpop.f32.mrb[12].mxu0  ;;  %v3831_v58 = vpop.f32.mrb[13].mxu1 }
 0x460   :  { %v639_v59 = vmul.f32 0.35355338, %v617_v56  ;;  %v3849_v60 = vpop.f32.mrb[13].mxu0  ;;  %v475_v61 = vpop.f32.mrb[14].mxu1 }
 0x461   :  { %v495_v2 = vmul.f32 0.35355338, %v475_v61  ;;  %v620_v3 = vpop.f32.mrb[14].mxu0  ;;  %v3832_v4 = vpop.f32.mrb[15].mxu1  ;;  %v4909_v5 = vadd.f32 %v494_v55, %v4896_v54  ;;  %v4958_v55 = vsel %vm217_vm6, 0.0, %v4615_v52 }
 0x462   :  { %v640_v7 = vmul.f32 0.35355338, %v620_v3  ;;  %v3850_v8 = vpop.f32.mrb[15].mxu0  ;;  %v4912_v10 = vadd.f32 %v639_v59, %v4896_v54 }
 0x463   :  { %v505_v13 = vsel %vm504_vm10, %v4909_v5, -inf  ;;  %v4917_v15 = vadd.f32 %v495_v2, %v4896_v54 }
 0x464   :  { %506 = vmax.xlane.f32.xlu0 %v505_v13  ;;  %v649_v16 = vsel %vm504_vm10, %v4912_v10, -inf  ;;  %v4926_v17 = vadd.f32 %v640_v7, %v4896_v54 }
 0x465   :  { %650 = vmax.xlane.f32.xlu1 %v649_v16  ;;  %v508_v26 = vsel %vm504_vm10, %v4917_v15, -inf }
 0x466   :  { %v480_v19 = vpop.f32.mrb[16].mxu1  ;;  %v652_v27 = vsel %vm504_vm10, %v4926_v17, -inf }
 0x467   :  { %v625_v20 = vpop.f32.mrb[16].mxu0  ;;  %v3835_v22 = vpop.f32.mrb[17].mxu1  ;;  %v496_v31 = vmul.f32 0.35355338, %v480_v19 }
 0x468   :  { %v641_v32 = vmul.f32 0.35355338, %v625_v20  ;;  %v3853_v33 = vpop.f32.mrb[17].mxu0  ;;  %v483_v34 = vpop.f32.mrb[18].mxu1  ;;  %653 = vmax.xlane.f32.xlu0 %v652_v27  ;;  %v569_v22 = vmul.bf16 %v4802_v23, %v4765_v63 }
 0x469   :  { %v497_v35 = vmul.f32 0.35355338, %v483_v34  ;;  %509 = vmax.xlane.f32.xlu1 %v508_v26  ;;  %v628_v36 = vpop.f32.mrb[18].mxu0  ;;  %v3836_v37 = vpop.f32.mrb[19].mxu1  ;;  %v4952_v47 = vadd.f32 %v496_v31, %v4936_v28 }
 0x46a   :  { %v3854_v38 = vpop.f32.mrb[19].mxu0  ;;  %v4944_v39 = vadd.f32 %v641_v32, %v4936_v28  ;;  %v642_v42 = vmul.f32 0.35355338, %v628_v36  ;;  %v570_v32 = vmul.bf16 %v4802_v23, %v4775_v6 }
 0x46b   :  { %v4947_v40 = vadd.f32 %v497_v35, %v4938_v29  ;;  %v511_v59 = vsel %vm504_vm10, %v4952_v47, -inf }
 0x46c   :  { %v655_v43 = vsel %vm504_vm10, %v4944_v39, -inf  ;;  %v4963_v60 = vadd.f32 %v642_v42, %v4938_v29 }
 0x46d   :  { %656 = vmax.xlane.f32.xlu0 %v655_v43  ;;  %v514_v48 = vsel %vm504_vm10, %v4947_v40, -inf }
 0x46e   :  { %v488_v49 = vpop.f32.mrb[20].mxu1  ;;  %515 = vmax.xlane.f32.xlu1 %v514_v48  ;;  %v658_v52 = vsel %vm504_vm10, %v4963_v60, -inf }
 0x46f   :  { %v633_v50 = vpop.f32.mrb[20].mxu0  ;;  %v3839_v51 = vpop.f32.mrb[21].mxu1 }
 0x470   :  { %v643_v56 = vmul.f32 0.35355338, %v633_v50  ;;  %v3857_v58 = vpop.f32.mrb[21].mxu0  ;;  %v491_v44 = vpop.f32.mrb[22].mxu1  ;;  %v498_v51 = vmul.f32 0.35355338, %v488_v49 }
 0x471   :  { %512 = vmax.xlane.f32.xlu0 %v511_v59  ;;  %v636_v45 = vpop.f32.mrb[22].mxu0  ;;  %v3840_v61 = vpop.f32.mrb[23].mxu1 }
 0x472   :  { %v3858_v62 = vpop.f32.mrb[23].mxu0  ;;  %v4966_v2 = vadd.f32 %v643_v56, %v4958_v55  ;;  %v4979_v45 = vadd.f32 %v498_v51, %v4958_v55 }
 0x474   :  { %v661_v3 = vsel %vm517_vm4, %v4966_v2, -inf }
 0x475   :  { %659 = vmax.xlane.f32.xlu0 %v658_v52  ;;  %662 = vmax.xlane.f32.xlu1 %v661_v3 }
 0x477   :  { %v919_v4 = vpop.f32.mrb[24].mxu0 }
 0x478   :  { %v3903_v7 = vpop.f32.mrb[25].mxu0  ;;  %v941_v61 = vmul.f32 0.35355338, %v919_v4 }
 0x479   :  { %v922_v8 = vpop.f32.mrb[26].mxu0  ;;  %v518_v7 = vsel %vm517_vm4, %v4979_v45, -inf }
 0x47a   :  { %v3904_v12 = vpop.f32.mrb[27].mxu0  ;;  %v942_v3 = vmul.f32 0.35355338, %v922_v8 }
 0x47f   :  { %v927_v13 = vpop.f32.mrb[28].mxu0 }
 0x480   :  { %v3907_v16 = vpop.f32.mrb[29].mxu0  ;;  %v943_v4 = vmul.f32 0.35355338, %v927_v13 }
 0x481   :  { %v930_v19 = vpop.f32.mrb[30].mxu0  ;;  %v4989_v16 = vadd.f32 %v941_v61, %v4896_v54 }
 0x482   :  { %v3908_v20 = vpop.f32.mrb[31].mxu0  ;;  %v5007_v13 = vadd.f32 %v943_v4, %v4936_v28 }
 0x486   :  { %799 = vrot.lane.b32.xlu1 %v569_v22, %s4614_s19  ;;  %v4995_v22 = vadd.f32 %v942_v3, %v4896_v54 }
 0x487   :  { %v935_v26 = vpop.f32.mrb[32].mxu0 }
 0x488   :  { %v3911_v27 = vpop.f32.mrb[33].mxu0  ;;  %v945_v58 = vmul.f32 0.35355338, %v935_v26  ;;  %v951_v26 = vsel %vm504_vm10, %v4989_v16, -inf }
 0x489   :  { %v938_v31 = vpop.f32.mrb[34].mxu0 }
 0x48a   :  { %v3912_v33 = vpop.f32.mrb[35].mxu0  ;;  %v4982_v52 = vadd.f32 %v945_v58, %v4958_v55  ;;  %v5033_v58 = vpop.permute.xlu1 %1237 }
 0x48b   :  { %801 = vrot.lane.b32.xlu0 %v570_v32, %s4614_s19  ;;  %v954_v32 = vsel %vm504_vm10, %v4995_v22, -inf  ;;  %v944_v33 = vmul.f32 0.35355338, %v930_v19 }
 0x48c   :  { %v963_v49 = vsel %vm517_vm4, %v4982_v52, -inf }
 0x48f   :  { %v1146_v34 = vpop.f32.mrb[36].mxu0 }
 0x490   :  { %v3939_v35 = vpop.f32.mrb[37].mxu0 }
 0x491   :  { %v1149_v36 = vpop.f32.mrb[38].mxu0 }
 0x492   :  { %v3940_v37 = vpop.f32.mrb[39].mxu0  ;;  %v1169_v62 = vmul.f32 0.35355338, %v1149_v36 }
 0x494   :  { %v4992_v20 = vadd.f32 %v1169_v62, %v4896_v54 }
 0x496   :  { %v1181_v27 = vsel %vm504_vm10, %v4992_v20, -inf }
 0x497   :  { %v1154_v38 = vpop.f32.mrb[40].mxu0 }
 0x498   :  { %v3943_v42 = vpop.f32.mrb[41].mxu0  ;;  %v1170_v12 = vmul.f32 0.35355338, %v1154_v38  ;;  %v957_v38 = vsel %vm504_vm10, %v5007_v13, -inf }
 0x499   :  { %v1157_v43 = vpop.f32.mrb[42].mxu0  ;;  %v1168_v42 = vmul.f32 0.35355338, %v1146_v34 }
 0x49a   :  { %v3944_v48 = vpop.f32.mrb[43].mxu0  ;;  %v1171_v8 = vmul.f32 0.35355338, %v1157_v43  ;;  %v5002_v31 = vadd.f32 %v1170_v12, %v4936_v28 }
 0x49b   :  { %v5019_v48 = vadd.f32 %v944_v33, %v4938_v29 }
 0x49c   :  { %v1184_v36 = vsel %vm504_vm10, %v5002_v31, -inf  ;;  %v5012_v37 = vadd.f32 %v1171_v8, %v4938_v29 }
 0x49e   :  { %v1187_v43 = vsel %vm504_vm10, %v5012_v37, -inf }
 0x49f   :  { %v1162_v50 = vpop.f32.mrb[44].mxu0 }
 0x4a0   :  { %v3947_v56 = vpop.f32.mrb[45].mxu0  ;;  %v1172_v35 = vmul.f32 0.35355338, %v1162_v50  ;;  %v960_v50 = vsel %vm504_vm10, %v5019_v48, -inf }
 0x4a1   :  { %v1165_v44 = vpop.f32.mrb[46].mxu0  ;;  %v5029_v56 = vadd.f32 %v1168_v42, %v4896_v54 }
 0x4a2   :  { %v3948_v59 = vpop.f32.mrb[47].mxu0  ;;  %v5022_v19 = vadd.f32 %v1172_v35, %v4958_v55 }
 0x4a3   :  { %v1178_v34 = vsel %vm504_vm10, %v5029_v56, -inf }
 0x4a4   :  { %v1190_v51 = vsel %vm517_vm4, %v5022_v19, -inf }
 0x4aa   :  { %519 = vmax.xlane.f32.xlu0 %v518_v7  ;;  %964 = vmax.xlane.f32.xlu1 %v963_v49 }
 0x4ae   :  { %952 = vmax.xlane.f32.xlu0 %v951_v26  ;;  %1182 = vmax.xlane.f32.xlu1 %v1181_v27 }
 0x4b2   :  { %955 = vmax.xlane.f32.xlu0 %v954_v32  ;;  %1185 = vmax.xlane.f32.xlu1 %v1184_v36 }
 0x4b6   :  { %958 = vmax.xlane.f32.xlu0 %v957_v38  ;;  %1188 = vmax.xlane.f32.xlu1 %v1187_v43 }
 0x4ba   :  { %961 = vmax.xlane.f32.xlu0 %v960_v50  ;;  %1191 = vmax.xlane.f32.xlu1 %v1190_v51 }
 0x4be   :  { %1179 = vmax.xlane.f32.xlu0 %v1178_v34 }
 0x4f1   :  { %v507_v44 = vpop.xlane.xlu0 %506 }
 0x4f2   :  { %v521_v59 = vsub.f32 %v4909_v5, %v507_v44  ;;  %v651_v61 = vpop.xlane.xlu1 %650 }
 0x4f3   :  { %v664_v62 = vsub.f32 %v4912_v10, %v651_v61 }
 0x4f4   :  { %v526_v3 = vmul.f32 1.442695, %v521_v59 }
 0x4f5   :  { %v669_v7 = vmul.f32 1.442695, %v664_v62  ;;  %v654_v12 = vpop.xlane.xlu0 %653 }
 0x4f6   :  { %4357 = vpow2.f32 %v526_v3  ;;  %v510_v49 = vpop.xlane.xlu1 %509  ;;  %v665_v4 = vsub.f32 %v4926_v17, %v654_v12 }
 0x4f7   :  { %4359 = vpow2.f32 %v669_v7  ;;  %v522_v8 = vsub.f32 %v4917_v15, %v510_v49 }
 0x4f8   :  { %v671_v26 = vmul.f32 1.442695, %v665_v4 }
 0x4f9   :  { %v528_v27 = vmul.f32 1.442695, %v522_v8 }
 0x4fa   :  { %4361 = vpow2.f32 %v671_v26  ;;  %v657_v32 = vpop.xlane.xlu0 %656 }
 0x4fb   :  { %v666_v33 = vsub.f32 %v4944_v39, %v657_v32  ;;  %4363 = vpow2.f32 %v528_v27  ;;  %v516_v35 = vpop.xlane.xlu1 %515 }
 0x4fc   :  { %v524_v17 = vsub.f32 %v4947_v40, %v516_v35  ;;  %v1015_v35 = vmul.bf16 %v4882_v41, %v4775_v6 }
 0x4fd   :  { %v673_v5 = vmul.f32 1.442695, %v666_v33 }
 0x4fe   :  { %v513_v10 = vpop.xlane.xlu0 %512  ;;  %v532_v44 = vmul.f32 1.442695, %v524_v17 }
 0x4ff   :  { %v523_v36 = vsub.f32 %v4952_v47, %v513_v10  ;;  %4365 = vpow2.f32 %v673_v5  ;;  %v1014_v5 = vmul.bf16 %v4882_v41, %v4765_v63  ;;  %v1013_v10 = vmul.bf16 %v4882_v41, %v4755_v53 }
 0x500   :  { %v5041_v38 = vpop.eup %4357 }
 0x501   :  { %v5043_v42 = vpop.eup %4359  ;;  %v530_v15 = vmul.f32 1.442695, %v523_v36  ;;  %v536_v43 = vsel %vm504_vm10, %v5041_v38, 0.0  ;;  %v1240_v36 = vmul.bf16 %v5033_v58, %v4755_v53 }
 0x502   :  { %v660_v50 = vpop.xlane.xlu0 %659  ;;  %v663_v51 = vpop.xlane.xlu1 %662  ;;  %537 = vadd.xlane.f32.xlu0 %v536_v43  ;;  %v679_v39 = vsel %vm504_vm10, %v5043_v42, 0.0 }
 0x503   :  { %4367 = vpow2.f32 %v530_v15  ;;  %v667_v47 = vsub.f32 %v4963_v60, %v660_v50  ;;  %680 = vadd.xlane.f32.xlu1 %v679_v39  ;;  %v668_v40 = vsub.f32 %v4966_v2, %v663_v51 }
 0x504   :  { %v5051_v34 = vpop.eup %4361 }
 0x505   :  { %v675_v59 = vmul.f32 1.442695, %v667_v47  ;;  %v682_v61 = vsel %vm504_vm10, %v5051_v34, 0.0  ;;  %v5056_v62 = vpop.eup %4363  ;;  %v677_v3 = vmul.f32 1.442695, %v668_v40 }
 0x506   :  { %v539_v7 = vsel %vm504_vm10, %v5056_v62, 0.0  ;;  %v5092_v17 = vpop.permute.xlu0 %801  ;;  %v5095_v50 = vpop.permute.xlu1 %799 }
 0x507   :  { %4369 = vpow2.f32 %v675_v59  ;;  %683 = vadd.xlane.f32.xlu1 %v682_v61 }
 0x508   :  { %4371 = vpow2.f32 %v532_v44 }
 0x509   :  { %v5060_v60 = vpop.eup %4365  ;;  %4373 = vpow2.f32 %v677_v3 }
 0x50a   :  { %v685_v49 = vsel %vm504_vm10, %v5060_v60, 0.0 }
 0x50b   :  { %540 = vadd.xlane.f32.xlu1 %v539_v7 }
 0x50d   :  { %v5062_v12 = vpop.eup %4367 }
 0x50e   :  { %v542_v2 = vsel %vm504_vm10, %v5062_v12, 0.0 }
 0x50f   :  { %543 = vadd.xlane.f32.xlu0 %v542_v2  ;;  %686 = vadd.xlane.f32.xlu1 %v685_v49 }
 0x511   :  { %v5068_v4 = vpop.eup %4369 }
 0x512   :  { %v688_v8 = vsel %vm504_vm10, %v5068_v4, 0.0  ;;  %v5072_v26 = vpop.eup %4371 }
 0x513   :  { %689 = vadd.xlane.f32.xlu1 %v688_v8  ;;  %v545_v27 = vsel %vm504_vm10, %v5072_v26, 0.0  ;;  %v5076_v32 = vpop.eup %4373 }
 0x514   :  { %v691_v33 = vsel %vm517_vm4, %v5076_v32, 0.0 }
 0x517   :  { %546 = vadd.xlane.f32.xlu1 %v545_v27 }
 0x51b   :  { %692 = vadd.xlane.f32.xlu1 %v691_v33 }
 0x525   :  { %1021 = vrot.lane.b32.xlu0 %v1014_v5, %s4614_s19 }
 0x529   :  { %1023 = vrot.lane.b32.xlu0 %v1015_v35, %s4614_s19 }
 0x52c   :  { %1019 = vrot.lane.b32.xlu1 %v1013_v10, %s4614_s19 }
 0x52d   :  { %1246 = vrot.lane.b32.xlu0 %v1240_v36, %s4614_s19 }
 0x537   :  { %v520_v15 = vpop.xlane.xlu0 %519  ;;  %v965_v44 = vpop.xlane.xlu1 %964 }
 0x538   :  { %v525_v43 = vsub.f32 %v4979_v45, %v520_v15  ;;  %v970_v45 = vsub.f32 %v4982_v52, %v965_v44 }
 0x53a   :  { %v534_v51 = vmul.f32 1.442695, %v525_v43  ;;  %v979_v5 = vmul.f32 1.442695, %v970_v45 }
 0x53b   :  { %v953_v39 = vpop.xlane.xlu0 %952  ;;  %v1183_v3 = vpop.xlane.xlu1 %1182 }
 0x53c   :  { %v966_v47 = vsub.f32 %v4989_v16, %v953_v39  ;;  %4375 = vpow2.f32 %v534_v51 }
 0x53e   :  { %v971_v59 = vmul.f32 1.442695, %v966_v47 }
 0x53f   :  { %v956_v40 = vpop.xlane.xlu0 %955  ;;  %v1186_v33 = vpop.xlane.xlu1 %1185 }
 0x540   :  { %v967_v53 = vsub.f32 %v4995_v22, %v956_v40  ;;  %4377 = vpow2.f32 %v971_v59  ;;  %v1194_v22 = vsub.f32 %v4992_v20, %v1183_v3 }
 0x542   :  { %v973_v61 = vmul.f32 1.442695, %v967_v53  ;;  %v1200_v43 = vmul.f32 1.442695, %v1194_v22  ;;  %v1242_v22 = vmul.bf16 %v5033_v58, %v4775_v6 }
 0x543   :  { %v959_v7 = vpop.xlane.xlu0 %958  ;;  %v1189_v39 = vpop.xlane.xlu1 %1188 }
 0x544   :  { %4379 = vpow2.f32 %v973_v61  ;;  %v968_v2 = vsub.f32 %v5007_v13, %v959_v7  ;;  %v1196_v59 = vsub.f32 %v5012_v37, %v1189_v39 }
 0x546   :  { %v975_v49 = vmul.f32 1.442695, %v968_v2  ;;  %v5101_v27 = vpop.eup %4375  ;;  %v1204_v53 = vmul.f32 1.442695, %v1196_v59 }
 0x547   :  { %v962_v8 = vpop.xlane.xlu0 %961  ;;  %v548_v36 = vsel %vm517_vm4, %v5101_v27, 0.0 }
 0x548   :  { %4381 = vpow2.f32 %v975_v49  ;;  %v969_v16 = vsub.f32 %v5019_v48, %v962_v8  ;;  %v1195_v48 = vsub.f32 %v5002_v31, %v1186_v33 }
 0x54a   :  { %v977_v35 = vmul.f32 1.442695, %v969_v16  ;;  %v5107_v15 = vpop.eup %4377 }
 0x54b   :  { %v1180_v10 = vpop.xlane.xlu0 %1179  ;;  %v981_v20 = vsel %vm504_vm10, %v5107_v15, 0.0 }
 0x54c   :  { %4383 = vpow2.f32 %v977_v35  ;;  %v1193_v52 = vsub.f32 %v5029_v56, %v1180_v10  ;;  %549 = vadd.xlane.f32.xlu0 %v548_v36  ;;  %v1202_v56 = vmul.f32 1.442695, %v1195_v48  ;;  %v1241_v35 = vmul.bf16 %v5033_v58, %v4765_v63  ;;  %v1192_v10 = vpop.xlane.xlu1 %1191 }
 0x54d   :  { %4385 = vpow2.f32 %v979_v5  ;;  %v1197_v36 = vsub.f32 %v5022_v19, %v1192_v10 }
 0x54e   :  { %v5110_v13 = vpop.eup %4379  ;;  %v1198_v51 = vmul.f32 1.442695, %v1193_v52 }
 0x54f   :  { %v984_v47 = vsel %vm504_vm10, %v5110_v13, 0.0  ;;  %v1206_v52 = vmul.f32 1.442695, %v1197_v36 }
 0x550   :  { %4387 = vpow2.f32 %v1198_v51  ;;  %982 = vadd.xlane.f32.xlu0 %v981_v20  ;;  %985 = vadd.xlane.f32.xlu1 %v984_v47 }
 0x551   :  { %4389 = vpow2.f32 %v1200_v43 }
 0x552   :  { %v5117_v44 = vpop.eup %4381  ;;  %4391 = vpow2.f32 %v1202_v56 }
 0x553   :  { %v987_v31 = vsel %vm504_vm10, %v5117_v44, 0.0  ;;  %4393 = vpow2.f32 %v1204_v53 }
 0x554   :  { %988 = vadd.xlane.f32.xlu1 %v987_v31  ;;  %4395 = vpow2.f32 %v1206_v52 }
 0x556   :  { %v5122_v40 = vpop.eup %4383 }
 0x557   :  { %v990_v61 = vsel %vm504_vm10, %v5122_v40, 0.0  ;;  %v5126_v3 = vpop.eup %4385 }
 0x558   :  { %991 = vadd.xlane.f32.xlu1 %v990_v61  ;;  %v993_v2 = vsel %vm517_vm4, %v5126_v3, 0.0 }
 0x55a   :  { %v5128_v7 = vpop.eup %4387 }
 0x55b   :  { %v1208_v37 = vsel %vm504_vm10, %v5128_v7, 0.0  ;;  %v5134_v45 = vpop.eup %4389 }
 0x55c   :  { %1209 = vadd.xlane.f32.xlu0 %v1208_v37  ;;  %994 = vadd.xlane.f32.xlu1 %v993_v2  ;;  %v1211_v49 = vsel %vm504_vm10, %v5134_v45, 0.0  ;;  %v5138_v8 = vpop.eup %4391 }
 0x55d   :  { %v1214_v16 = vsel %vm504_vm10, %v5138_v8, 0.0  ;;  %v5142_v33 = vpop.eup %4393 }
 0x55e   :  { %v1217_v5 = vsel %vm504_vm10, %v5142_v33, 0.0  ;;  %v5153_v43 = vpop.eup %4395 }
 0x55f   :  { %v1220_v51 = vsel %vm517_vm4, %v5153_v43, 0.0 }
 0x560   :  { %1212 = vadd.xlane.f32.xlu1 %v1211_v49 }
 0x564   :  { %1215 = vadd.xlane.f32.xlu1 %v1214_v16 }
 0x568   :  { %1218 = vadd.xlane.f32.xlu1 %v1217_v5 }
 0x572   :  { %1250 = vrot.lane.b32.xlu0 %v1242_v22, %s4614_s19 }
 0x579   :  { %1248 = vrot.lane.b32.xlu1 %v1241_v35, %s4614_s19 }
 0x58f   :  { %v538_v2 = vpop.xlane.xlu0 %537 }
 0x590   :  { %v681_v48 = vpop.xlane.xlu1 %680 }
 0x591   :  { %1221 = vadd.xlane.f32.xlu0 %v1220_v51  ;;  %4397 = vrcp.f32 %v681_v48 }
 0x594   :  { %v684_v6 = vpop.xlane.xlu1 %683 }
 0x595   :  { %4399 = vrcp.f32 %v684_v6 }
 0x598   :  { %v541_v39 = vpop.xlane.xlu1 %540 }
 0x59b   :  { %v4398_v63 = vpop.eup %4397 }
 0x59c   :  { %v687_v20 = vpop.xlane.xlu1 %686  ;;  %v695_v56 = vmul.f32 %v4398_v63, %v5043_v42 }
 0x59d   :  { %4401 = vrcp.f32 %v687_v20 }
 0x59f   :  { %v4400_v47 = vpop.eup %4399 }
 0x5a0   :  { %v697_v19 = vmul.f32 %v4400_v47, %v5051_v34  ;;  %v690_v59 = vpop.xlane.xlu1 %689  ;;  %v815_v34 = vsel %vm734_vm14, %v5092_v17, 0 }
 0x5a1   :  { %4403 = vrcp.f32 %v690_v59 }
 0x5a2   :  { %v704_v31 = vpack.c.bf16 %v697_v19, %v695_v56 }
 0x5a4   :  { %3866 = vmatmul.mubr.msk.bf16.vlgmr.msra.gmra.mrb[24].mxu1 %vm504_vm10, %v704_v31  ;;  %v547_v53 = vpop.xlane.xlu1 %546 }
 0x5a5   :  { %3878 = vmatpush3.bf16.msra.mxu1 %v4885_v46  ;;  %3869 = vmatprep.mubr.msk.bf16.mxu1 %vm4612_vm0, %v4611_v1 }
 0x5a6   :  { %3879 = vmatprep.subr.bf16.mxu1 %v4611_v1 }
 0x5a7   :  { %v4402_v37 = vpop.eup %4401 }
 0x5a8   :  { %v693_v61 = vpop.xlane.xlu1 %692  ;;  %v699_v49 = vmul.f32 %v4402_v37, %v5060_v60 }
 0x5a9   :  { %3880 = vmatpush3.bf16.msra.mxu1 %v5095_v50  ;;  %4405 = vrcp.f32 %v693_v61  ;;  %v4327_v50 = vld [vmem:[%s6018_s1 + $0x40] sm:$0xff]  }
 0x5aa   :  { %3881 = vmatprep.subr.bf16.mxu1 %v4611_v1  ;;  %4407 = vrcp.f32 %v541_v39  ;;  %3968 = vmatpush3.bf16.msra.mxu0 %v4327_v50 }
 0x5ab   :  { %v4404_v42 = vpop.eup %4403  ;;  %4409 = vrcp.f32 %v538_v2  ;;  %3969 = vmatprep.subr.bf16.mxu0 %v4611_v1 }
 0x5ac   :  { %v701_v46 = vmul.f32 %v4404_v42, %v5068_v4  ;;  %v544_v4 = vpop.xlane.xlu0 %543  ;;  %4411 = vrcp.f32 %v547_v53  ;;  %v1020_v6 = vpop.permute.xlu1 %1019 }
 0x5ad   :  { %3882 = vmatpush3.bf16.msra.mxu1 %v815_v34  ;;  %4413 = vrcp.f32 %v544_v4 }
 0x5ae   :  { %v705_v16 = vpack.c.bf16 %v701_v46, %v699_v49  ;;  %3913 = vmatprep.subr.bf16.mxu1 %v4611_v1 }
 0x5b0   :  { %3870 = vmatmul.mubr.msk.bf16.gmra.mrb[28].mxu1 %vm504_vm10, %v705_v16  ;;  %v1022_v51 = vpop.permute.xlu0 %1021 }
 0x5b1   :  { %3873 = vmatprep.mubr.msk.bf16.mxu1 %vm4612_vm0, %v4611_v1 }
 0x5b3   :  { %v4406_v60 = vpop.eup %4405 }
 0x5b4   :  { %v703_v17 = vmul.f32 %v4406_v60, %v5076_v32  ;;  %v4408_v22 = vpop.eup %4407 }
 0x5b5   :  { %v4410_v35 = vpop.eup %4409  ;;  %v554_v10 = vmul.f32 %v4408_v22, %v5056_v62  ;;  %v1024_v62 = vpop.permute.xlu0 %1023 }
 0x5b6   :  { %v706_v5 = vpack.c.bf16 %v703_v17, %v703_v17  ;;  %v552_v36 = vmul.f32 %v4410_v35, %v5041_v38  ;;  %v4412_v48 = vpop.eup %4411  ;;  %v1037_v63 = vsel %vm734_vm14, %v1024_v62, 0 }
 0x5b7   :  { %v4414_v32 = vpop.eup %4413  ;;  %v558_v39 = vmul.f32 %v4412_v48, %v5072_v26 }
 0x5b8   :  { %3874 = vmatmul.mubr.msk.bf16.gmra.mrb[32].mxu1 %vm504_vm10, %v706_v5  ;;  %v561_v52 = vpack.c.bf16 %v554_v10, %v552_v36  ;;  %v556_v20 = vmul.f32 %v4414_v32, %v5062_v12 }
 0x5b9   :  { %3883 = vmatprep.mubr.msk.bf16.mxu1 %vm4612_vm0, %v4611_v1  ;;  %v1247_v47 = vpop.permute.xlu0 %1246 }
 0x5ba   :  { %v562_v38 = vpack.c.bf16 %v558_v39, %v556_v20 }
 0x5c0   :  { %3884 = vmatmul.mubr.msk.bf16.vlgmr.msra.gmra.mrb[24].mxu1 %vm504_vm10, %v561_v52 }
 0x5c1   :  { %3914 = vmatpush3.bf16.msra.mxu1 %v1020_v6  ;;  %3887 = vmatprep.mubr.msk.bf16.mxu1 %vm4612_vm0, %v4611_v1 }
 0x5c2   :  { %3915 = vmatprep.subr.bf16.mxu1 %v4611_v1 }
 0x5c5   :  { %3916 = vmatpush3.bf16.msra.mxu1 %v1022_v51 }
 0x5c6   :  { %3917 = vmatprep.subr.bf16.mxu1 %v4611_v1 }
 0x5c8   :  { %3888 = vmatmul.mubr.msk.bf16.gmra.mrb[28].mxu1 %vm504_vm10, %v562_v38 }
 0x5c9   :  { %3918 = vmatpush3.bf16.msra.mxu1 %v1037_v63  ;;  %3891 = vmatprep.mubr.msk.bf16.mxu1 %vm4612_vm0, %v4611_v1 }
 0x5ca   :  { %3949 = vmatprep.subr.bf16.mxu1 %v4611_v1 }
 0x5d9   :  { %v550_v56 = vpop.xlane.xlu0 %549 }
 0x5da   :  { %4415 = vrcp.f32 %v550_v56 }
 0x5dd   :  { %v983_v26 = vpop.xlane.xlu0 %982  ;;  %v986_v12 = vpop.xlane.xlu1 %985 }
 0x5de   :  { %4417 = vrcp.f32 %v983_v26 }
 0x5df   :  { %4419 = vrcp.f32 %v986_v12 }
 0x5e1   :  { %v989_v19 = vpop.xlane.xlu1 %988 }
 0x5e4   :  { %v4416_v59 = vpop.eup %4415 }
 0x5e5   :  { %v992_v31 = vpop.xlane.xlu1 %991  ;;  %v560_v53 = vmul.f32 %v4416_v59, %v5101_v27 }
 0x5e6   :  { %4421 = vrcp.f32 %v992_v31 }
 0x5e7   :  { %v563_v61 = vpack.c.bf16 %v560_v53, %v560_v53  ;;  %4423 = vrcp.f32 %v989_v19 }
 0x5e8   :  { %v4418_v37 = vpop.eup %4417 }
 0x5e9   :  { %v4420_v42 = vpop.eup %4419  ;;  %3892 = vmatmul.mubr.msk.bf16.gmra.mrb[32].mxu1 %vm504_vm10, %v563_v61  ;;  %v995_v34 = vpop.xlane.xlu1 %994  ;;  %v997_v2 = vmul.f32 %v4418_v37, %v5107_v15 }
 0x5ea   :  { %3919 = vmatprep.mubr.msk.bf16.mxu1 %vm4612_vm0, %v4611_v1  ;;  %v999_v49 = vmul.f32 %v4420_v42, %v5110_v13  ;;  %4425 = vrcp.f32 %v995_v34  ;;  %v1210_v17 = vpop.xlane.xlu0 %1209 }
 0x5ec   :  { %v1006_v16 = vpack.c.bf16 %v999_v49, %v997_v2 }
 0x5ed   :  { %v1213_v46 = vpop.xlane.xlu1 %1212 }
 0x5ee   :  { %4427 = vrcp.f32 %v1213_v46  ;;  %v1251_v10 = vpop.permute.xlu0 %1250 }
 0x5ef   :  { %4429 = vrcp.f32 %v1210_v17  ;;  %v1264_v36 = vsel %vm734_vm14, %v1251_v10, 0 }
 0x5f0   :  { %v4422_v50 = vpop.eup %4421 }
 0x5f1   :  { %3920 = vmatmul.mubr.msk.bf16.vlgmr.msra.gmra.mrb[24].mxu1 %vm504_vm10, %v1006_v16  ;;  %v1216_v27 = vpop.xlane.xlu1 %1215  ;;  %v4424_v60 = vpop.eup %4423  ;;  %v1003_v4 = vmul.f32 %v4422_v50, %v5122_v40  ;;  %v3562_v16 = vld [vmem:[%s6019_s2 + $0x2b] ss:$0 sm:$0xff] }
 0x5f2   :  { %3950 = vmatpush3.bf16.msra.mxu1 %v1247_v47  ;;  %3923 = vmatprep.mubr.msk.bf16.mxu1 %vm4612_vm0, %v4611_v1  ;;  %v1001_v13 = vmul.f32 %v4424_v60, %v5117_v44 }
 0x5f3   :  { %3951 = vmatprep.subr.bf16.mxu1 %v4611_v1 }
 0x5f4   :  { %v1007_v5 = vpack.c.bf16 %v1003_v4, %v1001_v13  ;;  %v4426_v22 = vpop.eup %4425 }
 0x5f5   :  { %v1219_v15 = vpop.xlane.xlu1 %1218  ;;  %v1005_v40 = vmul.f32 %v4426_v22, %v5126_v3 }
 0x5f6   :  { %4431 = vrcp.f32 %v1219_v15 }
 0x5f7   :  { %v1008_v44 = vpack.c.bf16 %v1005_v40, %v1005_v40  ;;  %4433 = vrcp.f32 %v1216_v27 }
 0x5f8   :  { %v4428_v52 = vpop.eup %4427 }
 0x5f9   :  { %3924 = vmatmul.mubr.msk.bf16.gmra.mrb[28].mxu1 %vm504_vm10, %v1007_v5  ;;  %v1249_v35 = vpop.permute.xlu1 %1248  ;;  %v4430_v48 = vpop.eup %4429  ;;  %v1226_v51 = vmul.f32 %v4428_v52, %v5134_v45 }
 0x5fa   :  { %3952 = vmatpush3.bf16.msra.mxu1 %v1249_v35  ;;  %3927 = vmatprep.mubr.msk.bf16.mxu1 %vm4612_vm0, %v4611_v1  ;;  %v1224_v6 = vmul.f32 %v4430_v48, %v5128_v7 }
 0x5fb   :  { %3953 = vmatprep.subr.bf16.mxu1 %v4611_v1 }
 0x5fc   :  { %v1233_v3 = vpack.c.bf16 %v1226_v51, %v1224_v6 }
 0x5fe   :  { %3954 = vmatpush3.bf16.msra.mxu1 %v1264_v36 }
 0x5ff   :  { %3999 = vmatprep.subr.bf16.mxu1 %v4611_v1 }
 0x600   :  { %v4432_v32 = vpop.eup %4431 }
 0x601   :  { %3928 = vmatmul.mubr.msk.bf16.gmra.mrb[32].mxu1 %vm504_vm10, %v1008_v44  ;;  %v4434_v39 = vpop.eup %4433  ;;  %v1230_v20 = vmul.f32 %v4432_v32, %v5142_v33 }
 0x602   :  { %3955 = vmatprep.mubr.msk.bf16.mxu1 %vm4612_vm0, %v4611_v1  ;;  %v1228_v62 = vmul.f32 %v4434_v39, %v5138_v8  ;;  %v4328_v8 = vld [vmem:[%s6018_s1 + $0x48] sm:$0xff]  }
 0x603   :  { %3970 = vmatpush3.bf16.msra.mxu0 %v4328_v8 }
 0x604   :  { %v1234_v38 = vpack.c.bf16 %v1230_v20, %v1228_v62  ;;  %3983 = vmatprep.subr.bf16.mxu0 %v4611_v1 }
 0x609   :  { %3956 = vmatmul.mubr.msk.bf16.vlgmr.msra.gmra.mrb[24].mxu1 %vm504_vm10, %v1233_v3 }
 0x60a   :  { %3959 = vmatprep.mubr.msk.bf16.mxu1 %vm4612_vm0, %v4611_v1 }
 0x611   :  { %3960 = vmatmul.mubr.msk.bf16.gmra.mrb[28].mxu1 %vm504_vm10, %v1234_v38 }
 0x612   :  { %3963 = vmatprep.mubr.msk.bf16.mxu1 %vm4612_vm0, %v4611_v1 }
 0x61e   :  { %v1222_v45 = vpop.xlane.xlu0 %1221 }
 0x61f   :  { %4435 = vrcp.f32 %v1222_v45 }
 0x629   :  { %v4436_v7 = vpop.eup %4435 }
 0x62a   :  { %v1232_v63 = vmul.f32 %v4436_v7, %v5153_v43 }
 0x62c   :  { %v1235_v47 = vpack.c.bf16 %v1232_v63, %v1232_v63 }
 0x62e   :  { %3964 = vmatmul.mubr.msk.bf16.gmra.mrb[32].mxu1 %vm504_vm10, %v1235_v47 }
 0x62f   :  { %4007 = vmatprep.mubr.msk.bf16.mxu1 %vm4612_vm0, %v4611_v1 }
 0x6dc   :  { %v1300_v33 = vpop.f32.mrb[24].mxu1 }
 0x6dd   :  { %v3957_v56 = vpop.f32.mrb[25].mxu1 }
 0x6de   :  { %v1303_v26 = vpop.f32.mrb[26].mxu1 }
 0x6df   :  { %v1327_v12 = vpack.c.bf16 %v1303_v26, %v1300_v33  ;;  %v3958_v19 = vpop.f32.mrb[27].mxu1 }
 0x6e1   :  { %3972 = vmatmul.mubr.msk.bf16.vlgmr.msra.gmra.mrb[48].mxu0 %vm230_vm2, %v1327_v12 }
 0x6e2   :  { %3975 = vmatprep.mubr.msk.bf16.mxu0 %vm4612_vm0, %v4611_v1 }
 0x6e4   :  { %v1308_v43 = vpop.f32.mrb[28].mxu1 }
 0x6e5   :  { %v3961_v59 = vpop.f32.mrb[29].mxu1 }
 0x6e6   :  { %v1311_v31 = vpop.f32.mrb[30].mxu1 }
 0x6e7   :  { %v1328_v53 = vpack.c.bf16 %v1311_v31, %v1308_v43  ;;  %v3962_v61 = vpop.f32.mrb[31].mxu1 }
 0x6e9   :  { %3976 = vmatmul.mubr.msk.bf16.gmra.mrb[52].mxu0 %vm230_vm2, %v1328_v53 }
 0x6ea   :  { %3979 = vmatprep.mubr.msk.bf16.mxu0 %vm4612_vm0, %v4611_v1 }
 0x701   :  { %v1316_v37 = vpop.f32.mrb[32].mxu1 }
 0x702   :  { %v1329_v42 = vpack.c.bf16 %v1316_v37, %v1316_v37  ;;  %v3965_v34 = vpop.f32.mrb[33].mxu1 }
 0x703   :  { %v1319_v2 = vpop.f32.mrb[34].mxu1 }
 0x704   :  { %v3966_v49 = vpop.f32.mrb[35].mxu1  ;;  %3980 = vmatmul.mubr.msk.bf16.gmra.mrb[56].mxu0 %vm230_vm2, %v1329_v42 }
 0x705   :  { %3987 = vmatprep.mubr.msk.bf16.mxu0 %vm4612_vm0, %v4611_v1 }
 0x7b4   :  { %v1389_v46 = vpop.f32.mrb[48].mxu0 }
 0x7b5   :  { %v1411_v50 = vadd.f32 %v1389_v46, %v4684_v11  ;;  %v3973_v27 = vpop.f32.mrb[49].mxu0  ;;  %v4329_v46 = vld [vmem:[%s6018_s1 + $0x50] sm:$0xff]  }
 0x7b6   :  { %v1392_v60 = vpop.f32.mrb[50].mxu0  ;;  %3984 = vmatpush3.bf16.msra.mxu0 %v4329_v46  ;;  %v4330_v27 = vld [vmem:[%s6018_s1 + $0x58] sm:$0xff]   ;;  %v4332_v46 = vld [vmem:[%s6018_s1 + $0x68] sm:$0xff]  }
 0x7b7   :  { %v5249_v4 = vadd.f32 %v3562_v16, %v1411_v50  ;;  %v1412_v17 = vadd.f32 %v1392_v60, %v4686_v14  ;;  %v3974_v15 = vpop.f32.mrb[51].mxu0  ;;  %3985 = vmatprep.subr.bf16.mxu0 %v4611_v1 }
 0x7b9   :  { %v5252_v13 = vadd.f32 %v3562_v16, %v1412_v17  ;;  %v1428_v5 = vsel %vm230_vm2, %v5249_v4, 0.0 }
 0x7ba   :  { %1429 = vadd.xlane.f32.xlu1 %v1428_v5  ;;  %3986 = vmatpush3.bf16.msra.mxu0 %v4330_v27 }
 0x7bb   :  { %v1431_v22 = vsel %vm230_vm2, %v5252_v13, 0.0  ;;  %4019 = vmatprep.subr.bf16.mxu0 %v4611_v1 }
 0x7bc   :  { %1432 = vadd.xlane.f32.xlu0 %v1431_v22  ;;  %v1397_v35 = vpop.f32.mrb[52].mxu0 }
 0x7bd   :  { %v1413_v11 = vadd.f32 %v1397_v35, %v4698_v21  ;;  %v3977_v10 = vpop.f32.mrb[53].mxu0 }
 0x7be   :  { %v1400_v40 = vpop.f32.mrb[54].mxu0 }
 0x7bf   :  { %v5259_v36 = vadd.f32 %v3562_v16, %v1413_v11  ;;  %v1414_v14 = vadd.f32 %v1400_v40, %v4700_v24  ;;  %v3978_v44 = vpop.f32.mrb[55].mxu0 }
 0x7c1   :  { %v5262_v52 = vadd.f32 %v3562_v16, %v1414_v14  ;;  %v1434_v48 = vsel %vm230_vm2, %v5259_v36, 0.0 }
 0x7c2   :  { %1435 = vadd.xlane.f32.xlu0 %v1434_v48 }
 0x7c3   :  { %v1437_v51 = vsel %vm230_vm2, %v5262_v52, 0.0 }
 0x7c6   :  { %1438 = vadd.xlane.f32.xlu0 %v1437_v51  ;;  %v3563_v51 = vld [vmem:[%s6019_s2 + $0x2c] ss:$0 sm:$0xff] }
 0x7d7   :  { %v1405_v6 = vpop.f32.mrb[56].mxu0 }
 0x7d8   :  { %v1415_v21 = vadd.f32 %v1405_v6, %v4709_v30  ;;  %v3981_v3 = vpop.f32.mrb[57].mxu0 }
 0x7d9   :  { %v1408_v32 = vpop.f32.mrb[58].mxu0 }
 0x7da   :  { %v5269_v39 = vadd.f32 %v3562_v16, %v1415_v21  ;;  %v3982_v20 = vpop.f32.mrb[59].mxu0 }
 0x7dc   :  { %v1440_v24 = vsel %vm243_vm3, %v5269_v39, 0.0 }
 0x7dd   :  { %1441 = vadd.xlane.f32.xlu0 %v1440_v24  ;;  %v3564_v24 = vld [vmem:[%s6019_s2 + $0x2d] ss:$0 sm:$0xff] }
 0x847   :  { %v1430_v62 = vpop.xlane.xlu1 %1429 }
 0x848   :  { %v1443_v38 = vmul.f32 0.03125, %v1430_v62 }
 0x849   :  { %v1433_v45 = vpop.xlane.xlu0 %1432 }
 0x84a   :  { %v1448_v7 = vsub.f32 %v5249_v4, %v1443_v38  ;;  %v1444_v63 = vmul.f32 0.03125, %v1433_v45 }
 0x84c   :  { %v1449_v47 = vsub.f32 %v5252_v13, %v1444_v63  ;;  %v1453_v8 = vmul.f32 %v1448_v7, %v1448_v7 }
 0x84e   :  { %v1458_v30 = vsel %vm230_vm2, %v1453_v8, 0.0  ;;  %v1454_v33 = vmul.f32 %v1449_v47, %v1449_v47 }
 0x84f   :  { %v1436_v56 = vpop.xlane.xlu0 %1435  ;;  %1459 = vadd.xlane.f32.xlu0 %v1458_v30 }
 0x850   :  { %v1445_v26 = vmul.f32 0.03125, %v1436_v56  ;;  %v1461_v12 = vsel %vm230_vm2, %v1454_v33, 0.0 }
 0x851   :  { %1462 = vadd.xlane.f32.xlu1 %v1461_v12 }
 0x852   :  { %v1450_v19 = vsub.f32 %v5259_v36, %v1445_v26 }
 0x853   :  { %v1439_v43 = vpop.xlane.xlu0 %1438 }
 0x854   :  { %v1446_v59 = vmul.f32 0.03125, %v1439_v43  ;;  %v1455_v31 = vmul.f32 %v1450_v19, %v1450_v19 }
 0x856   :  { %v1451_v53 = vsub.f32 %v5262_v52, %v1446_v59  ;;  %v1464_v61 = vsel %vm230_vm2, %v1455_v31, 0.0 }
 0x857   :  { %1465 = vadd.xlane.f32.xlu0 %v1464_v61 }
 0x858   :  { %v1456_v37 = vmul.f32 %v1451_v53, %v1451_v53 }
 0x85a   :  { %v1467_v42 = vsel %vm230_vm2, %v1456_v37, 0.0 }
 0x85b   :  { %1468 = vadd.xlane.f32.xlu1 %v1467_v42 }
 0x86a   :  { %v1442_v34 = vpop.xlane.xlu0 %1441 }
 0x86b   :  { %v1447_v2 = vmul.f32 0.03125, %v1442_v34 }
 0x86d   :  { %v1452_v49 = vsub.f32 %v5269_v39, %v1447_v2 }
 0x86f   :  { %v1457_v16 = vmul.f32 %v1452_v49, %v1452_v49 }
 0x871   :  { %v1470_v50 = vsel %vm243_vm3, %v1457_v16, 0.0  ;;  %v4334_v16 = vld [vmem:[%s6018_s1 + $0x78] sm:$0xff]  }
 0x872   :  { %1471 = vadd.xlane.f32.xlu0 %v1470_v50  ;;  %v5325_v50 = vld [vmem:[%s6019_s2 + $0x2e] ss:$0 sm:$0xff] }
 0x8dc   :  { %v1460_v60 = vpop.xlane.xlu0 %1459 }
 0x8dd   :  { %v1473_v17 = vmul.f32 0.03125, %v1460_v60 }
 0x8de   :  { %v1463_v15 = vpop.xlane.xlu1 %1462 }
 0x8df   :  { %v1478_v5 = vadd.f32 1e-05, %v1473_v17  ;;  %v1474_v22 = vmul.f32 0.03125, %v1463_v15 }
 0x8e1   :  { %4437 = vrsqrt.f32 %v1478_v5  ;;  %v1479_v35 = vadd.f32 1e-05, %v1474_v22 }
 0x8e3   :  { %4439 = vrsqrt.f32 %v1479_v35 }
 0x8e4   :  { %v1466_v11 = vpop.xlane.xlu0 %1465 }
 0x8e5   :  { %v1475_v10 = vmul.f32 0.03125, %v1466_v11 }
 0x8e7   :  { %v1480_v40 = vadd.f32 1e-05, %v1475_v10 }
 0x8e8   :  { %v1469_v14 = vpop.xlane.xlu1 %1468 }
 0x8e9   :  { %4441 = vrsqrt.f32 %v1480_v40  ;;  %v1476_v44 = vmul.f32 0.03125, %v1469_v14 }
 0x8eb   :  { %v4438_v48 = vpop.eup %4437  ;;  %v1481_v6 = vadd.f32 1e-05, %v1476_v44 }
 0x8ec   :  { %v1488_v21 = vmul.f32 %v4438_v48, %v1448_v7 }
 0x8ed   :  { %v4440_v3 = vpop.eup %4439  ;;  %4443 = vrsqrt.f32 %v1481_v6 }
 0x8ee   :  { %v1497_v32 = vmul.f32 %v3563_v51, %v1488_v21  ;;  %v1489_v20 = vmul.f32 %v4440_v3, %v1449_v47 }
 0x8f0   :  { %v1498_v62 = vmul.f32 %v3563_v51, %v1489_v20  ;;  %v1506_v38 = vadd.f32 %v3564_v24, %v1497_v32 }
 0x8f2   :  { %v1507_v45 = vadd.f32 %v3564_v24, %v1498_v62 }
 0x8f3   :  { %v4442_v63 = vpop.eup %4441 }
 0x8f4   :  { %v1490_v8 = vmul.f32 %v4442_v63, %v1450_v19  ;;  %v1511_v30 = vpack.c.bf16 %v1507_v45, %v1506_v38 }
 0x8f6   :  { %3988 = vmatmul.mubr.msk.bf16.vlgmr.msra.gmra.mrb[60].mxu0 %vm230_vm2, %v1511_v30  ;;  %v1499_v56 = vmul.f32 %v3563_v51, %v1490_v8 }
 0x8f7   :  { %v4444_v33 = vpop.eup %4443  ;;  %3991 = vmatprep.mubr.msk.bf16.mxu0 %vm4612_vm0, %v4611_v1 }
 0x8f8   :  { %v1491_v7 = vmul.f32 %v4444_v33, %v1451_v53  ;;  %v1508_v47 = vadd.f32 %v3564_v24, %v1499_v56  ;;  %v4331_v53 = vld [vmem:[%s6018_s1 + $0x60] sm:$0xff]  }
 0x8f9   :  { %4000 = vmatpush3.bf16.msra.mxu1 %v4331_v53 }
 0x8fa   :  { %v1500_v26 = vmul.f32 %v3563_v51, %v1491_v7  ;;  %4001 = vmatprep.subr.bf16.mxu1 %v4611_v1 }
 0x8fc   :  { %v1509_v12 = vadd.f32 %v3564_v24, %v1500_v26 }
 0x8fd   :  { %4002 = vmatpush3.bf16.msra.mxu1 %v4332_v46 }
 0x8fe   :  { %v1512_v43 = vpack.c.bf16 %v1509_v12, %v1508_v47  ;;  %4003 = vmatprep.subr.bf16.mxu1 %v4611_v1 }
 0x8ff   :  { %v1472_v59 = vpop.xlane.xlu0 %1471 }
 0x900   :  { %v1477_v31 = vmul.f32 0.03125, %v1472_v59  ;;  %3992 = vmatmul.mubr.msk.bf16.gmra.mrb[64].mxu0 %vm230_vm2, %v1512_v43 }
 0x901   :  { %3995 = vmatprep.mubr.msk.bf16.mxu0 %vm4612_vm0, %v4611_v1 }
 0x902   :  { %v1482_v19 = vadd.f32 1e-05, %v1477_v31 }
 0x904   :  { %4445 = vrsqrt.f32 %v1482_v19 }
 0x90e   :  { %v4446_v61 = vpop.eup %4445 }
 0x90f   :  { %v1492_v37 = vmul.f32 %v4446_v61, %v1452_v49  ;;  %v4333_v49 = vld [vmem:[%s6018_s1 + $0x70] sm:$0xff]  }
 0x910   :  { %4004 = vmatpush3.bf16.msra.mxu1 %v4333_v49 }
 0x911   :  { %v1501_v42 = vmul.f32 %v3563_v51, %v1492_v37  ;;  %4005 = vmatprep.subr.bf16.mxu1 %v4611_v1 }
 0x913   :  { %v1510_v34 = vadd.f32 %v3564_v24, %v1501_v42 }
 0x914   :  { %4006 = vmatpush3.bf16.msra.mxu1 %v4334_v16 }
 0x915   :  { %v1513_v2 = vpack.c.bf16 %v1510_v34, %v1510_v34  ;;  %4035 = vmatprep.subr.bf16.mxu1 %v4611_v1 }
 0x917   :  { %3996 = vmatmul.mubr.msk.bf16.gmra.mrb[68].mxu0 %vm230_vm2, %v1513_v2 }
 0x918   :  { %4023 = vmatprep.mubr.msk.bf16.mxu0 %vm4612_vm0, %v4611_v1 }
 0x9c9   :  { %v1578_v27 = vpop.f32.mrb[60].mxu0 }
 0x9ca   :  { %v5328_v60 = vadd.f32 %v5325_v50, %v1578_v27  ;;  %v3989_v17 = vpop.f32.mrb[61].mxu0 }
 0x9cb   :  { %v1581_v15 = vpop.f32.mrb[62].mxu0 }
 0x9cc   :  { %v5331_v5 = vmul.f32 0.70710677, %v5328_v60  ;;  %v5334_v22 = vadd.f32 %v5325_v50, %v1581_v15  ;;  %v3990_v35 = vpop.f32.mrb[63].mxu0 }
 0x9ce   :  { %v1615_v11 = vand.u32 2147483647, %v5331_v5  ;;  %v5338_v10 = vmul.f32 0.70710677, %v5334_v22  ;;  %vm1605_vm7 = vcmp.ge.f32.partialorder %v5331_v5, 0.0 }
 0x9d0   :  { %v1620_v40 = vmul.f32 0.3275911, %v1615_v11  ;;  %v1616_v14 = vand.u32 2147483647, %v5338_v10  ;;  %v1685_v63 = vsub.f32 0.0, %v1615_v11  ;;  %vm1606_vm8 = vcmp.ge.f32.partialorder %v5338_v10, 0.0 }
 0x9d2   :  { %v1625_v44 = vadd.f32 1.0, %v1620_v40  ;;  %v1621_v48 = vmul.f32 0.3275911, %v1616_v14  ;;  %v1686_v7 = vsub.f32 0.0, %v1616_v14  ;;  %v1690_v47 = vmul.f32 %v1685_v63, %v1615_v11 }
 0x9d3   :  { %v1586_v51 = vpop.f32.mrb[64].mxu0 }
 0x9d4   :  { %4447 = vrcp.f32 %v1625_v44  ;;  %v1626_v6 = vadd.f32 1.0, %v1621_v48  ;;  %v3993_v21 = vpop.f32.mrb[65].mxu0  ;;  %v5342_v3 = vadd.f32 %v5325_v50, %v1586_v51  ;;  %v1691_v19 = vmul.f32 %v1686_v7, %v1616_v14 }
 0x9d5   :  { %v1589_v32 = vpop.f32.mrb[66].mxu0  ;;  %v1695_v61 = vmul.f32 1.442695, %v1690_v47 }
 0x9d6   :  { %v5345_v20 = vadd.f32 %v5325_v50, %v1589_v32  ;;  %v3994_v24 = vpop.f32.mrb[67].mxu0  ;;  %4449 = vrcp.f32 %v1626_v6  ;;  %v5348_v62 = vmul.f32 0.70710677, %v5342_v3  ;;  %v1697_v46 = vmul.f32 1.442695, %v1691_v19 }
 0x9d8   :  { %v5351_v38 = vmul.f32 0.70710677, %v5345_v20  ;;  %v1617_v45 = vand.u32 2147483647, %v5348_v62  ;;  %vm1607_vm9 = vcmp.ge.f32.partialorder %v5348_v62, 0.0 }
 0x9da   :  { %v1618_v8 = vand.u32 2147483647, %v5351_v38  ;;  %v1622_v30 = vmul.f32 0.3275911, %v1617_v45  ;;  %v1687_v34 = vsub.f32 0.0, %v1617_v45  ;;  %vm1608_vm11 = vcmp.ge.f32.partialorder %v5351_v38, 0.0 }
 0x9dc   :  { %v1623_v33 = vmul.f32 0.3275911, %v1618_v8  ;;  %v1627_v56 = vadd.f32 1.0, %v1622_v30  ;;  %v1688_v16 = vsub.f32 0.0, %v1618_v8  ;;  %v1692_v17 = vmul.f32 %v1687_v34, %v1617_v45 }
 0x9de   :  { %v4448_v26 = vpop.eup %4447  ;;  %v1628_v12 = vadd.f32 1.0, %v1623_v33  ;;  %4451 = vrcp.f32 %v1627_v56  ;;  %v1693_v14 = vmul.f32 %v1688_v16, %v1618_v8  ;;  %v1699_v21 = vmul.f32 1.442695, %v1692_v17 }
 0x9df   :  { %v1640_v43 = vmul.f32 1.0614054, %v4448_v26 }
 0x9e0   :  { %4453 = vrcp.f32 %v1628_v12  ;;  %v4450_v59 = vpop.eup %4449 }
 0x9e1   :  { %v1645_v31 = vadd.f32 -1.4531521, %v1640_v43  ;;  %v1641_v37 = vmul.f32 1.0614054, %v4450_v59  ;;  %4455 = vpow2.f32 %v1695_v61 }
 0x9e2   :  { %4457 = vpow2.f32 %v1697_v46 }
 0x9e3   :  { %v1650_v42 = vmul.f32 %v4448_v26, %v1645_v31  ;;  %v1646_v2 = vadd.f32 -1.4531521, %v1641_v37  ;;  %v1701_v31 = vmul.f32 1.442695, %v1693_v14  ;;  %4459 = vpow2.f32 %v1699_v21 }
 0x9e5   :  { %v1655_v53 = vadd.f32 1.4214138, %v1650_v42  ;;  %v1651_v49 = vmul.f32 %v4450_v59, %v1646_v2  ;;  %4461 = vpow2.f32 %v1701_v31 }
 0x9e7   :  { %v1660_v27 = vmul.f32 %v4448_v26, %v1655_v53  ;;  %v1656_v15 = vadd.f32 1.4214138, %v1651_v49 }
 0x9e8   :  { %v4452_v35 = vpop.eup %4451 }
 0x9e9   :  { %v1665_v11 = vadd.f32 -0.28449672, %v1660_v27  ;;  %v1661_v44 = vmul.f32 %v4450_v59, %v1656_v15  ;;  %v1642_v48 = vmul.f32 1.0614054, %v4452_v35 }
 0x9ea   :  { %v4454_v40 = vpop.eup %4453  ;;  %v1594_v51 = vpop.f32.mrb[68].mxu0 }
 0x9eb   :  { %v1670_v6 = vmul.f32 %v4448_v26, %v1665_v11  ;;  %v1643_v32 = vmul.f32 1.0614054, %v4454_v40  ;;  %v5356_v24 = vadd.f32 %v5325_v50, %v1594_v51  ;;  %v3997_v63 = vpop.f32.mrb[69].mxu0  ;;  %v1666_v30 = vadd.f32 -0.28449672, %v1661_v44  ;;  %v4456_v42 = vpop.eup %4455 }
 0x9ec   :  { %v1647_v33 = vadd.f32 -1.4531521, %v1642_v48  ;;  %v1597_v7 = vpop.f32.mrb[70].mxu0  ;;  %v4458_v27 = vpop.eup %4457 }
 0x9ed   :  { %v1675_v45 = vadd.f32 0.2548296, %v1670_v6  ;;  %v1648_v56 = vadd.f32 -1.4531521, %v1643_v32  ;;  %v5359_v47 = vmul.f32 0.70710677, %v5356_v24  ;;  %v1671_v12 = vmul.f32 %v4450_v59, %v1666_v30 }
 0x9ee   :  { %v1652_v43 = vmul.f32 %v4452_v35, %v1647_v33  ;;  %v3998_v8 = vpop.f32.mrb[71].mxu0 }
 0x9ef   :  { %v1680_v19 = vmul.f32 %v4448_v26, %v1675_v45  ;;  %v1653_v61 = vmul.f32 %v4454_v40, %v1648_v56  ;;  %v1619_v37 = vand.u32 2147483647, %v5359_v47  ;;  %v1676_v50 = vadd.f32 0.2548296, %v1671_v12 }
 0x9f0   :  { %v1657_v34 = vadd.f32 1.4214138, %v1652_v43  ;;  %v4616_v26 = vmov -1.0   ;;  %v1720_v45 = vmul.f32 0.5, %v5328_v60  ;;  %v1721_v56 = vmul.f32 0.5, %v5334_v22  ;;  %v4460_v43 = vpop.eup %4459 }
 0x9f1   :  { %v1705_v2 = vmul.f32 %v4456_v42, %v1680_v19  ;;  %v1658_v53 = vadd.f32 1.4214138, %v1653_v61  ;;  %v1624_v46 = vmul.f32 0.3275911, %v1619_v37  ;;  %v1681_v49 = vmul.f32 %v4450_v59, %v1676_v50  ;;  %v4462_v19 = vpop.eup %4461 }
 0x9f2   :  { %v1662_v16 = vmul.f32 %v4452_v35, %v1657_v34  ;;  %v1610_v44 = vsel %vm1605_vm7, 1.0, %v4616_v26  ;;  %v1611_v59 = vsel %vm1606_vm8, 1.0, %v4616_v26  ;;  %v1689_v8 = vsub.f32 0.0, %v1619_v37 }
 0x9f3   :  { %v1710_v17 = vsub.f32 1.0, %v1705_v2  ;;  %v1663_v15 = vmul.f32 %v4454_v40, %v1658_v53  ;;  %v1629_v11 = vadd.f32 1.0, %v1624_v46  ;;  %v1706_v48 = vmul.f32 %v4458_v27, %v1681_v49 }
 0x9f4   :  { %v1667_v5 = vadd.f32 -0.28449672, %v1662_v16  ;;  %v1612_v60 = vsel %vm1607_vm9, 1.0, %v4616_v26  ;;  %v1694_v49 = vmul.f32 %v1689_v8, %v1619_v37  ;;  %vm1609_vm12 = vcmp.ge.f32.partialorder %v5359_v47, 0.0 }
 0x9f5   :  { %v1715_v14 = vmul.f32 %v1710_v17, %v1610_v44  ;;  %v1668_v51 = vadd.f32 -0.28449672, %v1663_v15  ;;  %4463 = vrcp.f32 %v1629_v11  ;;  %v1711_v6 = vsub.f32 1.0, %v1706_v48 }
 0x9f6   :  { %v1672_v21 = vmul.f32 %v4452_v35, %v1667_v5  ;;  %v1722_v17 = vmul.f32 0.5, %v5342_v3  ;;  %v1723_v15 = vmul.f32 0.5, %v5345_v20  ;;  %v1703_v44 = vmul.f32 1.442695, %v1694_v49 }
 0x9f7   :  { %v1673_v32 = vmul.f32 %v4454_v40, %v1668_v51  ;;  %v1725_v63 = vadd.f32 1.0, %v1715_v14  ;;  %v1716_v30 = vmul.f32 %v1711_v6, %v1611_v59 }
 0x9f8   :  { %v1677_v33 = vadd.f32 0.2548296, %v1672_v21  ;;  %4465 = vpow2.f32 %v1703_v44 }
 0x9f9   :  { %v1678_v7 = vadd.f32 0.2548296, %v1673_v32  ;;  %v1726_v12 = vadd.f32 1.0, %v1716_v30  ;;  %v1730_v61 = vmul.f32 %v1725_v63, %v1720_v45  ;;  %v1724_v45 = vmul.f32 0.5, %v5356_v24 }
 0x9fa   :  { %v1682_v10 = vmul.f32 %v4452_v35, %v1677_v33  ;;  %v1614_v33 = vsel %vm1609_vm12, 1.0, %v4616_v26 }
 0x9fb   :  { %v1683_v31 = vmul.f32 %v4454_v40, %v1678_v7  ;;  %v1731_v42 = vmul.f32 %v1726_v12, %v1721_v56  ;;  %v1613_v40 = vsel %vm1608_vm11, 1.0, %v4616_v26 }
 0x9fc   :  { %v1707_v50 = vmul.f32 %v4460_v43, %v1682_v10  ;;  %v3571_v43 = vld [vmem:[%s6019_s2 + $0x2f] ss:$0 sm:$0xff] }
 0x9fd   :  { %v1708_v34 = vmul.f32 %v4462_v19, %v1683_v31  ;;  %v1735_v2 = vpack.c.bf16 %v1731_v42, %v1730_v61 }
 0x9fe   :  { %v1712_v53 = vsub.f32 1.0, %v1707_v50 }
 0x9ff   :  { %v4464_v46 = vpop.eup %4463  ;;  %v1713_v22 = vsub.f32 1.0, %v1708_v34  ;;  %4008 = vmatmul.mubr.msk.bf16.vlgmr.msra.gmra.mrb[36].mxu1 %vm71_vm1, %v1735_v2 }
 0xa00   :  { %v1717_v35 = vmul.f32 %v1712_v53, %v1612_v60  ;;  %v1644_v16 = vmul.f32 1.0614054, %v4464_v46  ;;  %4011 = vmatprep.mubr.msk.bf16.mxu1 %vm4612_vm0, %v4611_v1 }
 0xa01   :  { %v1718_v27 = vmul.f32 %v1713_v22, %v1613_v40 }
 0xa02   :  { %v1727_v62 = vadd.f32 1.0, %v1717_v35  ;;  %v1649_v38 = vadd.f32 -1.4531521, %v1644_v16  ;;  %v4466_v63 = vpop.eup %4465 }
 0xa03   :  { %v1728_v11 = vadd.f32 1.0, %v1718_v27 }
 0xa04   :  { %v1654_v48 = vmul.f32 %v4464_v46, %v1649_v38  ;;  %v1732_v37 = vmul.f32 %v1727_v62, %v1722_v17 }
 0xa05   :  { %v1733_v5 = vmul.f32 %v1728_v11, %v1723_v15 }
 0xa06   :  { %v1659_v14 = vadd.f32 1.4214138, %v1654_v48 }
 0xa07   :  { %v1736_v51 = vpack.c.bf16 %v1733_v5, %v1732_v37 }
 0xa08   :  { %v1664_v6 = vmul.f32 %v4464_v46, %v1659_v14 }
 0xa09   :  { %4012 = vmatmul.mubr.msk.bf16.gmra.mrb[40].mxu1 %vm71_vm1, %v1736_v51 }
 0xa0a   :  { %v1669_v21 = vadd.f32 -0.28449672, %v1664_v6  ;;  %4015 = vmatprep.mubr.msk.bf16.mxu1 %vm4612_vm0, %v4611_v1 }
 0xa0c   :  { %v1674_v59 = vmul.f32 %v4464_v46, %v1669_v21 }
 0xa0e   :  { %v1679_v32 = vadd.f32 0.2548296, %v1674_v59 }
 0xa10   :  { %v1684_v3 = vmul.f32 %v4464_v46, %v1679_v32 }
 0xa12   :  { %v1709_v20 = vmul.f32 %v4466_v63, %v1684_v3 }
 0xa14   :  { %v1714_v30 = vsub.f32 1.0, %v1709_v20 }
 0xa16   :  { %v1719_v7 = vmul.f32 %v1714_v30, %v1614_v33 }
 0xa18   :  { %v1729_v56 = vadd.f32 1.0, %v1719_v7 }
 0xa1a   :  { %v1734_v12 = vmul.f32 %v1729_v56, %v1724_v45 }
 0xa1c   :  { %v1737_v10 = vpack.c.bf16 %v1734_v12, %v1734_v12 }
 0xa1e   :  { %4016 = vmatmul.mubr.msk.bf16.gmra.mrb[44].mxu1 %vm71_vm1, %v1737_v10 }
 0xa1f   :  { %4041 = vmatprep.mubr.msk.bf16.mxu1 %vm4612_vm0, %v4611_v1 }
 0xad2   :  { %v1818_v47 = vpop.f32.mrb[36].mxu1 }
 0xad3   :  { %v1819_v31 = vadd.f32 %v3571_v43, %v1818_v47  ;;  %v4009_v8 = vpop.f32.mrb[37].mxu1 }
 0xad4   :  { %v1821_v19 = vpop.f32.mrb[38].mxu1  ;;  %v4335_v8 = vld [vmem:[%s6018_s1 + $0x80] sm:$0xff]  }
 0xad5   :  { %v5390_v61 = vadd.f32 %v1819_v31, %v5249_v4  ;;  %v1822_v24 = vadd.f32 %v3571_v43, %v1821_v19  ;;  %v4010_v42 = vpop.f32.mrb[39].mxu1  ;;  %4020 = vmatpush3.bf16.msra.mxu0 %v4335_v8  ;;  %v4336_v19 = vld [vmem:[%s6018_s1 + $0x88] sm:$0xff]  }
 0xad6   :  { %4021 = vmatprep.subr.bf16.mxu0 %v4611_v1 }
 0xad7   :  { %v5393_v50 = vadd.f32 %v1822_v24, %v5252_v13  ;;  %v1847_v34 = vsel %vm230_vm2, %v5390_v61, 0.0 }
 0xad8   :  { %1848 = vadd.xlane.f32.xlu1 %v1847_v34 }
 0xad9   :  { %v1850_v2 = vsel %vm230_vm2, %v5393_v50, 0.0  ;;  %4022 = vmatpush3.bf16.msra.mxu0 %v4336_v19 }
 0xada   :  { %1851 = vadd.xlane.f32.xlu0 %v1850_v2  ;;  %4053 = vmatprep.subr.bf16.mxu0 %v4611_v1 }
 0xadc   :  { %v1826_v53 = vpop.f32.mrb[40].mxu1 }
 0xadd   :  { %v1827_v46 = vadd.f32 %v3571_v43, %v1826_v53  ;;  %v4013_v60 = vpop.f32.mrb[41].mxu1 }
 0xade   :  { %v1829_v22 = vpop.f32.mrb[42].mxu1 }
 0xadf   :  { %v5400_v4 = vadd.f32 %v1827_v46, %v5259_v36  ;;  %v1830_v49 = vadd.f32 %v3571_v43, %v1829_v22  ;;  %v4014_v35 = vpop.f32.mrb[43].mxu1 }
 0xae1   :  { %v5403_v13 = vadd.f32 %v1830_v49, %v5262_v52  ;;  %v1853_v40 = vsel %vm230_vm2, %v5400_v4, 0.0 }
 0xae2   :  { %1854 = vadd.xlane.f32.xlu1 %v1853_v40 }
 0xae3   :  { %v1856_v16 = vsel %vm230_vm2, %v5403_v13, 0.0 }
 0xae4   :  { %1857 = vadd.xlane.f32.xlu0 %v1856_v16 }
 0xaf1   :  { %v1834_v27 = vpop.f32.mrb[44].mxu1 }
 0xaf2   :  { %v1835_v62 = vadd.f32 %v3571_v43, %v1834_v27  ;;  %v4017_v38 = vpop.f32.mrb[45].mxu1 }
 0xaf3   :  { %v1837_v17 = vpop.f32.mrb[46].mxu1 }
 0xaf4   :  { %v5410_v36 = vadd.f32 %v1835_v62, %v5269_v39  ;;  %v4018_v15 = vpop.f32.mrb[47].mxu1  ;;  %v3579_v62 = vld [vmem:[%s6019_s2 + $0x30] ss:$0 sm:$0xff] }
 0xaf6   :  { %v1859_v52 = vsel %vm243_vm3, %v5410_v36, 0.0 }
 0xaf7   :  { %1860 = vadd.xlane.f32.xlu1 %v1859_v52 }
 0xb65   :  { %v1849_v11 = vpop.xlane.xlu1 %1848 }
 0xb66   :  { %v1862_v44 = vmul.f32 0.03125, %v1849_v11  ;;  %v3580_v11 = vld [vmem:[%s6019_s2 + $0x31] ss:$0 sm:$0xff] }
 0xb67   :  { %v1852_v48 = vpop.xlane.xlu0 %1851 }
 0xb68   :  { %v1867_v37 = vsub.f32 %v5390_v61, %v1862_v44  ;;  %v1863_v5 = vmul.f32 0.03125, %v1852_v48 }
 0xb6a   :  { %v1868_v14 = vsub.f32 %v5393_v50, %v1863_v5  ;;  %v1872_v51 = vmul.f32 %v1867_v37, %v1867_v37 }
 0xb6c   :  { %v1877_v6 = vsel %vm230_vm2, %v1872_v51, 0.0  ;;  %v1873_v21 = vmul.f32 %v1868_v14, %v1868_v14 }
 0xb6d   :  { %1878 = vadd.xlane.f32.xlu0 %v1877_v6 }
 0xb6e   :  { %v1880_v59 = vsel %vm230_vm2, %v1873_v21, 0.0 }
 0xb6f   :  { %v1855_v39 = vpop.xlane.xlu1 %1854  ;;  %1881 = vadd.xlane.f32.xlu1 %v1880_v59 }
 0xb70   :  { %v1864_v32 = vmul.f32 0.03125, %v1855_v39 }
 0xb71   :  { %v1858_v3 = vpop.xlane.xlu0 %1857 }
 0xb72   :  { %v1869_v63 = vsub.f32 %v5400_v4, %v1864_v32  ;;  %v1865_v20 = vmul.f32 0.03125, %v1858_v3 }
 0xb74   :  { %v1870_v30 = vsub.f32 %v5403_v13, %v1865_v20  ;;  %v1874_v33 = vmul.f32 %v1869_v63, %v1869_v63 }
 0xb76   :  { %v1883_v7 = vsel %vm230_vm2, %v1874_v33, 0.0  ;;  %v1875_v45 = vmul.f32 %v1870_v30, %v1870_v30 }
 0xb77   :  { %1884 = vadd.xlane.f32.xlu0 %v1883_v7 }
 0xb78   :  { %v1886_v56 = vsel %vm230_vm2, %v1875_v45, 0.0 }
 0xb79   :  { %1887 = vadd.xlane.f32.xlu1 %v1886_v56 }
 0xb84   :  { %v1861_v12 = vpop.xlane.xlu1 %1860 }
 0xb85   :  { %v1866_v10 = vmul.f32 0.03125, %v1861_v12 }
 0xb87   :  { %v1871_v43 = vsub.f32 %v5410_v36, %v1866_v10 }
 0xb89   :  { %v1876_v47 = vmul.f32 %v1871_v43, %v1871_v43 }
 0xb8b   :  { %v1889_v31 = vsel %vm243_vm3, %v1876_v47, 0.0  ;;  %v3581_v47 = vld [vmem:[%s6019_s2 + $0x32] ss:$0 sm:$0xff] }
 0xb8c   :  { %1890 = vadd.xlane.f32.xlu0 %v1889_v31 }
 0xbfa   :  { %v1879_v24 = vpop.xlane.xlu0 %1878 }
 0xbfb   :  { %v1892_v42 = vmul.f32 0.03125, %v1879_v24 }
 0xbfc   :  { %v1882_v34 = vpop.xlane.xlu1 %1881 }
 0xbfd   :  { %v1897_v2 = vadd.f32 1e-05, %v1892_v42  ;;  %v1893_v53 = vmul.f32 0.03125, %v1882_v34 }
 0xbff   :  { %4467 = vrsqrt.f32 %v1897_v2  ;;  %v1898_v46 = vadd.f32 1e-05, %v1893_v53 }
 0xc01   :  { %4469 = vrsqrt.f32 %v1898_v46 }
 0xc04   :  { %v1885_v60 = vpop.xlane.xlu0 %1884 }
 0xc05   :  { %v1894_v22 = vmul.f32 0.03125, %v1885_v60 }
 0xc06   :  { %v1888_v49 = vpop.xlane.xlu1 %1887 }
 0xc07   :  { %v1899_v35 = vadd.f32 1e-05, %v1894_v22  ;;  %v1895_v40 = vmul.f32 0.03125, %v1888_v49 }
 0xc09   :  { %4471 = vrsqrt.f32 %v1899_v35  ;;  %v1900_v16 = vadd.f32 1e-05, %v1895_v40  ;;  %v4468_v27 = vpop.eup %4467 }
 0xc0a   :  { %v1907_v38 = vmul.f32 %v4468_v27, %v1867_v37 }
 0xc0b   :  { %4473 = vrsqrt.f32 %v1900_v16  ;;  %v4470_v17 = vpop.eup %4469 }
 0xc0c   :  { %v1916_v15 = vmul.f32 %v3579_v62, %v1907_v38  ;;  %v1908_v52 = vmul.f32 %v4470_v17, %v1868_v14 }
 0xc0e   :  { %v1917_v44 = vmul.f32 %v3579_v62, %v1908_v52  ;;  %v1925_v48 = vadd.f32 %v3580_v11, %v1916_v15 }
 0xc10   :  { %v1926_v5 = vadd.f32 %v3580_v11, %v1917_v44 }
 0xc12   :  { %v1930_v6 = vpack.c.bf16 %v1926_v5, %v1925_v48 }
 0xc13   :  { %v4472_v51 = vpop.eup %4471 }
 0xc14   :  { %v1909_v21 = vmul.f32 %v4472_v51, %v1869_v63  ;;  %4024 = vmatmul.mubr.msk.bf16.vlgmr.msra.gmra.mrb[72].mxu0 %vm230_vm2, %v1930_v6 }
 0xc15   :  { %v4474_v39 = vpop.eup %4473  ;;  %4027 = vmatprep.mubr.msk.bf16.mxu0 %vm4612_vm0, %v4611_v1 }
 0xc16   :  { %v1910_v59 = vmul.f32 %v4474_v39, %v1870_v30  ;;  %v1918_v37 = vmul.f32 %v3579_v62, %v1909_v21 }
 0xc18   :  { %v1919_v32 = vmul.f32 %v3579_v62, %v1910_v59  ;;  %v1927_v20 = vadd.f32 %v3580_v11, %v1918_v37 }
 0xc19   :  { %v1891_v14 = vpop.xlane.xlu0 %1890 }
 0xc1a   :  { %v1896_v3 = vmul.f32 0.03125, %v1891_v14  ;;  %v1928_v33 = vadd.f32 %v3580_v11, %v1919_v32 }
 0xc1c   :  { %v1901_v7 = vadd.f32 1e-05, %v1896_v3  ;;  %v1931_v45 = vpack.c.bf16 %v1928_v33, %v1927_v20 }
 0xc1e   :  { %4475 = vrsqrt.f32 %v1901_v7  ;;  %4028 = vmatmul.mubr.msk.bf16.gmra.mrb[76].mxu0 %vm230_vm2, %v1931_v45 }
 0xc1f   :  { %4031 = vmatprep.mubr.msk.bf16.mxu0 %vm4612_vm0, %v4611_v1 }
 0xc28   :  { %v4476_v63 = vpop.eup %4475 }
 0xc29   :  { %v1911_v56 = vmul.f32 %v4476_v63, %v1871_v43 }
 0xc2b   :  { %v1920_v30 = vmul.f32 %v3579_v62, %v1911_v56 }
 0xc2d   :  { %v1929_v12 = vadd.f32 %v3580_v11, %v1920_v30 }
 0xc2f   :  { %v1932_v10 = vpack.c.bf16 %v1929_v12, %v1929_v12 }
 0xc31   :  { %4032 = vmatmul.mubr.msk.bf16.gmra.mrb[80].mxu0 %vm230_vm2, %v1932_v10 }
 0xc32   :  { %4059 = vmatprep.mubr.msk.bf16.mxu0 %vm4612_vm0, %v4611_v1 }
 0xce7   :  { %v1997_v31 = vpop.f32.mrb[72].mxu0 }
 0xce8   :  { %v4025_v8 = vpop.f32.mrb[73].mxu0  ;;  %v1998_v24 = vadd.f32 %v3581_v47, %v1997_v31 }
 0xce9   :  { %v2000_v19 = vpop.f32.mrb[74].mxu0 }
 0xcea   :  { %v2001_v42 = vadd.f32 %v3581_v47, %v2000_v19  ;;  %v4026_v34 = vpop.f32.mrb[75].mxu0 }
 0xcec   :  { %v5450_v2 = vpack.c.bf16 %v2001_v42, %v1998_v24 }
 0xcee   :  { %2028 = vrot.lane.b32.xlu1 %v5450_v2, %s4613_s18  ;;  %v2315_v40 = vmul.bf16 %v5450_v2, %v4793_v18  ;;  %v2022_v21 = vmul.bf16 %v5450_v2, %v4760_v57  ;;  %v2179_v39 = vmul.bf16 %v5450_v2, %v4780_v9  ;;  %v2476_v45 = vmul.bf16 %v5450_v2, %v4767_v0 }
 0xcef   :  { %v2699_v63 = vmul.bf16 %v5450_v2, %v4806_v25 }
 0xcf1   :  { %v2005_v43 = vpop.f32.mrb[76].mxu0 }
 0xcf2   :  { %v4029_v53 = vpop.f32.mrb[77].mxu0  ;;  %v2006_v60 = vadd.f32 %v3581_v47, %v2005_v43 }
 0xcf3   :  { %v2008_v46 = vpop.f32.mrb[78].mxu0 }
 0xcf4   :  { %v2009_v22 = vadd.f32 %v3581_v47, %v2008_v46  ;;  %v4030_v49 = vpop.f32.mrb[79].mxu0 }
 0xcf6   :  { %v5454_v35 = vpack.c.bf16 %v2009_v22, %v2006_v60 }
 0xcf8   :  { %2030 = vrot.lane.b32.xlu0 %v5454_v35, %s4613_s18  ;;  %v2316_v11 = vmul.bf16 %v5454_v35, %v4793_v18  ;;  %v2023_v14 = vmul.bf16 %v5454_v35, %v4760_v57  ;;  %v2180_v3 = vmul.bf16 %v5454_v35, %v4780_v9  ;;  %v2700_v56 = vmul.bf16 %v5454_v35, %v4806_v25 }
 0xcfc   :  { %2321 = vrot.lane.b32.xlu0 %v2315_v40, %s4614_s19 }
 0xd04   :  { %v2013_v16 = vpop.f32.mrb[80].mxu0 }
 0xd05   :  { %v2014_v27 = vadd.f32 %v3581_v47, %v2013_v16  ;;  %v4033_v62 = vpop.f32.mrb[81].mxu0 }
 0xd06   :  { %v2016_v38 = vpop.f32.mrb[82].mxu0 }
 0xd07   :  { %v5461_v17 = vpack.c.bf16 %v2014_v27, %v2014_v27  ;;  %v4034_v15 = vpop.f32.mrb[83].mxu0 }
 0xd09   :  { %2032 = vrot.lane.b32.xlu1 %v5461_v17, %s4613_s18  ;;  %v2317_v52 = vmul.bf16 %v5461_v17, %v4793_v18  ;;  %v2024_v33 = vmul.bf16 %v5461_v17, %v4760_v57  ;;  %v2181_v7 = vmul.bf16 %v5461_v17, %v4780_v9  ;;  %v2477_v57 = vmul.bf16 %v5454_v35, %v4767_v0 }
 0xd0a   :  { %v2478_v9 = vmul.bf16 %v5461_v17, %v4767_v0  ;;  %v2701_v0 = vmul.bf16 %v5461_v17, %v4806_v25 }
 0xd0b   :  { %2325 = vrot.lane.b32.xlu0 %v2317_v52, %s4614_s19 }
 0xd0d   :  { %2323 = vrot.lane.b32.xlu1 %v2316_v11, %s4614_s19 }
 0xd60   :  { %v2029_v44 = vpop.permute.xlu1 %2028 }
 0xd61   :  { %v2044_v48 = vsel %vm230_vm2, %v2029_v44, 0 }
 0xd62   :  { %4036 = vmatpush3.bf16.xpose.msra.mxu1 %v2044_v48  ;;  %4054 = vmatpush3.bf16.xpose.msra.mxu0 %v2044_v48 }
 0xd63   :  { %4037 = vmatprep.subr.bf16.mxu1 %v4611_v1  ;;  %4055 = vmatprep.subr.bf16.mxu0 %v4611_v1 }
 0xd6a   :  { %v2031_v5 = vpop.permute.xlu0 %2030 }
 0xd6b   :  { %v2047_v51 = vsel %vm230_vm2, %v2031_v5, 0 }
 0xd6c   :  { %4038 = vmatpush3.bf16.xpose.msra.mxu1 %v2047_v51  ;;  %4056 = vmatpush3.bf16.xpose.msra.mxu0 %v2047_v51 }
 0xd6d   :  { %4039 = vmatprep.subr.bf16.mxu1 %v4611_v1  ;;  %4057 = vmatprep.subr.bf16.mxu0 %v4611_v1 }
 0xd6e   :  { %v2322_v59 = vpop.permute.xlu0 %2321 }
 0xd7b   :  { %v2033_v18 = vpop.permute.xlu1 %2032 }
 0xd7c   :  { %v2050_v6 = vsel %vm230_vm2, %v2033_v18, 0 }
 0xd7d   :  { %4040 = vmatpush3.bf16.xpose.msra.mxu1 %v2050_v6  ;;  %4058 = vmatpush3.bf16.xpose.msra.mxu0 %v2050_v6  ;;  %v2326_v32 = vpop.permute.xlu0 %2325 }
 0xd7e   :  { %4071 = vmatprep.subr.bf16.mxu1 %v4611_v1  ;;  %4107 = vmatprep.subr.bf16.mxu0 %v4611_v1  ;;  %v2339_v20 = vsel %vm734_vm14, %v2326_v32, 0 }
 0xd7f   :  { %v2324_v37 = vpop.permute.xlu1 %2323 }
 0xd84   :  { %4042 = vmatmul.mubr.msk.bf16.vlgmr.msra.gmra.mrb[48].mxu1 %vm230_vm2, %v2022_v21  ;;  %4060 = vmatmul.mubr.msk.bf16.vlgmr.msra.gmra.mrb[84].mxu0 %vm230_vm2, %v2179_v39 }
 0xd85   :  { %4072 = vmatpush3.bf16.msra.mxu1 %v2322_v59  ;;  %4108 = vmatpush3.bf16.xpose.msra.mxu0 %v2044_v48 }
 0xd86   :  { %4073 = vmatprep.subr.bf16.mxu1 %v4611_v1  ;;  %4045 = vmatprep.mubr.msk.bf16.mxu1 %vm4612_vm0, %v4611_v1 }
 0xd87   :  { %4063 = vmatprep.mubr.msk.bf16.mxu0 %vm4612_vm0, %v4611_v1  ;;  %4109 = vmatprep.subr.bf16.mxu0 %v4611_v1 }
 0xd89   :  { %4074 = vmatpush3.bf16.msra.mxu1 %v2324_v37 }
 0xd8a   :  { %4075 = vmatprep.subr.bf16.mxu1 %v4611_v1 }
 0xd8c   :  { %4046 = vmatmul.mubr.msk.bf16.gmra.mrb[52].mxu1 %vm230_vm2, %v2023_v14  ;;  %4064 = vmatmul.mubr.msk.bf16.gmra.mrb[88].mxu0 %vm230_vm2, %v2180_v3 }
 0xd8d   :  { %4076 = vmatpush3.bf16.msra.mxu1 %v2339_v20  ;;  %4110 = vmatpush3.bf16.xpose.msra.mxu0 %v2047_v51 }
 0xd8e   :  { %4049 = vmatprep.mubr.msk.bf16.mxu1 %vm4612_vm0, %v4611_v1  ;;  %4067 = vmatprep.mubr.msk.bf16.mxu0 %vm4612_vm0, %v4611_v1 }
 0xd8f   :  { %4111 = vmatprep.subr.bf16.mxu0 %v4611_v1  ;;  %4089 = vmatprep.subr.bf16.mxu1 %v4611_v1 }
 0xd94   :  { %4050 = vmatmul.mubr.msk.bf16.gmra.mrb[56].mxu1 %vm230_vm2, %v2024_v33  ;;  %4068 = vmatmul.mubr.msk.bf16.gmra.mrb[92].mxu0 %vm230_vm2, %v2181_v7 }
 0xd95   :  { %4112 = vmatpush3.bf16.xpose.msra.mxu0 %v2050_v6  ;;  %4113 = vmatprep.mubr.msk.bf16.mxu0 %vm4612_vm0, %v4611_v1 }
 0xd96   :  { %4143 = vmatprep.subr.bf16.mxu0 %v4611_v1  ;;  %4077 = vmatprep.mubr.msk.bf16.mxu1 %vm4612_vm0, %v4611_v1 }
 0xd9c   :  { %4114 = vmatmul.mubr.msk.bf16.vlgmr.msra.gmra.mrb[96].mxu0 %vm230_vm2, %v2476_v45 }
 0xd9d   :  { %4144 = vmatpush3.bf16.xpose.msra.mxu0 %v2044_v48  ;;  %4117 = vmatprep.mubr.msk.bf16.mxu0 %vm4612_vm0, %v4611_v1 }
 0xd9e   :  { %4145 = vmatprep.subr.bf16.mxu0 %v4611_v1 }
 0xda4   :  { %4118 = vmatmul.mubr.msk.bf16.gmra.mrb[100].mxu0 %vm230_vm2, %v2477_v57 }
 0xda5   :  { %4146 = vmatpush3.bf16.xpose.msra.mxu0 %v2047_v51  ;;  %4121 = vmatprep.mubr.msk.bf16.mxu0 %vm4612_vm0, %v4611_v1 }
 0xda6   :  { %4147 = vmatprep.subr.bf16.mxu0 %v4611_v1 }
 0xdac   :  { %4122 = vmatmul.mubr.msk.bf16.gmra.mrb[104].mxu0 %vm230_vm2, %v2478_v9 }
 0xdad   :  { %4148 = vmatpush3.bf16.xpose.msra.mxu0 %v2050_v6  ;;  %4149 = vmatprep.mubr.msk.bf16.mxu0 %vm4612_vm0, %v4611_v1 }
 0xdae   :  { %4179 = vmatprep.subr.bf16.mxu0 %v4611_v1 }
 0xdb4   :  { %4150 = vmatmul.mubr.msk.bf16.vlgmr.msra.gmra.mrb[108].mxu0 %vm230_vm2, %v2699_v63 }
 0xdb5   :  { %4153 = vmatprep.mubr.msk.bf16.mxu0 %vm4612_vm0, %v4611_v1 }
 0xdbc   :  { %4154 = vmatmul.mubr.msk.bf16.gmra.mrb[112].mxu0 %vm230_vm2, %v2700_v56 }
 0xdbd   :  { %4157 = vmatprep.mubr.msk.bf16.mxu0 %vm4612_vm0, %v4611_v1 }
 0xdc4   :  { %4158 = vmatmul.mubr.msk.bf16.gmra.mrb[116].mxu0 %vm230_vm2, %v2701_v0 }
 0xdc5   :  { %4183 = vmatprep.mubr.msk.bf16.mxu0 %vm4612_vm0, %v4611_v1 }
 0xe57   :  { %v2086_v30 = vpop.f32.mrb[48].mxu1  ;;  %v2225_v12 = vpop.f32.mrb[84].mxu0 }
 0xe58   :  { %v2108_v10 = vmul.f32 0.35355338, %v2086_v30  ;;  %v2247_v47 = vmul.f32 0.35355338, %v2225_v12  ;;  %v4043_v31 = vpop.f32.mrb[49].mxu1  ;;  %v4061_v8 = vpop.f32.mrb[85].mxu0 }
 0xe59   :  { %v2089_v19 = vpop.f32.mrb[50].mxu1  ;;  %v2228_v24 = vpop.f32.mrb[86].mxu0  ;;  %v2176_v31 = vmul.bf16 %v5450_v2, %v4802_v23 }
 0xe5a   :  { %v2109_v42 = vmul.f32 0.35355338, %v2089_v19  ;;  %v2248_v34 = vmul.f32 0.35355338, %v2228_v24  ;;  %v4044_v43 = vpop.f32.mrb[51].mxu1  ;;  %v4062_v53 = vpop.f32.mrb[87].mxu0  ;;  %v5551_v46 = vadd.f32 %v2247_v47, %v4896_v54  ;;  %v5554_v25 = vadd.f32 %v2108_v10, %v4896_v54 }
 0xe5b   :  { %v2177_v24 = vmul.bf16 %v5454_v35, %v4802_v23 }
 0xe5c   :  { %v2257_v60 = vsel %vm504_vm10, %v5551_v46, -inf  ;;  %v5559_v22 = vadd.f32 %v2248_v34, %v4896_v54  ;;  %v5562_v49 = vadd.f32 %v2109_v42, %v4896_v54  ;;  %v2118_v62 = vsel %vm504_vm10, %v5554_v25, -inf }
 0xe5d   :  { %2258 = vmax.xlane.f32.xlu1 %v2257_v60  ;;  %v2178_v34 = vmul.bf16 %v5461_v17, %v4802_v23 }
 0xe5e   :  { %v2260_v40 = vsel %vm504_vm10, %v5559_v22, -inf  ;;  %v2121_v39 = vsel %vm504_vm10, %v5562_v49, -inf }
 0xe5f   :  { %v2094_v16 = vpop.f32.mrb[52].mxu1  ;;  %2261 = vmax.xlane.f32.xlu0 %v2260_v40  ;;  %v2233_v27 = vpop.f32.mrb[88].mxu0 }
 0xe60   :  { %v2110_v38 = vmul.f32 0.35355338, %v2094_v16  ;;  %v2249_v15 = vmul.f32 0.35355338, %v2233_v27  ;;  %v4047_v52 = vpop.f32.mrb[53].mxu1  ;;  %v4065_v11 = vpop.f32.mrb[89].mxu0 }
 0xe61   :  { %v2097_v44 = vpop.f32.mrb[54].mxu1  ;;  %2119 = vmax.xlane.f32.xlu1 %v2118_v62  ;;  %v2236_v48 = vpop.f32.mrb[90].mxu0 }
 0xe62   :  { %v5569_v5 = vadd.f32 %v2110_v38, %v4936_v28  ;;  %v5572_v51 = vadd.f32 %v2249_v15, %v4936_v28  ;;  %v2250_v18 = vmul.f32 0.35355338, %v2236_v48  ;;  %v4048_v6 = vpop.f32.mrb[55].mxu1  ;;  %v4066_v21 = vpop.f32.mrb[91].mxu0 }
 0xe63   :  { %2122 = vmax.xlane.f32.xlu0 %v2121_v39 }
 0xe64   :  { %v5577_v59 = vadd.f32 %v2250_v18, %v4938_v29  ;;  %v2124_v37 = vsel %vm504_vm10, %v5569_v5, -inf  ;;  %v2263_v32 = vsel %vm504_vm10, %v5572_v51, -inf  ;;  %v2111_v18 = vmul.f32 0.35355338, %v2097_v44 }
 0xe65   :  { %2125 = vmax.xlane.f32.xlu1 %v2124_v37 }
 0xe66   :  { %v2266_v7 = vsel %vm504_vm10, %v5577_v59, -inf }
 0xe67   :  { %v2102_v14 = vpop.f32.mrb[56].mxu1  ;;  %2264 = vmax.xlane.f32.xlu0 %v2263_v32  ;;  %v2241_v3 = vpop.f32.mrb[92].mxu0 }
 0xe68   :  { %v4051_v20 = vpop.f32.mrb[57].mxu1  ;;  %v4069_v33 = vpop.f32.mrb[93].mxu0  ;;  %v2112_v48 = vmul.f32 0.35355338, %v2102_v14 }
 0xe69   :  { %v2105_v45 = vpop.f32.mrb[58].mxu1  ;;  %2267 = vmax.xlane.f32.xlu1 %v2266_v7  ;;  %v2244_v57 = vpop.f32.mrb[94].mxu0  ;;  %v5600_v20 = vadd.f32 %v2111_v18, %v4938_v29  ;;  %v2251_v33 = vmul.f32 0.35355338, %v2241_v3 }
 0xe6a   :  { %v4052_v9 = vpop.f32.mrb[59].mxu1  ;;  %v4070_v63 = vpop.f32.mrb[95].mxu0  ;;  %v5597_v23 = vadd.f32 %v2112_v48, %v4958_v55 }
 0xe6b   :  { %v5608_v14 = vadd.f32 %v2251_v33, %v4958_v55  ;;  %v2127_v9 = vsel %vm504_vm10, %v5600_v20, -inf }
 0xe6c   :  { %v2130_v44 = vsel %vm517_vm4, %v5597_v23, -inf }
 0xe6f   :  { %v2522_v56 = vpop.f32.mrb[96].mxu0 }
 0xe70   :  { %v4115_v0 = vpop.f32.mrb[97].mxu0  ;;  %v2544_v57 = vmul.f32 0.35355338, %v2522_v56 }
 0xe71   :  { %v2525_v30 = vpop.f32.mrb[98].mxu0 }
 0xe72   :  { %v4116_v12 = vpop.f32.mrb[99].mxu0  ;;  %v2545_v39 = vmul.f32 0.35355338, %v2525_v30  ;;  %v5618_v30 = vadd.f32 %v2544_v57, %v4896_v54 }
 0xe74   :  { %v5603_v7 = vadd.f32 %v2545_v39, %v4896_v54 }
 0xe76   :  { %v2557_v0 = vsel %vm504_vm10, %v5603_v7, -inf }
 0xe77   :  { %v2530_v10 = vpop.f32.mrb[100].mxu0 }
 0xe78   :  { %v4119_v47 = vpop.f32.mrb[101].mxu0  ;;  %v2546_v12 = vmul.f32 0.35355338, %v2530_v10 }
 0xe79   :  { %v2533_v8 = vpop.f32.mrb[102].mxu0  ;;  %v2269_v47 = vsel %vm517_vm4, %v5608_v14, -inf }
 0xe7a   :  { %2400 = vrot.lane.b32.xlu1 %v2176_v31, %s4614_s19  ;;  %v4120_v19 = vpop.f32.mrb[103].mxu0  ;;  %v2547_v45 = vmul.f32 0.35355338, %v2533_v8 }
 0xe7b   :  { %v5628_v19 = vadd.f32 %v2546_v12, %v4936_v28 }
 0xe7c   :  { %v5613_v63 = vadd.f32 %v2547_v45, %v4938_v29 }
 0xe7d   :  { %2402 = vrot.lane.b32.xlu0 %v2177_v24, %s4614_s19 }
 0xe7e   :  { %v2563_v8 = vsel %vm504_vm10, %v5613_v63, -inf }
 0xe7f   :  { %v2538_v42 = vpop.f32.mrb[104].mxu0 }
 0xe80   :  { %v4123_v43 = vpop.f32.mrb[105].mxu0  ;;  %v2548_v24 = vmul.f32 0.35355338, %v2538_v42 }
 0xe81   :  { %2404 = vrot.lane.b32.xlu0 %v2178_v34, %s4614_s19  ;;  %v2541_v53 = vpop.f32.mrb[106].mxu0  ;;  %v2554_v34 = vsel %vm504_vm10, %v5618_v30, -inf }
 0xe82   :  { %v4124_v60 = vpop.f32.mrb[107].mxu0  ;;  %v5638_v53 = vadd.f32 %v2548_v24, %v4958_v55 }
 0xe87   :  { %v2745_v40 = vpop.f32.mrb[108].mxu0 }
 0xe88   :  { %v4151_v16 = vpop.f32.mrb[109].mxu0  ;;  %v2767_v3 = vmul.f32 0.35355338, %v2745_v40  ;;  %v2560_v40 = vsel %vm504_vm10, %v5628_v19, -inf }
 0xe89   :  { %v2748_v27 = vpop.f32.mrb[110].mxu0 }
 0xe8a   :  { %v4152_v62 = vpop.f32.mrb[111].mxu0  ;;  %v5623_v56 = vadd.f32 %v2767_v3, %v4896_v54  ;;  %v2768_v60 = vmul.f32 0.35355338, %v2748_v27 }
 0xe8b   :  { %v2566_v62 = vsel %vm517_vm4, %v5638_v53, -inf }
 0xe8c   :  { %v2777_v43 = vsel %vm504_vm10, %v5623_v56, -inf  ;;  %v5645_v16 = vadd.f32 %v2768_v60, %v4896_v54 }
 0xe8e   :  { %v2780_v27 = vsel %vm504_vm10, %v5645_v16, -inf }
 0xe8f   :  { %v2753_v38 = vpop.f32.mrb[112].mxu0 }
 0xe90   :  { %v4155_v15 = vpop.f32.mrb[113].mxu0  ;;  %v2769_v31 = vmul.f32 0.35355338, %v2753_v38 }
 0xe91   :  { %v2756_v52 = vpop.f32.mrb[114].mxu0 }
 0xe92   :  { %v4156_v11 = vpop.f32.mrb[115].mxu0  ;;  %v5633_v10 = vadd.f32 %v2769_v31, %v4936_v28  ;;  %v2770_v28 = vmul.f32 0.35355338, %v2756_v52 }
 0xe94   :  { %v2783_v42 = vsel %vm504_vm10, %v5633_v10, -inf  ;;  %v5650_v38 = vadd.f32 %v2770_v28, %v4938_v29 }
 0xe96   :  { %v2786_v15 = vsel %vm504_vm10, %v5650_v38, -inf }
 0xe97   :  { %v5594_v6 = vpop.f32.mrb[116].mxu0 }
 0xe98   :  { %v4159_v21 = vpop.f32.mrb[117].mxu0 }
 0xe99   :  { %v2764_v37 = vpop.f32.mrb[118].mxu0 }
 0xe9a   :  { %v4160_v32 = vpop.f32.mrb[119].mxu0 }
 0xe9e   :  { %2131 = vmax.xlane.f32.xlu1 %v2130_v44 }
 0xea0   :  { %2128 = vmax.xlane.f32.xlu0 %v2127_v9 }
 0xea2   :  { %2558 = vmax.xlane.f32.xlu1 %v2557_v0 }
 0xea4   :  { %2270 = vmax.xlane.f32.xlu0 %v2269_v47 }
 0xea6   :  { %2564 = vmax.xlane.f32.xlu1 %v2563_v8 }
 0xea8   :  { %2555 = vmax.xlane.f32.xlu0 %v2554_v34 }
 0xeaa   :  { %2778 = vmax.xlane.f32.xlu1 %v2777_v43 }
 0xeac   :  { %2561 = vmax.xlane.f32.xlu0 %v2560_v40 }
 0xeae   :  { %2784 = vmax.xlane.f32.xlu1 %v2783_v42 }
 0xeb0   :  { %2567 = vmax.xlane.f32.xlu0 %v2566_v62  ;;  %v2613_v62 = vmul.bf16 %v5454_v35, %v4882_v41 }
 0xeb4   :  { %2781 = vmax.xlane.f32.xlu0 %v2780_v27  ;;  %v2614_v27 = vmul.bf16 %v5461_v17, %v4882_v41 }
 0xeb8   :  { %2787 = vmax.xlane.f32.xlu0 %v2786_v15 }
 0xeea   :  { %v2259_v11 = vpop.xlane.xlu1 %2258 }
 0xeeb   :  { %v2272_v54 = vsub.f32 %v5551_v46, %v2259_v11 }
 0xeec   :  { %v2262_v48 = vpop.xlane.xlu0 %2261 }
 0xeed   :  { %v2277_v52 = vmul.f32 1.442695, %v2272_v54  ;;  %v2273_v18 = vsub.f32 %v5559_v22, %v2262_v48 }
 0xeee   :  { %v2120_v21 = vpop.xlane.xlu1 %2119 }
 0xeef   :  { %4477 = vpow2.f32 %v2277_v52  ;;  %v2279_v39 = vmul.f32 1.442695, %v2273_v18  ;;  %v2133_v29 = vsub.f32 %v5554_v25, %v2120_v21 }
 0xef0   :  { %v2123_v37 = vpop.xlane.xlu0 %2122 }
 0xef1   :  { %4479 = vpow2.f32 %v2279_v39  ;;  %v2138_v32 = vmul.f32 1.442695, %v2133_v29  ;;  %v2134_v33 = vsub.f32 %v5562_v49, %v2123_v37 }
 0xef2   :  { %v2126_v45 = vpop.xlane.xlu1 %2125 }
 0xef3   :  { %4481 = vpow2.f32 %v2138_v32  ;;  %v2140_v44 = vmul.f32 1.442695, %v2134_v33  ;;  %v2135_v57 = vsub.f32 %v5569_v5, %v2126_v45 }
 0xef4   :  { %v2265_v46 = vpop.xlane.xlu0 %2264 }
 0xef5   :  { %4483 = vpow2.f32 %v2140_v44  ;;  %v2274_v9 = vsub.f32 %v5572_v51, %v2265_v46  ;;  %v2142_v22 = vmul.f32 1.442695, %v2135_v57 }
 0xef6   :  { %v2268_v3 = vpop.xlane.xlu1 %2267 }
 0xef7   :  { %v2281_v0 = vmul.f32 1.442695, %v2274_v9  ;;  %v2275_v12 = vsub.f32 %v5577_v59, %v2268_v3  ;;  %v2612_v9 = vmul.bf16 %v5450_v2, %v4882_v41  ;;  %v2835_v3 = vmul.bf16 %v5450_v2, %v5033_v58 }
 0xef8   :  { %v5697_v15 = vpop.permute.xlu0 %2402 }
 0xef9   :  { %v5663_v25 = vpop.eup %4477  ;;  %4485 = vpow2.f32 %v2281_v0  ;;  %v2283_v47 = vmul.f32 1.442695, %v2275_v12 }
 0xefa   :  { %4487 = vpow2.f32 %v2142_v22  ;;  %v2287_v49 = vsel %vm504_vm10, %v5663_v25, 0.0 }
 0xefb   :  { %v5667_v31 = vpop.eup %4479  ;;  %4489 = vpow2.f32 %v2283_v47  ;;  %2288 = vadd.xlane.f32.xlu1 %v2287_v49 }
 0xefc   :  { %v2290_v5 = vsel %vm504_vm10, %v5667_v31, 0.0  ;;  %v5699_v11 = vpop.permute.xlu0 %2404 }
 0xefd   :  { %v5671_v51 = vpop.eup %4481  ;;  %2291 = vadd.xlane.f32.xlu0 %v2290_v5 }
 0xefe   :  { %v2148_v59 = vsel %vm504_vm10, %v5671_v51, 0.0 }
 0xeff   :  { %v5675_v8 = vpop.eup %4483  ;;  %2149 = vadd.xlane.f32.xlu1 %v2148_v59 }
 0xf00   :  { %v2151_v24 = vsel %vm504_vm10, %v5675_v8, 0.0 }
 0xf01   :  { %2152 = vadd.xlane.f32.xlu0 %v2151_v24 }
 0xf03   :  { %v5679_v34 = vpop.eup %4485 }
 0xf04   :  { %v5681_v43 = vpop.eup %4487  ;;  %v2293_v60 = vsel %vm504_vm10, %v5679_v34, 0.0 }
 0xf05   :  { %v5685_v40 = vpop.eup %4489  ;;  %2294 = vadd.xlane.f32.xlu1 %v2293_v60  ;;  %v2154_v28 = vsel %vm504_vm10, %v5681_v43, 0.0 }
 0xf06   :  { %v2296_v42 = vsel %vm504_vm10, %v5685_v40, 0.0 }
 0xf07   :  { %2297 = vadd.xlane.f32.xlu0 %v2296_v42 }
 0xf09   :  { %2155 = vadd.xlane.f32.xlu1 %v2154_v28 }
 0xf1d   :  { %2620 = vrot.lane.b32.xlu0 %v2613_v62, %s4614_s19 }
 0xf21   :  { %2622 = vrot.lane.b32.xlu0 %v2614_v27, %s4614_s19 }
 0xf2d   :  { %v2129_v54 = vpop.xlane.xlu0 %2128 }
 0xf2e   :  { %v2136_v48 = vsub.f32 %v5600_v20, %v2129_v54 }
 0xf30   :  { %v2144_v52 = vmul.f32 1.442695, %v2136_v48 }
 0xf31   :  { %v2271_v18 = vpop.xlane.xlu0 %2270 }
 0xf32   :  { %4491 = vpow2.f32 %v2144_v52  ;;  %v2276_v21 = vsub.f32 %v5608_v14, %v2271_v18 }
 0xf34   :  { %v2285_v39 = vmul.f32 1.442695, %v2276_v21 }
 0xf35   :  { %v2556_v29 = vpop.xlane.xlu0 %2555 }
 0xf36   :  { %4493 = vpow2.f32 %v2285_v39  ;;  %v2569_v37 = vsub.f32 %v5618_v30, %v2556_v29  ;;  %v5716_v30 = vpop.permute.xlu1 %2400 }
 0xf38   :  { %v2574_v32 = vmul.f32 1.442695, %v2569_v37 }
 0xf39   :  { %v2562_v24 = vpop.xlane.xlu0 %2561 }
 0xf3a   :  { %4495 = vpow2.f32 %v2574_v32  ;;  %v2132_v46 = vpop.xlane.xlu1 %2131  ;;  %v2571_v42 = vsub.f32 %v5628_v19, %v2562_v24 }
 0xf3b   :  { %v2137_v12 = vsub.f32 %v5597_v23, %v2132_v46 }
 0xf3c   :  { %v5704_v33 = vpop.eup %4491  ;;  %v2578_v62 = vmul.f32 1.442695, %v2571_v42 }
 0xf3d   :  { %v2157_v45 = vsel %vm504_vm10, %v5704_v33, 0.0  ;;  %v2146_v5 = vmul.f32 1.442695, %v2137_v12  ;;  %v2568_v28 = vpop.xlane.xlu0 %2567 }
 0xf3e   :  { %2158 = vadd.xlane.f32.xlu1 %v2157_v45  ;;  %v2559_v22 = vpop.xlane.xlu1 %2558  ;;  %v2573_v23 = vsub.f32 %v5638_v53, %v2568_v28 }
 0xf3f   :  { %v2570_v49 = vsub.f32 %v5603_v7, %v2559_v22  ;;  %4497 = vpow2.f32 %v2146_v5 }
 0xf40   :  { %v5708_v44 = vpop.eup %4493 }
 0xf41   :  { %v2299_v20 = vsel %vm517_vm4, %v5708_v44, 0.0  ;;  %v2576_v60 = vmul.f32 1.442695, %v2570_v49  ;;  %v2782_v7 = vpop.xlane.xlu0 %2781 }
 0xf42   :  { %2300 = vadd.xlane.f32.xlu1 %v2299_v20  ;;  %v2565_v0 = vpop.xlane.xlu1 %2564  ;;  %v2793_v48 = vsub.f32 %v5645_v16, %v2782_v7 }
 0xf43   :  { %4499 = vpow2.f32 %v2576_v60  ;;  %v2572_v2 = vsub.f32 %v5613_v63, %v2565_v0  ;;  %v2837_v60 = vmul.bf16 %v5461_v17, %v5033_v58 }
 0xf44   :  { %v5712_v14 = vpop.eup %4495  ;;  %v2799_v53 = vmul.f32 1.442695, %v2793_v48 }
 0xf45   :  { %v2584_v57 = vsel %vm504_vm10, %v5712_v14, 0.0  ;;  %v2580_v27 = vmul.f32 1.442695, %v2572_v2  ;;  %v2788_v39 = vpop.xlane.xlu0 %2787 }
 0xf46   :  { %2585 = vadd.xlane.f32.xlu0 %v2584_v57  ;;  %v2779_v47 = vpop.xlane.xlu1 %2778  ;;  %v2795_v45 = vsub.f32 %v5650_v38, %v2788_v39 }
 0xf47   :  { %v2792_v59 = vsub.f32 %v5623_v56, %v2779_v47  ;;  %v2582_v56 = vmul.f32 1.442695, %v2573_v23 }
 0xf48   :  { %v2803_v57 = vmul.f32 1.442695, %v2795_v45 }
 0xf49   :  { %v2797_v41 = vmul.f32 1.442695, %v2792_v59  ;;  %v5730_v54 = vpop.eup %4497 }
 0xf4a   :  { %v2785_v19 = vpop.xlane.xlu1 %2784  ;;  %v2160_v18 = vsel %vm517_vm4, %v5730_v54, 0.0 }
 0xf4b   :  { %4501 = vpow2.f32 %v2797_v41  ;;  %v2794_v21 = vsub.f32 %v5633_v10, %v2785_v19 }
 0xf4c   :  { %4503 = vpow2.f32 %v2578_v62 }
 0xf4d   :  { %4505 = vpow2.f32 %v2580_v27  ;;  %v5733_v52 = vpop.eup %4499  ;;  %v2801_v32 = vmul.f32 1.442695, %v2794_v21 }
 0xf4e   :  { %4507 = vpow2.f32 %v2582_v56  ;;  %v2587_v29 = vsel %vm504_vm10, %v5733_v52, 0.0 }
 0xf4f   :  { %4509 = vpow2.f32 %v2799_v53 }
 0xf50   :  { %4511 = vpow2.f32 %v2801_v32 }
 0xf51   :  { %4513 = vpow2.f32 %v2803_v57 }
 0xf53   :  { %2618 = vrot.lane.b32.xlu1 %v2612_v9, %s4614_s19 }
 0xf55   :  { %v5737_v63 = vpop.eup %4501 }
 0xf56   :  { %v2807_v16 = vsel %vm504_vm10, %v5737_v63, 0.0  ;;  %v5744_v37 = vpop.eup %4503 }
 0xf57   :  { %v2590_v10 = vsel %vm504_vm10, %v5744_v37, 0.0  ;;  %v5749_v20 = vpop.eup %4505 }
 0xf58   :  { %v2593_v46 = vsel %vm504_vm10, %v5749_v20, 0.0  ;;  %v5753_v9 = vpop.eup %4507 }
 0xf59   :  { %v2596_v22 = vsel %vm517_vm4, %v5753_v9, 0.0 }
 0xf5c   :  { %2841 = vrot.lane.b32.xlu0 %v2835_v3, %s4614_s19  ;;  %v5757_v3 = vpop.eup %4509 }
 0xf5d   :  { %v2810_v12 = vsel %vm504_vm10, %v5757_v3, 0.0  ;;  %v5761_v47 = vpop.eup %4511 }
 0xf5e   :  { %v2813_v59 = vsel %vm504_vm10, %v5761_v47, 0.0  ;;  %v5765_v24 = vpop.eup %4513 }
 0xf5f   :  { %v2816_v42 = vsel %vm504_vm10, %v5765_v24, 0.0 }
 0xf77   :  { %2161 = vadd.xlane.f32.xlu1 %v2160_v18 }
 0xf7b   :  { %2588 = vadd.xlane.f32.xlu1 %v2587_v29  ;;  %2808 = vadd.xlane.f32.xlu0 %v2807_v16 }
 0xf7f   :  { %2591 = vadd.xlane.f32.xlu1 %v2590_v10 }
 0xf83   :  { %2594 = vadd.xlane.f32.xlu1 %v2593_v46 }
 0xf87   :  { %2597 = vadd.xlane.f32.xlu1 %v2596_v22 }
 0xf88   :  { %v2289_v38 = vpop.xlane.xlu1 %2288 }
 0xf89   :  { %4515 = vrcp.f32 %v2289_v38 }
 0xf8a   :  { %v2292_v0 = vpop.xlane.xlu0 %2291 }
 0xf8b   :  { %4517 = vrcp.f32 %v2292_v0  ;;  %2811 = vadd.xlane.f32.xlu1 %v2810_v12 }
 0xf8c   :  { %v2150_v49 = vpop.xlane.xlu1 %2149 }
 0xf8d   :  { %4519 = vrcp.f32 %v2150_v49 }
 0xf8e   :  { %v2153_v5 = vpop.xlane.xlu0 %2152 }
 0xf8f   :  { %4521 = vrcp.f32 %v2153_v5  ;;  %2814 = vadd.xlane.f32.xlu1 %v2813_v59 }
 0xf91   :  { %2845 = vrot.lane.b32.xlu0 %v2837_v60, %s4614_s19 }
 0xf92   :  { %v2295_v41 = vpop.xlane.xlu1 %2294 }
 0xf93   :  { %v4516_v28 = vpop.eup %4515  ;;  %4523 = vrcp.f32 %v2295_v41  ;;  %2817 = vadd.xlane.f32.xlu1 %v2816_v42 }
 0xf94   :  { %v2298_v2 = vpop.xlane.xlu0 %2297  ;;  %v2303_v27 = vmul.f32 %v4516_v28, %v5663_v25 }
 0xf95   :  { %v4518_v62 = vpop.eup %4517  ;;  %4525 = vrcp.f32 %v2298_v2 }
 0xf96   :  { %v2305_v23 = vmul.f32 %v4518_v62, %v5667_v31 }
 0xf97   :  { %v4520_v7 = vpop.eup %4519 }
 0xf98   :  { %v2312_v56 = vpack.c.bf16 %v2305_v23, %v2303_v27  ;;  %v2164_v17 = vmul.f32 %v4520_v7, %v5671_v51 }
 0xf99   :  { %v4522_v48 = vpop.eup %4521 }
 0xf9a   :  { %v2166_v19 = vmul.f32 %v4522_v48, %v5675_v8  ;;  %4078 = vmatmul.mubr.msk.bf16.vlgmr.msra.gmra.mrb[60].mxu1 %vm504_vm10, %v2312_v56  ;;  %v2418_v8 = vsel %vm734_vm14, %v5699_v11, 0 }
 0xf9b   :  { %4090 = vmatpush3.bf16.msra.mxu1 %v5716_v30  ;;  %4081 = vmatprep.mubr.msk.bf16.mxu1 %vm4612_vm0, %v4611_v1  ;;  %v2836_v30 = vmul.bf16 %v5454_v35, %v5033_v58  ;;  %v2156_v58 = vpop.xlane.xlu1 %2155 }
 0xf9c   :  { %v2173_v18 = vpack.c.bf16 %v2166_v19, %v2164_v17  ;;  %4091 = vmatprep.subr.bf16.mxu1 %v4611_v1 }
 0xf9d   :  { %v4524_v25 = vpop.eup %4523 }
 0xf9e   :  { %v2307_v31 = vmul.f32 %v4524_v25, %v5679_v34  ;;  %v2771_v34 = vmul.f32 0.35355338, %v5594_v6  ;;  %v2621_v6 = vpop.permute.xlu0 %2620 }
 0xf9f   :  { %v4526_v21 = vpop.eup %4525  ;;  %4092 = vmatpush3.bf16.msra.mxu1 %v5697_v15 }
 0xfa0   :  { %4093 = vmatprep.subr.bf16.mxu1 %v4611_v1  ;;  %v2309_v51 = vmul.f32 %v4526_v21, %v5685_v40  ;;  %v5796_v40 = vadd.f32 %v2771_v34, %v4958_v55 }
 0xfa2   :  { %v2313_v53 = vpack.c.bf16 %v2309_v51, %v2307_v31  ;;  %v2789_v15 = vsel %vm517_vm4, %v5796_v40, -inf  ;;  %v2623_v57 = vpop.permute.xlu0 %2622 }
 0xfa3   :  { %4094 = vmatpush3.bf16.msra.mxu1 %v2418_v8  ;;  %v2636_v22 = vsel %vm734_vm14, %v2623_v57, 0 }
 0xfa4   :  { %2843 = vrot.lane.b32.xlu1 %v2836_v30, %s4614_s19  ;;  %4082 = vmatmul.mubr.msk.bf16.gmra.mrb[64].mxu1 %vm504_vm10, %v2313_v53 }
 0xfa5   :  { %4085 = vmatprep.mubr.msk.bf16.mxu1 %vm4612_vm0, %v4611_v1  ;;  %4125 = vmatprep.subr.bf16.mxu1 %v4611_v1 }
 0xfb0   :  { %2790 = vmax.xlane.f32.xlu0 %v2789_v15 }
 0xfcb   :  { %v2159_v35 = vpop.xlane.xlu1 %2158 }
 0xfcf   :  { %v2301_v11 = vpop.xlane.xlu1 %2300 }
 0xfd0   :  { %4527 = vrcp.f32 %v2301_v11 }
 0xfd1   :  { %4529 = vrcp.f32 %v2159_v35 }
 0xfd2   :  { %4531 = vrcp.f32 %v2156_v58 }
 0xfd3   :  { %v2619_v32 = vpop.permute.xlu1 %2618 }
 0xfda   :  { %v4528_v39 = vpop.eup %4527 }
 0xfdb   :  { %v2311_v29 = vmul.f32 %v4528_v39, %v5708_v44  ;;  %v4530_v55 = vpop.eup %4529 }
 0xfdc   :  { %v4532_v45 = vpop.eup %4531  ;;  %v2170_v44 = vmul.f32 %v4530_v55, %v5704_v33  ;;  %v2586_v33 = vpop.xlane.xlu0 %2585 }
 0xfdd   :  { %v2314_v16 = vpack.c.bf16 %v2311_v29, %v2311_v29  ;;  %v2168_v10 = vmul.f32 %v4532_v45, %v5681_v43 }
 0xfdf   :  { %4086 = vmatmul.mubr.msk.bf16.gmra.mrb[68].mxu1 %vm504_vm10, %v2314_v16  ;;  %v2174_v46 = vpack.c.bf16 %v2170_v44, %v2168_v10 }
 0xfe0   :  { %4095 = vmatprep.mubr.msk.bf16.mxu1 %vm4612_vm0, %v4611_v1 }
 0xfe7   :  { %4096 = vmatmul.mubr.msk.bf16.vlgmr.msra.gmra.mrb[60].mxu1 %vm504_vm10, %v2173_v18 }
 0xfe8   :  { %4126 = vmatpush3.bf16.msra.mxu1 %v2619_v32  ;;  %4099 = vmatprep.mubr.msk.bf16.mxu1 %vm4612_vm0, %v4611_v1 }
 0xfe9   :  { %4127 = vmatprep.subr.bf16.mxu1 %v4611_v1 }
 0xfec   :  { %4128 = vmatpush3.bf16.msra.mxu1 %v2621_v6 }
 0xfed   :  { %4129 = vmatprep.subr.bf16.mxu1 %v4611_v1 }
 0xfef   :  { %4100 = vmatmul.mubr.msk.bf16.gmra.mrb[64].mxu1 %vm504_vm10, %v2174_v46 }
 0xff0   :  { %4130 = vmatpush3.bf16.msra.mxu1 %v2636_v22  ;;  %4103 = vmatprep.mubr.msk.bf16.mxu1 %vm4612_vm0, %v4611_v1 }
 0xff1   :  { %4161 = vmatprep.subr.bf16.mxu1 %v4611_v1 }
0x1004   :  { %v2162_v38 = vpop.xlane.xlu1 %2161 }
0x1005   :  { %4533 = vrcp.f32 %v2162_v38 }
0x1008   :  { %v2589_v0 = vpop.xlane.xlu1 %2588 }
0x1009   :  { %4535 = vrcp.f32 %v2589_v0 }
0x100a   :  { %4537 = vrcp.f32 %v2586_v33 }
0x100c   :  { %v2592_v43 = vpop.xlane.xlu1 %2591 }
0x100f   :  { %v4534_v12 = vpop.eup %4533 }
0x1010   :  { %v2595_v49 = vpop.xlane.xlu1 %2594  ;;  %v2172_v5 = vmul.f32 %v4534_v12, %v5730_v54  ;;  %v2842_v54 = vpop.permute.xlu0 %2841 }
0x1011   :  { %4539 = vrcp.f32 %v2595_v49 }
0x1012   :  { %v2175_v59 = vpack.c.bf16 %v2172_v5, %v2172_v5  ;;  %4541 = vrcp.f32 %v2592_v43 }
0x1013   :  { %v4536_v60 = vpop.eup %4535 }
0x1014   :  { %v2598_v41 = vpop.xlane.xlu1 %2597  ;;  %4104 = vmatmul.mubr.msk.bf16.gmra.mrb[68].mxu1 %vm504_vm10, %v2175_v59  ;;  %v4538_v42 = vpop.eup %4537  ;;  %v2602_v28 = vmul.f32 %v4536_v60, %v5733_v52 }
0x1015   :  { %4131 = vmatprep.mubr.msk.bf16.mxu1 %vm4612_vm0, %v4611_v1  ;;  %v2600_v2 = vmul.f32 %v4538_v42, %v5712_v14  ;;  %4543 = vrcp.f32 %v2598_v41  ;;  %v2809_v52 = vpop.xlane.xlu0 %2808  ;;  %v3616_v42 = vld [vmem:[%s6019_s2 + $0x33] ss:$0 sm:$0xff] }
0x1017   :  { %v2609_v27 = vpack.c.bf16 %v2602_v28, %v2600_v2 }
0x1018   :  { %v2812_v62 = vpop.xlane.xlu1 %2811 }
0x1019   :  { %4545 = vrcp.f32 %v2812_v62  ;;  %v2846_v21 = vpop.permute.xlu0 %2845 }
0x101a   :  { %4547 = vrcp.f32 %v2809_v52  ;;  %v2859_v31 = vsel %vm734_vm14, %v2846_v21, 0 }
0x101b   :  { %v4540_v23 = vpop.eup %4539 }
0x101c   :  { %v2815_v7 = vpop.xlane.xlu1 %2814  ;;  %4132 = vmatmul.mubr.msk.bf16.vlgmr.msra.gmra.mrb[60].mxu1 %vm504_vm10, %v2609_v27  ;;  %v4542_v56 = vpop.eup %4541  ;;  %v2606_v48 = vmul.f32 %v4540_v23, %v5749_v20 }
0x101d   :  { %4162 = vmatpush3.bf16.msra.mxu1 %v2842_v54  ;;  %4135 = vmatprep.mubr.msk.bf16.mxu1 %vm4612_vm0, %v4611_v1  ;;  %v2604_v14 = vmul.f32 %v4542_v56, %v5744_v37 }
0x101e   :  { %4163 = vmatprep.subr.bf16.mxu1 %v4611_v1 }
0x101f   :  { %v2610_v19 = vpack.c.bf16 %v2606_v48, %v2604_v14  ;;  %v4544_v18 = vpop.eup %4543 }
0x1020   :  { %v2818_v17 = vpop.xlane.xlu1 %2817  ;;  %v2608_v20 = vmul.f32 %v4544_v18, %v5753_v9 }
0x1021   :  { %4549 = vrcp.f32 %v2818_v17 }
0x1022   :  { %v2611_v37 = vpack.c.bf16 %v2608_v20, %v2608_v20  ;;  %4551 = vrcp.f32 %v2815_v7 }
0x1023   :  { %v4546_v51 = vpop.eup %4545 }
0x1024   :  { %v2844_v25 = vpop.permute.xlu1 %2843  ;;  %4136 = vmatmul.mubr.msk.bf16.gmra.mrb[64].mxu1 %vm504_vm10, %v2610_v19  ;;  %v4548_v8 = vpop.eup %4547  ;;  %v2825_v30 = vmul.f32 %v4546_v51, %v5757_v3 }
0x1025   :  { %4164 = vmatpush3.bf16.msra.mxu1 %v2844_v25  ;;  %4139 = vmatprep.mubr.msk.bf16.mxu1 %vm4612_vm0, %v4611_v1  ;;  %v2823_v53 = vmul.f32 %v4548_v8, %v5737_v63 }
0x1026   :  { %4165 = vmatprep.subr.bf16.mxu1 %v4611_v1 }
0x1027   :  { %v2832_v9 = vpack.c.bf16 %v2825_v30, %v2823_v53 }
0x1029   :  { %4166 = vmatpush3.bf16.msra.mxu1 %v2859_v31 }
0x102a   :  { %4211 = vmatprep.subr.bf16.mxu1 %v4611_v1 }
0x102b   :  { %v4550_v34 = vpop.eup %4549 }
0x102c   :  { %4140 = vmatmul.mubr.msk.bf16.gmra.mrb[68].mxu1 %vm504_vm10, %v2611_v37  ;;  %v4552_v15 = vpop.eup %4551  ;;  %v2829_v58 = vmul.f32 %v4550_v34, %v5765_v24  ;;  %v4337_v24 = vld [vmem:[%s6018_s1 + $0x90] sm:$0xff]  }
0x102d   :  { %4167 = vmatprep.mubr.msk.bf16.mxu1 %vm4612_vm0, %v4611_v1  ;;  %v2827_v35 = vmul.f32 %v4552_v15, %v5761_v47  ;;  %4180 = vmatpush3.bf16.msra.mxu0 %v4337_v24  ;;  %v4338_v47 = vld [vmem:[%s6018_s1 + $0x98] sm:$0xff]  }
0x102e   :  { %4181 = vmatprep.subr.bf16.mxu0 %v4611_v1 }
0x102f   :  { %v2833_v11 = vpack.c.bf16 %v2829_v58, %v2827_v35 }
0x1031   :  { %4182 = vmatpush3.bf16.msra.mxu0 %v4338_v47 }
0x1032   :  { %4195 = vmatprep.subr.bf16.mxu0 %v4611_v1 }
0x1034   :  { %4168 = vmatmul.mubr.msk.bf16.vlgmr.msra.gmra.mrb[60].mxu1 %vm504_vm10, %v2832_v9 }
0x1035   :  { %4171 = vmatprep.mubr.msk.bf16.mxu1 %vm4612_vm0, %v4611_v1 }
0x103c   :  { %4172 = vmatmul.mubr.msk.bf16.gmra.mrb[64].mxu1 %vm504_vm10, %v2833_v11 }
0x103d   :  { %v2791_v39 = vpop.xlane.xlu0 %2790  ;;  %4175 = vmatprep.mubr.msk.bf16.mxu1 %vm4612_vm0, %v4611_v1 }
0x103e   :  { %v2796_v63 = vsub.f32 %v5796_v40, %v2791_v39 }
0x1040   :  { %v2805_v3 = vmul.f32 1.442695, %v2796_v63 }
0x1042   :  { %4553 = vpow2.f32 %v2805_v3 }
0x104c   :  { %v4554_v29 = vpop.eup %4553 }
0x104d   :  { %v2819_v16 = vsel %vm517_vm4, %v4554_v29, 0.0 }
0x104e   :  { %2820 = vadd.xlane.f32.xlu1 %v2819_v16 }
0x10db   :  { %v2821_v40 = vpop.xlane.xlu1 %2820 }
0x10dc   :  { %4555 = vrcp.f32 %v2821_v40 }
0x10e6   :  { %v4556_v55 = vpop.eup %4555 }
0x10e7   :  { %v2831_v6 = vmul.f32 %v4556_v55, %v4554_v29 }
0x10e9   :  { %v2834_v32 = vpack.c.bf16 %v2831_v6, %v2831_v6 }
0x10eb   :  { %4176 = vmatmul.mubr.msk.bf16.gmra.mrb[68].mxu1 %vm504_vm10, %v2834_v32 }
0x10ec   :  { %4219 = vmatprep.mubr.msk.bf16.mxu1 %vm4612_vm0, %v4611_v1 }
0x1107   :  { %v2895_v45 = vpop.f32.mrb[60].mxu1 }
0x1108   :  { %v4169_v44 = vpop.f32.mrb[61].mxu1 }
0x1109   :  { %v2898_v10 = vpop.f32.mrb[62].mxu1 }
0x110a   :  { %v2922_v57 = vpack.c.bf16 %v2898_v10, %v2895_v45  ;;  %v4170_v46 = vpop.f32.mrb[63].mxu1  ;;  %v4339_v10 = vld [vmem:[%s6018_s1 + $0xa0] sm:$0xff]  }
0x110c   :  { %4184 = vmatmul.mubr.msk.bf16.vlgmr.msra.gmra.mrb[120].mxu0 %vm230_vm2, %v2922_v57  ;;  %v4340_v57 = vld [vmem:[%s6018_s1 + $0xa8] sm:$0xff]  }
0x110d   :  { %4187 = vmatprep.mubr.msk.bf16.mxu0 %vm4612_vm0, %v4611_v1  ;;  %4196 = vmatpush3.bf16.msra.mxu0 %v4339_v10 }
0x110e   :  { %4197 = vmatprep.subr.bf16.mxu0 %v4611_v1 }
0x110f   :  { %v2903_v22 = vpop.f32.mrb[64].mxu1 }
0x1110   :  { %v4173_v38 = vpop.f32.mrb[65].mxu1 }
0x1111   :  { %v2906_v33 = vpop.f32.mrb[66].mxu1  ;;  %4198 = vmatpush3.bf16.msra.mxu0 %v4340_v57 }
0x1112   :  { %v2923_v0 = vpack.c.bf16 %v2906_v33, %v2903_v22  ;;  %v4174_v43 = vpop.f32.mrb[67].mxu1  ;;  %4231 = vmatprep.subr.bf16.mxu0 %v4611_v1 }
0x1114   :  { %4188 = vmatmul.mubr.msk.bf16.gmra.mrb[124].mxu0 %vm230_vm2, %v2923_v0 }
0x1115   :  { %4191 = vmatprep.mubr.msk.bf16.mxu0 %vm4612_vm0, %v4611_v1 }
0x11be   :  { %v2911_v12 = vpop.f32.mrb[68].mxu1 }
0x11bf   :  { %v2924_v49 = vpack.c.bf16 %v2911_v12, %v2911_v12  ;;  %v4177_v5 = vpop.f32.mrb[69].mxu1 }
0x11c0   :  { %v2914_v59 = vpop.f32.mrb[70].mxu1 }
0x11c1   :  { %v4178_v60 = vpop.f32.mrb[71].mxu1  ;;  %4192 = vmatmul.mubr.msk.bf16.gmra.mrb[128].mxu0 %vm230_vm2, %v2924_v49 }
0x11c2   :  { %4199 = vmatprep.mubr.msk.bf16.mxu0 %vm4612_vm0, %v4611_v1 }
0x11df   :  { %v2984_v41 = vpop.f32.mrb[120].mxu0 }
0x11e0   :  { %v3006_v28 = vadd.f32 %v2984_v41, %v5390_v61  ;;  %v4185_v2 = vpop.f32.mrb[121].mxu0 }
0x11e1   :  { %v2987_v62 = vpop.f32.mrb[122].mxu0 }
0x11e2   :  { %v5874_v27 = vadd.f32 %v3616_v42, %v3006_v28  ;;  %v3007_v23 = vadd.f32 %v2987_v62, %v5393_v50  ;;  %v4186_v54 = vpop.f32.mrb[123].mxu0  ;;  %v3617_v28 = vld [vmem:[%s6019_s2 + $0x34] ss:$0 sm:$0xff] }
0x11e3   :  { %v3618_v54 = vld [vmem:[%s6019_s2 + $0x35] ss:$0 sm:$0xff] }
0x11e4   :  { %v3017_v7 = vadd.f32 %v3616_v42, %v3007_v23  ;;  %v3023_v56 = vsel %vm230_vm2, %v5874_v27, 0.0 }
0x11e5   :  { %3024 = vadd.xlane.f32.xlu0 %v3023_v56 }
0x11e6   :  { %v3026_v14 = vsel %vm230_vm2, %v3017_v7, 0.0 }
0x11e7   :  { %v2992_v48 = vpop.f32.mrb[124].mxu0 }
0x11e8   :  { %v3008_v52 = vadd.f32 %v2992_v48, %v5400_v4  ;;  %v4189_v17 = vpop.f32.mrb[125].mxu0 }
0x11e9   :  { %3027 = vadd.xlane.f32.xlu0 %v3026_v14  ;;  %v2995_v61 = vpop.f32.mrb[126].mxu0 }
0x11ea   :  { %v5881_v19 = vadd.f32 %v3616_v42, %v3008_v52  ;;  %v3009_v18 = vadd.f32 %v2995_v61, %v5403_v13  ;;  %v4190_v25 = vpop.f32.mrb[127].mxu0 }
0x11ec   :  { %v3019_v50 = vadd.f32 %v3616_v42, %v3009_v18  ;;  %v3029_v21 = vsel %vm230_vm2, %v5881_v19, 0.0 }
0x11ed   :  { %3030 = vadd.xlane.f32.xlu0 %v3029_v21 }
0x11ee   :  { %v3032_v20 = vsel %vm230_vm2, %v3019_v50, 0.0 }
0x11f1   :  { %3033 = vadd.xlane.f32.xlu0 %v3032_v20 }
0x1272   :  { %v3025_v31 = vpop.xlane.xlu0 %3024 }
0x1273   :  { %v3038_v4 = vmul.f32 0.03125, %v3025_v31 }
0x1275   :  { %v3043_v37 = vsub.f32 %v5874_v27, %v3038_v4 }
0x1276   :  { %v3028_v51 = vpop.xlane.xlu0 %3027 }
0x1277   :  { %v3039_v8 = vmul.f32 0.03125, %v3028_v51  ;;  %v3048_v30 = vmul.f32 %v3043_v37, %v3043_v37 }
0x1279   :  { %v3044_v53 = vsub.f32 %v3017_v7, %v3039_v8  ;;  %v3053_v9 = vsel %vm230_vm2, %v3048_v30, 0.0 }
0x127a   :  { %v3031_v13 = vpop.xlane.xlu0 %3030  ;;  %3054 = vadd.xlane.f32.xlu0 %v3053_v9  ;;  %v4342_v9 = vld [vmem:[%s6018_s1 + $0xb8] sm:$0xff]  }
0x127b   :  { %v3040_v34 = vmul.f32 0.03125, %v3031_v13  ;;  %v3049_v15 = vmul.f32 %v3044_v53, %v3044_v53  ;;  %v4343_v13 = vld [vmem:[%s6018_s1 + $0xc0] sm:$0xff]  }
0x127d   :  { %v3045_v58 = vsub.f32 %v5881_v19, %v3040_v34  ;;  %v3056_v35 = vsel %vm230_vm2, %v3049_v15, 0.0  ;;  %v4344_v34 = vld [vmem:[%s6018_s1 + $0xc8] sm:$0xff]  }
0x127e   :  { %3057 = vadd.xlane.f32.xlu1 %v3056_v35  ;;  %v3034_v11 = vpop.xlane.xlu0 %3033 }
0x127f   :  { %v3041_v39 = vmul.f32 0.03125, %v3034_v11  ;;  %v3050_v63 = vmul.f32 %v3045_v58, %v3045_v58 }
0x1281   :  { %v3046_v3 = vsub.f32 %v3019_v50, %v3041_v39  ;;  %v3059_v29 = vsel %vm230_vm2, %v3050_v63, 0.0 }
0x1282   :  { %3060 = vadd.xlane.f32.xlu0 %v3059_v29 }
0x1283   :  { %v3051_v16 = vmul.f32 %v3046_v3, %v3046_v3 }
0x1285   :  { %v3062_v24 = vsel %vm230_vm2, %v3051_v16, 0.0  ;;  %v5937_v16 = vld [vmem:[%s6019_s2 + $0x36] ss:$0 sm:$0xff] }
0x1286   :  { %3063 = vadd.xlane.f32.xlu1 %v3062_v24 }
0x1294   :  { %v3000_v47 = vpop.f32.mrb[128].mxu0 }
0x1295   :  { %v3010_v40 = vadd.f32 %v3000_v47, %v5410_v36  ;;  %v4193_v55 = vpop.f32.mrb[129].mxu0 }
0x1296   :  { %v3003_v6 = vpop.f32.mrb[130].mxu0 }
0x1297   :  { %v3020_v32 = vadd.f32 %v3616_v42, %v3010_v40  ;;  %v4194_v45 = vpop.f32.mrb[131].mxu0 }
0x1299   :  { %v3035_v44 = vsel %vm243_vm3, %v3020_v32, 0.0 }
0x129a   :  { %3036 = vadd.xlane.f32.xlu0 %v3035_v44 }
0x1307   :  { %v3055_v36 = vpop.xlane.xlu0 %3054 }
0x1308   :  { %v3068_v46 = vmul.f32 0.03125, %v3055_v36 }
0x130a   :  { %v3073_v22 = vadd.f32 1e-05, %v3068_v46 }
0x130b   :  { %v3058_v38 = vpop.xlane.xlu1 %3057 }
0x130c   :  { %4557 = vrsqrt.f32 %v3073_v22  ;;  %v3069_v33 = vmul.f32 0.03125, %v3058_v38 }
0x130e   :  { %v3074_v0 = vadd.f32 1e-05, %v3069_v33 }
0x130f   :  { %v3061_v43 = vpop.xlane.xlu0 %3060 }
0x1310   :  { %4559 = vrsqrt.f32 %v3074_v0  ;;  %v3070_v12 = vmul.f32 0.03125, %v3061_v43 }
0x1312   :  { %v3075_v49 = vadd.f32 1e-05, %v3070_v12 }
0x1313   :  { %v3064_v5 = vpop.xlane.xlu1 %3063 }
0x1314   :  { %4561 = vrsqrt.f32 %v3075_v49  ;;  %v3071_v59 = vmul.f32 0.03125, %v3064_v5 }
0x1316   :  { %v4558_v60 = vpop.eup %4557  ;;  %v3076_v41 = vadd.f32 1e-05, %v3071_v59 }
0x1317   :  { %v3083_v42 = vmul.f32 %v4558_v60, %v3043_v37 }
0x1318   :  { %4563 = vrsqrt.f32 %v3076_v41 }
0x1319   :  { %v3092_v62 = vmul.f32 %v3617_v28, %v3083_v42 }
0x131a   :  { %v4560_v2 = vpop.eup %4559 }
0x131b   :  { %v3084_v23 = vmul.f32 %v4560_v2, %v3044_v53  ;;  %v3101_v48 = vadd.f32 %v3618_v54, %v3092_v62  ;;  %v4341_v53 = vld [vmem:[%s6018_s1 + $0xb0] sm:$0xff]  }
0x131c   :  { %4212 = vmatpush3.bf16.msra.mxu1 %v4341_v53 }
0x131d   :  { %v3093_v7 = vmul.f32 %v3617_v28, %v3084_v23  ;;  %4213 = vmatprep.subr.bf16.mxu1 %v4611_v1 }
0x131e   :  { %v4562_v56 = vpop.eup %4561 }
0x131f   :  { %v3102_v52 = vadd.f32 %v3618_v54, %v3093_v7  ;;  %v3085_v17 = vmul.f32 %v4562_v56, %v3045_v58 }
0x1320   :  { %4214 = vmatpush3.bf16.msra.mxu1 %v4342_v9 }
0x1321   :  { %v3106_v14 = vpack.c.bf16 %v3102_v52, %v3101_v48  ;;  %v3094_v25 = vmul.f32 %v3617_v28, %v3085_v17  ;;  %4215 = vmatprep.subr.bf16.mxu1 %v4611_v1 }
0x1322   :  { %v4564_v61 = vpop.eup %4563 }
0x1323   :  { %v3086_v18 = vmul.f32 %v4564_v61, %v3046_v3  ;;  %4200 = vmatmul.mubr.msk.bf16.vlgmr.msra.gmra.mrb[132].mxu0 %vm230_vm2, %v3106_v14  ;;  %v3103_v20 = vadd.f32 %v3618_v54, %v3094_v25 }
0x1324   :  { %4203 = vmatprep.mubr.msk.bf16.mxu0 %vm4612_vm0, %v4611_v1  ;;  %4216 = vmatpush3.bf16.msra.mxu1 %v4343_v13 }
0x1325   :  { %v3095_v50 = vmul.f32 %v3617_v28, %v3086_v18  ;;  %4217 = vmatprep.subr.bf16.mxu1 %v4611_v1 }
0x1327   :  { %v3037_v21 = vpop.xlane.xlu0 %3036  ;;  %v3104_v31 = vadd.f32 %v3618_v54, %v3095_v50 }
0x1328   :  { %v3042_v4 = vmul.f32 0.03125, %v3037_v21  ;;  %4218 = vmatpush3.bf16.msra.mxu1 %v4344_v34 }
0x1329   :  { %v3107_v37 = vpack.c.bf16 %v3104_v31, %v3103_v20 }
0x132a   :  { %v3047_v51 = vsub.f32 %v3020_v32, %v3042_v4 }
0x132b   :  { %4204 = vmatmul.mubr.msk.bf16.gmra.mrb[136].mxu0 %vm230_vm2, %v3107_v37 }
0x132c   :  { %v3052_v8 = vmul.f32 %v3047_v51, %v3047_v51  ;;  %4207 = vmatprep.mubr.msk.bf16.mxu0 %vm4612_vm0, %v4611_v1 }
0x132e   :  { %v3065_v30 = vsel %vm243_vm3, %v3052_v8, 0.0 }
0x132f   :  { %3066 = vadd.xlane.f32.xlu1 %v3065_v30 }
0x13bc   :  { %v3067_v15 = vpop.xlane.xlu1 %3066 }
0x13bd   :  { %v3072_v58 = vmul.f32 0.03125, %v3067_v15 }
0x13bf   :  { %v3077_v35 = vadd.f32 1e-05, %v3072_v58 }
0x13c1   :  { %4565 = vrsqrt.f32 %v3077_v35 }
0x13cb   :  { %v4566_v11 = vpop.eup %4565 }
0x13cc   :  { %v3087_v39 = vmul.f32 %v4566_v11, %v3047_v51 }
0x13ce   :  { %v3096_v63 = vmul.f32 %v3617_v28, %v3087_v39 }
0x13d0   :  { %v3105_v3 = vadd.f32 %v3618_v54, %v3096_v63 }
0x13d2   :  { %v3108_v29 = vpack.c.bf16 %v3105_v3, %v3105_v3 }
0x13d4   :  { %4208 = vmatmul.mubr.msk.bf16.gmra.mrb[140].mxu0 %vm230_vm2, %v3108_v29 }
0x13d5   :  { %4235 = vmatprep.mubr.msk.bf16.mxu0 %vm4612_vm0, %v4611_v1 }
0x13f6   :  { %v3173_v24 = vpop.f32.mrb[132].mxu0 }
0x13f7   :  { %v5940_v47 = vadd.f32 %v5937_v16, %v3173_v24  ;;  %v4201_v40 = vpop.f32.mrb[133].mxu0 }
0x13f8   :  { %v3176_v55 = vpop.f32.mrb[134].mxu0 }
0x13f9   :  { %v5943_v6 = vmul.f32 0.70710677, %v5940_v47  ;;  %v5946_v32 = vadd.f32 %v5937_v16, %v3176_v55  ;;  %v4202_v45 = vpop.f32.mrb[135].mxu0 }
0x13fb   :  { %v3210_v44 = vand.u32 2147483647, %v5943_v6  ;;  %v5950_v10 = vmul.f32 0.70710677, %v5946_v32  ;;  %vm3200_vm3 = vcmp.ge.f32.partialorder %v5943_v6, 0.0 }
0x13fd   :  { %v3215_v57 = vmul.f32 0.3275911, %v3210_v44  ;;  %v3211_v36 = vand.u32 2147483647, %v5950_v10  ;;  %v3280_v2 = vsub.f32 0.0, %v3210_v44  ;;  %vm3201_vm10 = vcmp.ge.f32.partialorder %v5950_v10, 0.0 }
0x13fe   :  { %v3181_v46 = vpop.f32.mrb[136].mxu0  ;;  %v3206_v6 = vsel %vm3201_vm10, 1.0, %v4616_v26 }
0x13ff   :  { %v3220_v22 = vadd.f32 1.0, %v3215_v57  ;;  %v3216_v38 = vmul.f32 0.3275911, %v3211_v36  ;;  %v4205_v33 = vpop.f32.mrb[137].mxu0  ;;  %v5954_v0 = vadd.f32 %v5937_v16, %v3181_v46  ;;  %v3281_v54 = vsub.f32 0.0, %v3211_v36 }
0x1400   :  { %v3184_v43 = vpop.f32.mrb[138].mxu0  ;;  %v3285_v48 = vmul.f32 %v3280_v2, %v3210_v44 }
0x1401   :  { %4567 = vrcp.f32 %v3220_v22  ;;  %v3221_v12 = vadd.f32 1.0, %v3216_v38  ;;  %v4206_v49 = vpop.f32.mrb[139].mxu0  ;;  %v5957_v5 = vmul.f32 0.70710677, %v5954_v0  ;;  %v5960_v59 = vadd.f32 %v5937_v16, %v3184_v43 }
0x1402   :  { %v3286_v61 = vmul.f32 %v3281_v54, %v3211_v36  ;;  %v3290_v18 = vmul.f32 1.442695, %v3285_v48 }
0x1403   :  { %4569 = vrcp.f32 %v3221_v12  ;;  %v3212_v60 = vand.u32 2147483647, %v5957_v5  ;;  %v5964_v41 = vmul.f32 0.70710677, %v5960_v59  ;;  %vm3202_vm13 = vcmp.ge.f32.partialorder %v5957_v5, 0.0 }
0x1404   :  { %v3292_v4 = vmul.f32 1.442695, %v3286_v61 }
0x1405   :  { %v3217_v42 = vmul.f32 0.3275911, %v3212_v60  ;;  %v3213_v28 = vand.u32 2147483647, %v5964_v41  ;;  %v3282_v21 = vsub.f32 0.0, %v3212_v60  ;;  %vm3203_vm15 = vcmp.ge.f32.partialorder %v5964_v41, 0.0 }
0x1407   :  { %v3222_v62 = vadd.f32 1.0, %v3217_v42  ;;  %v3218_v23 = vmul.f32 0.3275911, %v3213_v28  ;;  %v3283_v51 = vsub.f32 0.0, %v3213_v28  ;;  %v3287_v53 = vmul.f32 %v3282_v21, %v3212_v60 }
0x1409   :  { %4571 = vrcp.f32 %v3222_v62  ;;  %v3223_v7 = vadd.f32 1.0, %v3218_v23  ;;  %v3288_v11 = vmul.f32 %v3283_v51, %v3213_v28  ;;  %v3294_v63 = vmul.f32 1.442695, %v3287_v53 }
0x140a   :  { %v3205_v62 = vsel %vm3200_vm3, 1.0, %v4616_v26 }
0x140b   :  { %v4568_v56 = vpop.eup %4567  ;;  %4573 = vrcp.f32 %v3223_v7  ;;  %v3296_v57 = vmul.f32 1.442695, %v3288_v11 }
0x140c   :  { %v3235_v52 = vmul.f32 1.0614054, %v4568_v56  ;;  %4575 = vpow2.f32 %v3290_v18 }
0x140d   :  { %v4570_v17 = vpop.eup %4569  ;;  %4577 = vpow2.f32 %v3292_v4 }
0x140e   :  { %v3240_v14 = vadd.f32 -1.4531521, %v3235_v52  ;;  %v3236_v25 = vmul.f32 1.0614054, %v4570_v17  ;;  %4579 = vpow2.f32 %v3294_v63 }
0x140f   :  { %4581 = vpow2.f32 %v3296_v57 }
0x1410   :  { %v3245_v50 = vmul.f32 %v4568_v56, %v3240_v14  ;;  %v3241_v20 = vadd.f32 -1.4531521, %v3236_v25 }
0x1412   :  { %v3250_v31 = vadd.f32 1.4214138, %v3245_v50  ;;  %v3246_v37 = vmul.f32 %v4570_v17, %v3241_v20  ;;  %v3315_v50 = vmul.f32 0.5, %v5940_v47  ;;  %v3316_v20 = vmul.f32 0.5, %v5946_v32 }
0x1413   :  { %v4572_v8 = vpop.eup %4571 }
0x1414   :  { %v3255_v30 = vmul.f32 %v4568_v56, %v3250_v31  ;;  %v3251_v9 = vadd.f32 1.4214138, %v3246_v37  ;;  %v3237_v13 = vmul.f32 1.0614054, %v4572_v8 }
0x1415   :  { %v4574_v15 = vpop.eup %4573 }
0x1416   :  { %v3260_v34 = vadd.f32 -0.28449672, %v3255_v30  ;;  %v3256_v58 = vmul.f32 %v4570_v17, %v3251_v9  ;;  %v3242_v35 = vadd.f32 -1.4531521, %v3237_v13  ;;  %v3238_v3 = vmul.f32 1.0614054, %v4574_v15  ;;  %v4576_v22 = vpop.eup %4575 }
0x1417   :  { %v4578_v42 = vpop.eup %4577  ;;  %v3207_v9 = vsel %vm3202_vm13, 1.0, %v4616_v26 }
0x1418   :  { %v3265_v39 = vmul.f32 %v4568_v56, %v3260_v34  ;;  %v3261_v29 = vadd.f32 -0.28449672, %v3256_v58  ;;  %v3247_v24 = vmul.f32 %v4572_v8, %v3242_v35  ;;  %v3243_v55 = vadd.f32 -1.4531521, %v3238_v3  ;;  %v4580_v25 = vpop.eup %4579  ;;  %v4345_v3 = vld [vmem:[%s6018_s1 + $0x20] sm:$0xff]  }
0x1419   :  { %v4582_v37 = vpop.eup %4581  ;;  %v3208_v58 = vsel %vm3203_vm15, 1.0, %v4616_v26  ;;  %v3318_v35 = vmul.f32 0.5, %v5960_v59  ;;  %4232 = vmatpush3.bf16.msra.mxu0 %v4345_v3 }
0x141a   :  { %v3270_v40 = vadd.f32 0.2548296, %v3265_v39  ;;  %v3266_v45 = vmul.f32 %v4570_v17, %v3261_v29  ;;  %v3252_v44 = vadd.f32 1.4214138, %v3247_v24  ;;  %v3248_v46 = vmul.f32 %v4574_v15, %v3243_v55  ;;  %4233 = vmatprep.subr.bf16.mxu0 %v4611_v1 }
0x141c   :  { %v3275_v36 = vmul.f32 %v4568_v56, %v3270_v40  ;;  %v3271_v38 = vadd.f32 0.2548296, %v3266_v45  ;;  %v3257_v33 = vmul.f32 %v4572_v8, %v3252_v44  ;;  %v3253_v12 = vadd.f32 1.4214138, %v3248_v46 }
0x141e   :  { %v3300_v43 = vmul.f32 %v4576_v22, %v3275_v36  ;;  %v3276_v49 = vmul.f32 %v4570_v17, %v3271_v38  ;;  %v3262_v60 = vadd.f32 -0.28449672, %v3257_v33  ;;  %v3258_v2 = vmul.f32 %v4574_v15, %v3253_v12 }
0x1420   :  { %v3305_v28 = vsub.f32 1.0, %v3300_v43  ;;  %v3301_v23 = vmul.f32 %v4578_v42, %v3276_v49  ;;  %v3267_v54 = vmul.f32 %v4572_v8, %v3262_v60  ;;  %v3263_v56 = vadd.f32 -0.28449672, %v3258_v2 }
0x1422   :  { %v3310_v7 = vmul.f32 %v3305_v28, %v3205_v62  ;;  %v3306_v48 = vsub.f32 1.0, %v3301_v23  ;;  %v3272_v52 = vadd.f32 0.2548296, %v3267_v54  ;;  %v3268_v14 = vmul.f32 %v4574_v15, %v3263_v56 }
0x1424   :  { %v3320_v61 = vadd.f32 1.0, %v3310_v7  ;;  %v3311_v17 = vmul.f32 %v3306_v48, %v3206_v6  ;;  %v3277_v18 = vmul.f32 %v4572_v8, %v3272_v52  ;;  %v3273_v21 = vadd.f32 0.2548296, %v3268_v14 }
0x1426   :  { %v3321_v31 = vadd.f32 1.0, %v3311_v17  ;;  %v3302_v10 = vmul.f32 %v4580_v25, %v3277_v18  ;;  %v3278_v4 = vmul.f32 %v4574_v15, %v3273_v21  ;;  %v3325_v51 = vmul.f32 %v3320_v61, %v3315_v50  ;;  %v3625_v50 = vld [vmem:[%s6019_s2 + $0x37] ss:$0 sm:$0xff] }
0x1427   :  { %v3317_v15 = vmul.f32 0.5, %v5954_v0  ;;  %v4346_v0 = vld [vmem:[%s6018_s1 + $0x28] sm:$0xff]  }
0x1428   :  { %v3326_v30 = vmul.f32 %v3321_v31, %v3316_v20  ;;  %v3307_v53 = vsub.f32 1.0, %v3302_v10  ;;  %v3303_v8 = vmul.f32 %v4582_v37, %v3278_v4  ;;  %4234 = vmatpush3.bf16.msra.mxu0 %v4346_v0 }
0x142a   :  { %v3330_v13 = vpack.c.bf16 %v3326_v30, %v3325_v51  ;;  %v3312_v34 = vmul.f32 %v3307_v53, %v3207_v9  ;;  %v3308_v47 = vsub.f32 1.0, %v3303_v8 }
0x142c   :  { %4220 = vmatmul.mubr.msk.bf16.vlgmr.msra.gmra.mrb[72].mxu1 %vm71_vm1, %v3330_v13  ;;  %v3322_v32 = vadd.f32 1.0, %v3312_v34  ;;  %v3313_v5 = vmul.f32 %v3308_v47, %v3208_v58  ;;  %v3633_v47 = vld [vmem:[%s6019_s2 + $0x38] ss:$0 sm:$0xff] }
0x142d   :  { %4223 = vmatprep.mubr.msk.bf16.mxu1 %vm4612_vm0, %v4611_v1 }
0x142e   :  { %v3323_v11 = vadd.f32 1.0, %v3313_v5  ;;  %v3327_v39 = vmul.f32 %v3322_v32, %v3317_v15 }
0x1430   :  { %v3328_v41 = vmul.f32 %v3323_v11, %v3318_v35 }
0x1432   :  { %v3331_v63 = vpack.c.bf16 %v3328_v41, %v3327_v39 }
0x1434   :  { %4224 = vmatmul.mubr.msk.bf16.gmra.mrb[76].mxu1 %vm71_vm1, %v3331_v63 }
0x1435   :  { %4227 = vmatprep.mubr.msk.bf16.mxu1 %vm4612_vm0, %v4611_v1 }
0x14a7   :  { %v3189_v59 = vpop.f32.mrb[140].mxu0 }
0x14a8   :  { %v3190_v29 = vadd.f32 %v5937_v16, %v3189_v59  ;;  %v4209_v24 = vpop.f32.mrb[141].mxu0 }
0x14a9   :  { %v3192_v40 = vpop.f32.mrb[142].mxu0 }
0x14aa   :  { %v3199_v55 = vmul.f32 0.70710677, %v3190_v29  ;;  %v4210_v45 = vpop.f32.mrb[143].mxu0  ;;  %v3319_v48 = vmul.f32 0.5, %v3190_v29 }
0x14ac   :  { %v3214_v44 = vand.u32 2147483647, %v3199_v55  ;;  %vm3204_vm0 = vcmp.ge.f32.partialorder %v3199_v55, 0.0 }
0x14ad   :  { %v3209_v7 = vsel %vm3204_vm0, 1.0, %v4616_v26 }
0x14ae   :  { %v3219_v57 = vmul.f32 0.3275911, %v3214_v44  ;;  %v3284_v46 = vsub.f32 0.0, %v3214_v44 }
0x14b0   :  { %v3224_v36 = vadd.f32 1.0, %v3219_v57  ;;  %v3289_v38 = vmul.f32 %v3284_v46, %v3214_v44 }
0x14b2   :  { %4583 = vrcp.f32 %v3224_v36  ;;  %v3298_v43 = vmul.f32 1.442695, %v3289_v38 }
0x14b4   :  { %4585 = vpow2.f32 %v3298_v43 }
0x14bc   :  { %v4584_v22 = vpop.eup %4583 }
0x14bd   :  { %v3239_v1 = vmul.f32 1.0614054, %v4584_v22 }
0x14be   :  { %v4586_v62 = vpop.eup %4585 }
0x14bf   :  { %v3244_v33 = vadd.f32 -1.4531521, %v3239_v1 }
0x14c1   :  { %v3249_v12 = vmul.f32 %v4584_v22, %v3244_v33 }
0x14c3   :  { %v3254_v49 = vadd.f32 1.4214138, %v3249_v12 }
0x14c5   :  { %v3259_v60 = vmul.f32 %v4584_v22, %v3254_v49 }
0x14c7   :  { %v3264_v42 = vadd.f32 -0.28449672, %v3259_v60 }
0x14c9   :  { %v3269_v16 = vmul.f32 %v4584_v22, %v3264_v42 }
0x14cb   :  { %v3274_v28 = vadd.f32 0.2548296, %v3269_v16 }
0x14cd   :  { %v3279_v2 = vmul.f32 %v4584_v22, %v3274_v28 }
0x14cf   :  { %v3304_v23 = vmul.f32 %v4586_v62, %v3279_v2 }
0x14d1   :  { %v3309_v54 = vsub.f32 1.0, %v3304_v23 }
0x14d3   :  { %v3314_v56 = vmul.f32 %v3309_v54, %v3209_v7 }
0x14d5   :  { %v3324_v52 = vadd.f32 1.0, %v3314_v56 }
0x14d7   :  { %v3329_v6 = vmul.f32 %v3324_v52, %v3319_v48 }
0x14d9   :  { %v3332_v14 = vpack.c.bf16 %v3329_v6, %v3329_v6 }
0x14db   :  { %4228 = vmatmul.mubr.msk.bf16.gmra.mrb[80].mxu1 %vm71_vm1, %v3332_v14 }
0x14ff   :  { %v3413_v61 = vpop.f32.mrb[72].mxu1 }
0x1500   :  { %v4221_v17 = vpop.f32.mrb[73].mxu1  ;;  %v3414_v21 = vadd.f32 %v3625_v50, %v3413_v61 }
0x1501   :  { %v3416_v18 = vpop.f32.mrb[74].mxu1 }
0x1502   :  { %v4222_v25 = vpop.f32.mrb[75].mxu1  ;;  %v3432_v4 = vadd.f32 %v3414_v21, %v5874_v27 }
0x1507   :  { %v3420_v20 = vpop.f32.mrb[76].mxu1 }
0x1508   :  { %v3421_v31 = vadd.f32 %v3625_v50, %v3420_v20  ;;  %v4225_v10 = vpop.f32.mrb[77].mxu1 }
0x1509   :  { %v3423_v26 = vpop.f32.mrb[78].mxu1 }
0x150a   :  { %v3433_v37 = vadd.f32 %v3421_v31, %v5881_v19  ;;  %v4226_v51 = vpop.f32.mrb[79].mxu1 }
0x150c   :  { %v3434_v30 = vsel %vm734_vm14, %v3432_v4, %v3433_v37 }
0x150d   :  { %v3435_v53 = vpack.c.bf16 %v3434_v30, %v3434_v30 }
0x150f   :  { %4236 = vmatmul.mubr.msk.bf16.vlgmr.msra.gmra.mrb[144].mxu0 %vm230_vm2, %v3435_v53 }
0x15ae   :  { %v3427_v9 = vpop.f32.mrb[80].mxu1 }
0x15af   :  { %v4229_v8 = vpop.f32.mrb[81].mxu1 }
0x15b0   :  { %v3429_v13 = vpop.f32.mrb[82].mxu1 }
0x15b1   :  { %v4230_v34 = vpop.f32.mrb[83].mxu1 }
0x15e2   :  { %v3494_v58 = vpop.f32.mrb[144].mxu0 }
0x15e3   :  { %v3495_v27 = vadd.f32 %v3633_v47, %v3494_v58  ;;  %v4237_v32 = vpop.f32.mrb[145].mxu0 }
0x15e4   :  { %v3497_v19 = vpop.f32.mrb[146].mxu0 }
0x15e5   :  { %3500 = vst [vmem:[#allocation2] sm:$0x3] %v3495_v27  ;;  %v4238_v5 = vpop.f32.mrb[147].mxu0 }
0x15e6   :  { %4598 = shalt.err (!%p4595_p4)
}
0x15e7   :  { %s4599_s2 = scalar_lea.hbm %s6020_s3, 32 }
0x15e8   :  { %p4600_p5 = scmp.ne.s32.totalorder %s6020_s3, %s4599_s2  ;;  %p4603_p6 = scmp.lt.u32.totalorder %s4599_s2, %s6020_s3 }
0x15ea   :  { %p4605_p7 = pnand %p4603_p6, %p4600_p5 }
0x15ec   :  { %4608 = shalt.err (!%p4605_p7)
}
0x15ed   :  { %3510 = dma.vmem_to_hbm [thread:$0]  %s3508_s4, 32, %s6020_s3, [#allocation3]  }
0x15ee   :  { %4609 = dma.done.wait [#allocation3], 32  }
0x15ef   :  { %4610 = vsyncadd [#allocation3], 4294967264 }
0x15f0   :  { %3514 = vsyncpa [#allocation3], 1 }

</bundles_post_ra>
